<compile_context>
chip_gen: v7x
topology: tpu7x:2x2x1
jax: 0.10.0
libtpu: 0.0.40
codegen_flags: <defaults>
</compile_context>

<pallas_src>
import math
from functools import partial

import jax
import jax.numpy as jnp
from jax import lax
from jax.experimental import pallas as pl
from jax.experimental.pallas import tpu as pltpu


# --------------------------- compiler parameters ----------------------------

def _vmem_limit_bytes():
    """Generation-aware scoped-VMEM budget: ~3/4 of physical VMEM, capped.

    v5e/v6e (128 MiB physical) -> 96 MiB budget; v7x (64 MiB) -> 48 MiB.
    Falls back to a conservative 48 MiB if the query is unavailable.
    """
    default = 48 * 1024 * 1024
    try:
        cap = getattr(pltpu.get_tpu_info(), "vmem_capacity_bytes", None)
    except Exception:
        cap = None
    if not cap:
        return default
    return int(min(cap * 3 // 4, 112 * 1024 * 1024))


_VMEM_LIMIT = _vmem_limit_bytes()


def _params(*semantics):
    return pltpu.CompilerParams(dimension_semantics=semantics,
                                vmem_limit_bytes=_VMEM_LIMIT)


def _round_up(x, m):
    return ((x + m - 1) // m) * m


# -------------------- fused TDTransformer (qkv+attn+proj) -------------------

def _tdt_kernel(x_ref, wqkv_ref, bqkv_ref, wp1_ref, wp2_ref, bp_ref, o_ref):
    """Fused TDTransformer on one image tile: qkv conv, both axial attentions
    (H<->W swap done as an in-VMEM transpose) and the proj conv + ReLU."""
    _, h, w, c = x_ref.shape
    inv_sqrt_c = 1.0 / math.sqrt(c)
    bf = jnp.bfloat16

    # --- qkv 1x1 conv + folded BN: one (HW, C) x (C, 3C) MXU matmul ---
    x2 = x_ref[0].reshape(h * w, c)                              # bf16
    qkv = (jnp.dot(x2, wqkv_ref[...], preferred_element_type=jnp.float32)
           + bqkv_ref[...])                                      # (HW, 3C) f32
    qf = qkv[:, :c].reshape(h, w, c)
    kf = qkv[:, c:2 * c].reshape(h, w, c)
    vf = qkv[:, 2 * c:].reshape(h, w, c)

    def axial(qq, kk, vv):
        # standard attention over axis -2, batched over the leading axis
        s = jnp.einsum('lac,lbc->lab', qq, kk,
                       preferred_element_type=jnp.float32) * inv_sqrt_c
        s = s - jnp.max(s, axis=-1, keepdims=True)
        e = jnp.exp(s)
        p = e * pl.reciprocal(jnp.sum(e, axis=-1, keepdims=True), approx=True)
        return jnp.einsum('lab,lbc->lac', p.astype(vv.dtype), vv,
                          preferred_element_type=jnp.float32)

    swap = lambda t: jnp.transpose(t, (1, 0, 2))                 # in-VMEM H<->W

    out_h = axial(qf.astype(bf), kf.astype(bf), vf.astype(bf))   # (H, W, C) f32
    out_w = swap(axial(swap(qf).astype(bf), swap(kf).astype(bf),
                       swap(vf).astype(bf)))                     # (H, W, C) f32

    # --- proj 1x1 conv over [v_h | v_w] without materializing the concat ---
    y = jnp.dot(out_h.astype(bf).reshape(h * w, c), wp1_ref[...],
                preferred_element_type=jnp.float32)
    y = y + jnp.dot(out_w.astype(bf).reshape(h * w, c), wp2_ref[...],
                    preferred_element_type=jnp.float32)
    y = jnp.maximum(y + bp_ref[...], 0.0)
    o_ref[0] = y.reshape(h, w, c).astype(o_ref.dtype)


def tdt_fused(x_nhwc, p):
    """x_nhwc: (B, H, W, C) bf16 -> tdt: (B, H, W, C) bf16."""
    b, h, w, c = x_nhwc.shape
    wqkv = p['qkv_w'].astype(jnp.bfloat16)                       # (C, 3C)
    bqkv = p['qkv_b'].reshape(1, 3 * c)                          # f32
    wp1 = p['proj_w'][:c].astype(jnp.bfloat16)                   # (C, C) for v_h
    wp2 = p['proj_w'][c:].astype(jnp.bfloat16)                   # (C, C) for v_w
    bp = p['proj_b'].reshape(1, c)

    img = lambda bi: (bi, 0, 0, 0)
    rep = lambda bi: (0, 0)
    flops = b * (2 * h * w * c * 3 * c        # qkv
                 + 4 * h * w * w * c          # height-path attention
                 + 4 * w * h * h * c          # width-path attention
                 + 4 * h * w * c * c)         # proj
    return pl.pallas_call(
        _tdt_kernel,
        grid=(b,),
        in_specs=[pl.BlockSpec((1, h, w, c), img),
                  pl.BlockSpec((c, 3 * c), rep),
                  pl.BlockSpec((1, 3 * c), rep),
                  pl.BlockSpec((c, c), rep),
                  pl.BlockSpec((c, c), rep),
                  pl.BlockSpec((1, c), rep)],
        out_specs=pl.BlockSpec((1, h, w, c), img),
        out_shape=jax.ShapeDtypeStruct((b, h, w, c), jnp.bfloat16),
        compiler_params=_params("parallel"),
        cost_estimate=pl.CostEstimate(
            flops=int(flops),
            transcendentals=int(b * h * w * (h + w)),
            bytes_accessed=int(4 * b * h * w * c)),
    )(x_nhwc, wqkv, bqkv, wp1, wp2, bp)


# --------------- 3x3 conv (+BN) + residual + bias + ReLU kernel --------------

def _conv3x3_res_kernel(*refs, stride, ho, wo, cin, has_res_w):
    """3x3 conv as full-width row-tap matmuls; column shifts resolved by two
    epilogue value slices.  stride 2: the 2 W phases live on the lane axis."""
    if stride == 1:
        xp_ref, xres_ref, w9_ref = refs[:3]
        rest = refs[3:]
    else:
        xp_ref, xres_ref, w01_ref, w2_ref = refs[:4]
        rest = refs[4:]
    if has_res_w:
        rw_ref, b_ref, o_ref = rest
    else:
        (b_ref, o_ref), rw_ref = rest, None

    f32 = jnp.float32
    cout = o_ref.shape[-1]

    if stride == 1:
        wal = xp_ref.shape[2]                                    # aligned W+2
        accs = [None, None, None]
        for kh in range(3):
            y = xp_ref[0, kh:kh + ho, :, :].reshape(ho * wal, cin)
            for kw in range(3):
                t = jnp.dot(y, w9_ref[kh * 3 + kw], preferred_element_type=f32)
                accs[kw] = t if accs[kw] is None else accs[kw] + t
        a0, a1, a2 = [a.reshape(ho, wal, cout) for a in accs]
        out = a0[:, 0:wo, :] + a1[:, 1:1 + wo, :] + a2[:, 2:2 + wo, :]
    else:
        wal2, c2 = xp_ref.shape[3], xp_ref.shape[4]              # (W+2)/2, 2C
        a0 = a1 = None
        for kh in range(3):
            r0, phase = kh // 2, kh % 2
            y = xp_ref[0, r0:r0 + ho, phase, :, :].reshape(ho * wal2, c2)
            t0 = jnp.dot(y, w01_ref[kh], preferred_element_type=f32)   # kw=0,1
            t1 = jnp.dot(y[:, :cin], w2_ref[kh], preferred_element_type=f32)
            a0 = t0 if a0 is None else a0 + t0
            a1 = t1 if a1 is None else a1 + t1
        a0 = a0.reshape(ho, wal2, cout)
        a1 = a1.reshape(ho, wal2, cout)
        out = a0[:, 0:wo, :] + a1[:, 1:1 + wo, :]

    if rw_ref is not None:                                       # strided 1x1 conv
        res = jnp.dot(xres_ref[0].reshape(ho * wo, cin), rw_ref[...],
                      preferred_element_type=f32).reshape(ho, wo, cout)
    else:                                                        # identity residual
        res = xres_ref[0].astype(f32)
    o_ref[0] = jnp.maximum(out + res + b_ref[...], 0.0).astype(o_ref.dtype)


def conv3x3_res_block(tdt, x_res, p, *, stride, ho, wo):
    """tdt: (B,H,W,C) bf16; x_res: (B,ho,wo,C) bf16 -> (B,ho,wo,Cout) f32."""
    b, h, w, cin = tdt.shape
    cout = p['conv_w'].shape[1]
    w9 = jnp.transpose(p['conv_w'].reshape(cin, 9, cout),
                       (1, 0, 2)).astype(jnp.bfloat16)           # (9, Cin, Cout)
    bias = p['conv_b'].reshape(1, cout)
    res_w = p.get('res_w')
    has_res_w = res_w is not None

    hp = h + 2
    # Pad W so the flattened (rows*width, C) views in the kernel are
    # sublane-aligned (free reshapes); the extra zero columns are harmless.
    wal = _round_up(w + 2, 8 if stride == 1 else 16)
    xp = jnp.pad(tdt, ((0, 0), (1, 1), (1, wal - w - 1), (0, 0)))

    if stride == 1:
        slab = xp
        slab_spec = pl.BlockSpec((1, hp, wal, cin), lambda bi: (bi, 0, 0, 0))
        w_arrays = [w9]
        w_specs = [pl.BlockSpec((9, cin, cout), lambda bi: (0, 0, 0))]
        wide = wal
    else:
        # Free reshape: split the 2 H phases out as a dim and pack the 2 W
        # phases on the lane axis (no extra HBM copy, no strided kernel reads).
        slab = xp.reshape(b, hp // 2, 2, wal // 2, 2 * cin)
        slab_spec = pl.BlockSpec((1, hp // 2, 2, wal // 2, 2 * cin),
                                 lambda bi: (bi, 0, 0, 0, 0))
        w01 = jnp.concatenate([w9[0::3], w9[1::3]], axis=1)      # (3, 2Cin, Cout)
        w2 = w9[2::3]                                            # (3, Cin, Cout)
        w_arrays = [w01, w2]
        w_specs = [pl.BlockSpec((3, 2 * cin, cout), lambda bi: (0, 0, 0)),
                   pl.BlockSpec((3, cin, cout), lambda bi: (0, 0, 0))]
        wide = wal // 2

    in_arrays = [slab, x_res] + w_arrays
    in_specs = [slab_spec,
                pl.BlockSpec((1, ho, wo, cin), lambda bi: (bi, 0, 0, 0))] + w_specs
    if has_res_w:
        in_arrays.append(res_w.astype(jnp.bfloat16))
        in_specs.append(pl.BlockSpec((cin, cout), lambda bi: (0, 0)))
    in_arrays.append(bias)
    in_specs.append(pl.BlockSpec((1, cout), lambda bi: (0, 0)))

    return pl.pallas_call(
        partial(_conv3x3_res_kernel, stride=stride, ho=ho, wo=wo, cin=cin,
                has_res_w=has_res_w),
        grid=(b,),
        in_specs=in_specs,
        out_specs=pl.BlockSpec((1, ho, wo, cout), lambda bi: (bi, 0, 0, 0)),
        out_shape=jax.ShapeDtypeStruct((b, ho, wo, cout), jnp.float32),
        compiler_params=_params("parallel"),
        cost_estimate=pl.CostEstimate(
            flops=int(2 * b * 9 * ho * wide * cin * cout
                      + 2 * b * ho * wo * cin * cout),
            transcendentals=0,
            bytes_accessed=int(b * (hp * wal * cin * 2 + ho * wo * cin * 2
                                    + ho * wo * cout * 4))),
    )(*in_arrays)


# -------------------------------- glue (JAX) --------------------------------

def fold_bn(w, gamma, beta, mean, var, eps=1e-5):
    """w: (Cout, Cin*KH*KW) torch-layout -> folded (Cin*KH*KW, Cout), (Cout,)."""
    scale = gamma / jnp.sqrt(var + eps)
    return (w * scale[:, None]).T, beta - mean * scale


def block_forward(x, p, stride):
    """Block.forward: res = res(x); x = tdt(x); x = conv(x); relu(x + res)."""
    b, c, h, w = x.shape
    x_nhwc = jnp.transpose(x, (0, 2, 3, 1)).astype(jnp.bfloat16)

    # Fused TDTransformer (qkv conv + both axial attentions + proj), NHWC.
    tdt = tdt_fused(x_nhwc, p)                                   # (B,H,W,C) bf16

    s = stride
    ho = (h - 1) // s + 1
    wo = (w - 1) // s + 1
    if s != 1:
        # TODO(synk): odd H/W at stride 2 would need one extra pad row/col
        # before the lane-packing reshape.
        assert h % 2 == 0 and w % 2 == 0, "stride-2 lane packing needs even H, W"

    if p['res_w'] is None:
        x_res = x_nhwc                                           # identity residual
    else:
        x_res = x_nhwc[:, ::s, ::s, :]                           # (B, ho, wo, C)

    out_nhwc = conv3x3_res_block(tdt, x_res, p, stride=s, ho=ho, wo=wo)
    return jnp.transpose(out_nhwc, (0, 3, 1, 2))                 # NCHW at boundary


# ----------------------- deterministic parameter init -----------------------

def init_params(key, cin, cout, stride):
    ks = jax.random.split(key, 8)

    def bn(k, ch):
        k1, k2, k3, k4 = jax.random.split(k, 4)
        gamma = jax.random.uniform(k1, (ch,), minval=0.5, maxval=1.5)
        beta = 0.1 * jax.random.normal(k2, (ch,))
        mean = 0.1 * jax.random.normal(k3, (ch,))
        var = jax.random.uniform(k4, (ch,), minval=0.5, maxval=1.5)
        return gamma, beta, mean, var

    w_qkv = 0.2 * jax.random.normal(ks[0], (3 * cin, cin))       # Conv2d(cin, 3cin, 1)
    qkv_w, qkv_b = fold_bn(w_qkv, *bn(ks[1], 3 * cin))
    w_proj = 0.2 * jax.random.normal(ks[2], (cin, 2 * cin))      # Conv2d(2cin, cin, 1)
    proj_w, proj_b = fold_bn(w_proj, *bn(ks[3], cin))
    w_conv = 0.2 * jax.random.normal(ks[4], (cout, cin * 9))     # Conv2d(cin, cout, 3)
    conv_w, conv_b = fold_bn(w_conv, *bn(ks[5], cout))
    params = dict(qkv_w=qkv_w, qkv_b=qkv_b, proj_w=proj_w, proj_b=proj_b,
                  conv_w=conv_w, conv_b=conv_b)
    if stride != 1 or cin != cout:
        params['res_w'] = (0.2 * jax.random.normal(ks[6], (cout, cin))).T
    else:
        params['res_w'] = None
    return params


# ----------------------------- pure-JAX reference ----------------------------

def _ref_attention(q, k, v, c, hp):
    h_q = jnp.transpose(q, (0, 2, 1, 3))
    h_k = jnp.transpose(k, (0, 2, 3, 1))
    h_attn = jnp.einsum('bhic,bhcj->bhij', h_k, h_q, precision=hp) / math.sqrt(c)
    h_attn = jax.nn.softmax(h_attn, axis=-2)
    w_q = jnp.transpose(q, (0, 3, 2, 1))
    w_k = jnp.transpose(k, (0, 3, 1, 2))
    w_attn = jnp.einsum('bwic,bwcj->bwij', w_q, w_k, precision=hp) / math.sqrt(c)
    w_attn = jax.nn.softmax(w_attn, axis=-1)
    v_h = jnp.einsum('bhci,bhij->bhcj', jnp.transpose(v, (0, 2, 1, 3)), h_attn,
                     precision=hp)
    v_h = jnp.transpose(v_h, (0, 2, 1, 3))
    v_w = jnp.einsum('bwij,bwjc->bwic', w_attn, jnp.transpose(v, (0, 3, 2, 1)),
                     precision=hp)
    v_w = jnp.transpose(v_w, (0, 3, 2, 1))
    return jnp.concatenate([v_h, v_w], axis=1)


def reference_forward(x, p, stride):
    hp = jax.lax.Precision.HIGHEST

    def conv1x1(t, w, bias, relu):
        y = jnp.einsum('bchw,co->bohw', t, w, precision=hp) + bias[None, :, None, None]
        return jnp.maximum(y, 0.0) if relu else y

    b, c, h, w = x.shape
    qkv = conv1x1(x, p['qkv_w'], p['qkv_b'], False)
    q, k, v = jnp.split(qkv, 3, axis=1)
    attn = _ref_attention(q, k, v, c, hp)
    tdt = conv1x1(attn, p['proj_w'], p['proj_b'], True)

    cout = p['conv_w'].shape[1]
    w_oihw = p['conv_w'].reshape(c, 3, 3, cout).transpose(3, 0, 1, 2)
    main = lax.conv_general_dilated(
        tdt, w_oihw, (stride, stride), ((1, 1), (1, 1)),
        dimension_numbers=('NCHW', 'OIHW', 'NCHW'), precision=hp)
    main = main + p['conv_b'][None, :, None, None]

    x_sub = x[:, :, ::stride, ::stride]
    if p.get('res_w') is None:
        res = x_sub
    else:
        res = jnp.einsum('bchw,co->bohw', x_sub, p['res_w'], precision=hp)
    return jnp.maximum(main + res, 0.0)


# ----------------------------------- main ------------------------------------

def _check(out, ref, tag):
    assert out.shape == ref.shape, (tag, out.shape, ref.shape)
    assert bool(jnp.all(jnp.isfinite(out))), tag
    err = float(jnp.max(jnp.abs(out - ref)))
    rel = float(jnp.linalg.norm(out - ref) / (jnp.linalg.norm(ref) + 1e-12))
    assert bool(jnp.allclose(out, ref, atol=5e-2, rtol=5e-2)), (tag, err, rel)
    assert rel < 5e-2, (tag, err, rel)


if __name__ == "__main__":
    key = jax.random.PRNGKey(0)
    fwd = jax.jit(block_forward, static_argnums=2)

    # config 1: channel change + stride 2 (projection residual branch)
    b, cin, cout, h, w, stride = 2, 4, 8, 16, 16, 2
    kx, kp, key = jax.random.split(key, 3)
    x = jax.random.normal(kx, (b, cin, h, w), dtype=jnp.float32)
    params = init_params(kp, cin, cout, stride)
    out = jax.block_until_ready(fwd(x, params, stride))
    assert out.shape == (b, cout, h // stride, w // stride), out.shape
    _check(out, reference_forward(x, params, stride), "stride2")

    # config 2: identity residual branch (stride 1, cin == cout)
    kx2, kp2 = jax.random.split(key)
    x2 = jax.random.normal(kx2, (2, 4, 16, 16), dtype=jnp.float32)
    params2 = init_params(kp2, 4, 4, 1)
    out2 = jax.block_until_ready(fwd(x2, params2, 1))
    _check(out2, reference_forward(x2, params2, 1), "stride1")

    print("KERNEL_OK")
</pallas_src>

<mosaic_0001>
module attributes {stable_mosaic.version = 11 : i64} {
  func.func @_tdt_kernel(%arg0: i32, %arg1: memref<1x16x16x4xbf16, #tpu.memory_space<vmem>>, %arg2: memref<4x12xbf16, #tpu.memory_space<vmem>>, %arg3: memref<1x12xf32, #tpu.memory_space<vmem>>, %arg4: memref<4x4xbf16, #tpu.memory_space<vmem>>, %arg5: memref<4x4xbf16, #tpu.memory_space<vmem>>, %arg6: memref<1x4xf32, #tpu.memory_space<vmem>>, %arg7: memref<1x16x16x4xbf16, #tpu.memory_space<vmem>>) attributes {dimension_semantics = [#tpu.dimension_semantics<parallel>], iteration_bounds = array<i64: 2>, scalar_prefetch = 0 : i64, scratch_operands = 0 : i64, tpu.core_type = #tpu.core_type<tc>, window_params = [{transform_indices = @transform_0, window_bounds = array<i64: 1, 16, 16, 4>}, {pipeline_mode = #tpu.pipeline_mode<synchronous>, transform_indices = @transform_1, window_bounds = array<i64: 4, 12>}, {pipeline_mode = #tpu.pipeline_mode<synchronous>, transform_indices = @transform_2, window_bounds = array<i64: 1, 12>}, {pipeline_mode = #tpu.pipeline_mode<synchronous>, transform_indices = @transform_3, window_bounds = array<i64: 4, 4>}, {pipeline_mode = #tpu.pipeline_mode<synchronous>, transform_indices = @transform_4, window_bounds = array<i64: 4, 4>}, {pipeline_mode = #tpu.pipeline_mode<synchronous>, transform_indices = @transform_5, window_bounds = array<i64: 1, 4>}, {transform_indices = @transform_6, window_bounds = array<i64: 1, 16, 16, 4>}]} {
    %c0 = arith.constant 0 : index
    %c0_0 = arith.constant 0 : index
    %c0_1 = arith.constant 0 : index
    %c0_2 = arith.constant 0 : index
    %0 = vector.load %arg1[%c0, %c0_0, %c0_1, %c0_2] : memref<1x16x16x4xbf16, #tpu.memory_space<vmem>>, vector<1x16x16x4xbf16>
    %1 = vector.shape_cast %0 : vector<1x16x16x4xbf16> to vector<16x16x4xbf16>
    %2 = vector.shape_cast %1 : vector<16x16x4xbf16> to vector<256x4xbf16>
    %c0_3 = arith.constant 0 : index
    %c0_4 = arith.constant 0 : index
    %3 = vector.load %arg2[%c0_3, %c0_4] : memref<4x12xbf16, #tpu.memory_space<vmem>>, vector<4x12xbf16>
    %cst = arith.constant dense<0.000000e+00> : vector<256x12xf32>
    %4 = tpu.matmul %2, %3, %cst {dimension_numbers = #tpu.dot_dimension_numbers<[1], [0], [0], [1], [0, 0, 1, 1], [], []>} : vector<256x4xbf16>, vector<4x12xbf16>, vector<256x12xf32> -> vector<256x12xf32>
    %c0_5 = arith.constant 0 : index
    %c0_6 = arith.constant 0 : index
    %5 = vector.load %arg3[%c0_5, %c0_6] : memref<1x12xf32, #tpu.memory_space<vmem>>, vector<1x12xf32>
    %6 = vector.broadcast %5 : vector<1x12xf32> to vector<256x12xf32>
    %7 = arith.addf %4, %6 : vector<256x12xf32>
    %8 = vector.extract_strided_slice %7 {offsets = [0, 0], sizes = [256, 4], strides = [1, 1]} : vector<256x12xf32> to vector<256x4xf32>
    %9 = vector.shape_cast %8 : vector<256x4xf32> to vector<16x16x4xf32>
    %10 = vector.extract_strided_slice %7 {offsets = [0, 4], sizes = [256, 4], strides = [1, 1]} : vector<256x12xf32> to vector<256x4xf32>
    %11 = vector.shape_cast %10 : vector<256x4xf32> to vector<16x16x4xf32>
    %12 = vector.extract_strided_slice %7 {offsets = [0, 8], sizes = [256, 4], strides = [1, 1]} : vector<256x12xf32> to vector<256x4xf32>
    %13 = vector.shape_cast %12 : vector<256x4xf32> to vector<16x16x4xf32>
    %14 = arith.truncf %9 : vector<16x16x4xf32> to vector<16x16x4xbf16>
    %15 = arith.truncf %11 : vector<16x16x4xf32> to vector<16x16x4xbf16>
    %16 = arith.truncf %13 : vector<16x16x4xf32> to vector<16x16x4xbf16>
    "tpu.trace_start"() <{level = 10 : i32, message = "lac,lbc->lab"}> : () -> ()
    %cst_7 = arith.constant dense<0.000000e+00> : vector<16x16x16xf32>
    %17 = tpu.matmul %14, %15, %cst_7 {dimension_numbers = #tpu.dot_dimension_numbers<[2], [2], [1], [1], [0, 0, 0, 1, 1, 1], [0], [0]>} : vector<16x16x4xbf16>, vector<16x16x4xbf16>, vector<16x16x16xf32> -> vector<16x16x16xf32>
    "tpu.trace_stop"() : () -> ()
    %cst_8 = arith.constant 5.000000e-01 : f32
    %18 = vector.broadcast %cst_8 : f32 to vector<16x16x16xf32>
    %19 = arith.mulf %17, %18 : vector<16x16x16xf32>
    %cst_9 = arith.constant dense<0xFF800000> : vector<16x16xf32>
    %20 = vector.multi_reduction <maximumf>, %19, %cst_9 [2] : vector<16x16x16xf32> to vector<16x16xf32>
    %21 = vector.shape_cast %20 : vector<16x16xf32> to vector<16x16x1xf32>
    %22 = vector.broadcast %21 : vector<16x16x1xf32> to vector<16x16x16xf32>
    %23 = arith.subf %19, %22 : vector<16x16x16xf32>
    %24 = math.exp %23 : vector<16x16x16xf32>
    %cst_10 = arith.constant dense<0.000000e+00> : vector<16x16xf32>
    %25 = vector.multi_reduction <add>, %24, %cst_10 [2] : vector<16x16x16xf32> to vector<16x16xf32>
    %26 = vector.shape_cast %25 : vector<16x16xf32> to vector<16x16x1xf32>
    %27 = tpu.reciprocal %26 {approx = true} : vector<16x16x1xf32> -> vector<16x16x1xf32>
    %28 = vector.broadcast %27 : vector<16x16x1xf32> to vector<16x16x16xf32>
    %29 = arith.mulf %24, %28 : vector<16x16x16xf32>
    %30 = arith.truncf %29 : vector<16x16x16xf32> to vector<16x16x16xbf16>
    "tpu.trace_start"() <{level = 10 : i32, message = "lab,lbc->lac"}> : () -> ()
    %cst_11 = arith.constant dense<0.000000e+00> : vector<16x16x4xf32>
    %31 = tpu.matmul %30, %16, %cst_11 {dimension_numbers = #tpu.dot_dimension_numbers<[2], [1], [1], [2], [0, 0, 0, 1, 1, 2], [0], [0]>} : vector<16x16x16xbf16>, vector<16x16x4xbf16>, vector<16x16x4xf32> -> vector<16x16x4xf32>
    "tpu.trace_stop"() : () -> ()
    %32 = tpu.transpose %9, [1, 0, 2] : vector<16x16x4xf32> -> vector<16x16x4xf32>
    %33 = arith.truncf %32 : vector<16x16x4xf32> to vector<16x16x4xbf16>
    %34 = tpu.transpose %11, [1, 0, 2] : vector<16x16x4xf32> -> vector<16x16x4xf32>
    %35 = arith.truncf %34 : vector<16x16x4xf32> to vector<16x16x4xbf16>
    %36 = tpu.transpose %13, [1, 0, 2] : vector<16x16x4xf32> -> vector<16x16x4xf32>
    %37 = arith.truncf %36 : vector<16x16x4xf32> to vector<16x16x4xbf16>
    "tpu.trace_start"() <{level = 10 : i32, message = "lac,lbc->lab"}> : () -> ()
    %cst_12 = arith.constant dense<0.000000e+00> : vector<16x16x16xf32>
    %38 = tpu.matmul %33, %35, %cst_12 {dimension_numbers = #tpu.dot_dimension_numbers<[2], [2], [1], [1], [0, 0, 0, 1, 1, 1], [0], [0]>} : vector<16x16x4xbf16>, vector<16x16x4xbf16>, vector<16x16x16xf32> -> vector<16x16x16xf32>
    "tpu.trace_stop"() : () -> ()
    %cst_13 = arith.constant 5.000000e-01 : f32
    %39 = vector.broadcast %cst_13 : f32 to vector<16x16x16xf32>
    %40 = arith.mulf %38, %39 : vector<16x16x16xf32>
    %cst_14 = arith.constant dense<0xFF800000> : vector<16x16xf32>
    %41 = vector.multi_reduction <maximumf>, %40, %cst_14 [2] : vector<16x16x16xf32> to vector<16x16xf32>
    %42 = vector.shape_cast %41 : vector<16x16xf32> to vector<16x16x1xf32>
    %43 = vector.broadcast %42 : vector<16x16x1xf32> to vector<16x16x16xf32>
    %44 = arith.subf %40, %43 : vector<16x16x16xf32>
    %45 = math.exp %44 : vector<16x16x16xf32>
    %cst_15 = arith.constant dense<0.000000e+00> : vector<16x16xf32>
    %46 = vector.multi_reduction <add>, %45, %cst_15 [2] : vector<16x16x16xf32> to vector<16x16xf32>
    %47 = vector.shape_cast %46 : vector<16x16xf32> to vector<16x16x1xf32>
    %48 = tpu.reciprocal %47 {approx = true} : vector<16x16x1xf32> -> vector<16x16x1xf32>
    %49 = vector.broadcast %48 : vector<16x16x1xf32> to vector<16x16x16xf32>
    %50 = arith.mulf %45, %49 : vector<16x16x16xf32>
    %51 = arith.truncf %50 : vector<16x16x16xf32> to vector<16x16x16xbf16>
    "tpu.trace_start"() <{level = 10 : i32, message = "lab,lbc->lac"}> : () -> ()
    %cst_16 = arith.constant dense<0.000000e+00> : vector<16x16x4xf32>
    %52 = tpu.matmul %51, %37, %cst_16 {dimension_numbers = #tpu.dot_dimension_numbers<[2], [1], [1], [2], [0, 0, 0, 1, 1, 2], [0], [0]>} : vector<16x16x16xbf16>, vector<16x16x4xbf16>, vector<16x16x4xf32> -> vector<16x16x4xf32>
    "tpu.trace_stop"() : () -> ()
    %53 = tpu.transpose %52, [1, 0, 2] : vector<16x16x4xf32> -> vector<16x16x4xf32>
    %54 = arith.truncf %31 : vector<16x16x4xf32> to vector<16x16x4xbf16>
    %55 = vector.shape_cast %54 : vector<16x16x4xbf16> to vector<256x4xbf16>
    %c0_17 = arith.constant 0 : index
    %c0_18 = arith.constant 0 : index
    %56 = vector.load %arg4[%c0_17, %c0_18] : memref<4x4xbf16, #tpu.memory_space<vmem>>, vector<4x4xbf16>
    %cst_19 = arith.constant dense<0.000000e+00> : vector<256x4xf32>
    %57 = tpu.matmul %55, %56, %cst_19 {dimension_numbers = #tpu.dot_dimension_numbers<[1], [0], [0], [1], [0, 0, 1, 1], [], []>} : vector<256x4xbf16>, vector<4x4xbf16>, vector<256x4xf32> -> vector<256x4xf32>
    %58 = arith.truncf %53 : vector<16x16x4xf32> to vector<16x16x4xbf16>
    %59 = vector.shape_cast %58 : vector<16x16x4xbf16> to vector<256x4xbf16>
    %c0_20 = arith.constant 0 : index
    %c0_21 = arith.constant 0 : index
    %60 = vector.load %arg5[%c0_20, %c0_21] : memref<4x4xbf16, #tpu.memory_space<vmem>>, vector<4x4xbf16>
    %cst_22 = arith.constant dense<0.000000e+00> : vector<256x4xf32>
    %61 = tpu.matmul %59, %60, %cst_22 {dimension_numbers = #tpu.dot_dimension_numbers<[1], [0], [0], [1], [0, 0, 1, 1], [], []>} : vector<256x4xbf16>, vector<4x4xbf16>, vector<256x4xf32> -> vector<256x4xf32>
    %62 = arith.addf %57, %61 : vector<256x4xf32>
    %c0_23 = arith.constant 0 : index
    %c0_24 = arith.constant 0 : index
    %63 = vector.load %arg6[%c0_23, %c0_24] : memref<1x4xf32, #tpu.memory_space<vmem>>, vector<1x4xf32>
    %64 = vector.broadcast %63 : vector<1x4xf32> to vector<256x4xf32>
    %65 = arith.addf %62, %64 : vector<256x4xf32>
    %cst_25 = arith.constant 0.000000e+00 : f32
    %66 = vector.broadcast %cst_25 : f32 to vector<256x4xf32>
    %67 = arith.maximumf %65, %66 : vector<256x4xf32>
    %68 = vector.shape_cast %67 : vector<256x4xf32> to vector<16x16x4xf32>
    %69 = arith.truncf %68 : vector<16x16x4xf32> to vector<16x16x4xbf16>
    %c0_26 = arith.constant 0 : index
    %c0_27 = arith.constant 0 : index
    %c0_28 = arith.constant 0 : index
    %c0_29 = arith.constant 0 : index
    %70 = vector.load %arg7[%c0_26, %c0_27, %c0_28, %c0_29] : memref<1x16x16x4xbf16, #tpu.memory_space<vmem>>, vector<1x16x16x4xbf16>
    %71 = vector.shape_cast %70 : vector<1x16x16x4xbf16> to vector<16x16x4xbf16>
    %72 = vector.shape_cast %69 : vector<16x16x4xbf16> to vector<1x16x16x4xbf16>
    tpu.vector_store %arg7[%c0_26, %c0_27, %c0_28, %c0_29], %72 {strides = array<i32>} : memref<1x16x16x4xbf16, #tpu.memory_space<vmem>>, vector<1x16x16x4xbf16>,
    return
  }
  func.func @transform_0(%arg0: i32) -> (i32, i32, i32, i32) {
    %c0_i32 = arith.constant 0 : i32
    %c0_i32_0 = arith.constant 0 : i32
    %c0_i32_1 = arith.constant 0 : i32
    %c0_i32_2 = arith.constant 0 : i32
    return %arg0, %c0_i32, %c0_i32_0, %c0_i32_1 : i32, i32, i32, i32
  }
  func.func @transform_1(%arg0: i32) -> (i32, i32) {
    %c0_i32 = arith.constant 0 : i32
    %c0_i32_0 = arith.constant 0 : i32
    %c0_i32_1 = arith.constant 0 : i32
    return %c0_i32, %c0_i32_0 : i32, i32
  }
  func.func @transform_2(%arg0: i32) -> (i32, i32) {
    %c0_i32 = arith.constant 0 : i32
    %c0_i32_0 = arith.constant 0 : i32
    %c0_i32_1 = arith.constant 0 : i32
    return %c0_i32, %c0_i32_0 : i32, i32
  }
  func.func @transform_3(%arg0: i32) -> (i32, i32) {
    %c0_i32 = arith.constant 0 : i32
    %c0_i32_0 = arith.constant 0 : i32
    %c0_i32_1 = arith.constant 0 : i32
    return %c0_i32, %c0_i32_0 : i32, i32
  }
  func.func @transform_4(%arg0: i32) -> (i32, i32) {
    %c0_i32 = arith.constant 0 : i32
    %c0_i32_0 = arith.constant 0 : i32
    %c0_i32_1 = arith.constant 0 : i32
    return %c0_i32, %c0_i32_0 : i32, i32
  }
  func.func @transform_5(%arg0: i32) -> (i32, i32) {
    %c0_i32 = arith.constant 0 : i32
    %c0_i32_0 = arith.constant 0 : i32
    %c0_i32_1 = arith.constant 0 : i32
    return %c0_i32, %c0_i32_0 : i32, i32
  }
  func.func @transform_6(%arg0: i32) -> (i32, i32, i32, i32) {
    %c0_i32 = arith.constant 0 : i32
    %c0_i32_0 = arith.constant 0 : i32
    %c0_i32_1 = arith.constant 0 : i32
    %c0_i32_2 = arith.constant 0 : i32
    return %arg0, %c0_i32, %c0_i32_0, %c0_i32_1 : i32, i32, i32, i32
  }
}

module attributes {stable_mosaic.version = 11 : i64} {
  func.func @_conv3x3_res_kernel(%arg0: i32, %arg1: memref<1x9x2x16x8xbf16, #tpu.memory_space<vmem>>, %arg2: memref<1x8x8x4xbf16, #tpu.memory_space<vmem>>, %arg3: memref<3x8x8xbf16, #tpu.memory_space<vmem>>, %arg4: memref<3x4x8xbf16, #tpu.memory_space<vmem>>, %arg5: memref<4x8xbf16, #tpu.memory_space<vmem>>, %arg6: memref<1x8xf32, #tpu.memory_space<vmem>>, %arg7: memref<1x8x8x8xf32, #tpu.memory_space<vmem>>) attributes {dimension_semantics = [#tpu.dimension_semantics<parallel>], iteration_bounds = array<i64: 2>, scalar_prefetch = 0 : i64, scratch_operands = 0 : i64, tpu.core_type = #tpu.core_type<tc>, window_params = [{transform_indices = @transform_0, window_bounds = array<i64: 1, 9, 2, 16, 8>}, {transform_indices = @transform_1, window_bounds = array<i64: 1, 8, 8, 4>}, {pipeline_mode = #tpu.pipeline_mode<synchronous>, transform_indices = @transform_2, window_bounds = array<i64: 3, 8, 8>}, {pipeline_mode = #tpu.pipeline_mode<synchronous>, transform_indices = @transform_3, window_bounds = array<i64: 3, 4, 8>}, {pipeline_mode = #tpu.pipeline_mode<synchronous>, transform_indices = @transform_4, window_bounds = array<i64: 4, 8>}, {pipeline_mode = #tpu.pipeline_mode<synchronous>, transform_indices = @transform_5, window_bounds = array<i64: 1, 8>}, {transform_indices = @transform_6, window_bounds = array<i64: 1, 8, 8, 8>}]} {
    %c0 = arith.constant 0 : index
    %c0_0 = arith.constant 0 : index
    %c0_1 = arith.constant 0 : index
    %c0_2 = arith.constant 0 : index
    %c0_3 = arith.constant 0 : index
    %0 = vector.load %arg1[%c0, %c0_0, %c0_1, %c0_2, %c0_3] : memref<1x9x2x16x8xbf16, #tpu.memory_space<vmem>>, vector<1x8x1x16x8xbf16>
    %1 = vector.shape_cast %0 : vector<1x8x1x16x8xbf16> to vector<8x16x8xbf16>
    %2 = vector.shape_cast %1 : vector<8x16x8xbf16> to vector<128x8xbf16>
    %c0_4 = arith.constant 0 : index
    %c0_5 = arith.constant 0 : index
    %c0_6 = arith.constant 0 : index
    %3 = vector.load %arg3[%c0_4, %c0_5, %c0_6] : memref<3x8x8xbf16, #tpu.memory_space<vmem>>, vector<1x8x8xbf16>
    %4 = vector.shape_cast %3 : vector<1x8x8xbf16> to vector<8x8xbf16>
    %cst = arith.constant dense<0.000000e+00> : vector<128x8xf32>
    %5 = tpu.matmul %2, %4, %cst {dimension_numbers = #tpu.dot_dimension_numbers<[1], [0], [0], [1], [0, 0, 1, 1], [], []>} : vector<128x8xbf16>, vector<8x8xbf16>, vector<128x8xf32> -> vector<128x8xf32>
    %6 = vector.extract_strided_slice %2 {offsets = [0, 0], sizes = [128, 4], strides = [1, 1]} : vector<128x8xbf16> to vector<128x4xbf16>
    %c0_7 = arith.constant 0 : index
    %c0_8 = arith.constant 0 : index
    %c0_9 = arith.constant 0 : index
    %7 = vector.load %arg4[%c0_7, %c0_8, %c0_9] : memref<3x4x8xbf16, #tpu.memory_space<vmem>>, vector<1x4x8xbf16>
    %8 = vector.shape_cast %7 : vector<1x4x8xbf16> to vector<4x8xbf16>
    %cst_10 = arith.constant dense<0.000000e+00> : vector<128x8xf32>
    %9 = tpu.matmul %6, %8, %cst_10 {dimension_numbers = #tpu.dot_dimension_numbers<[1], [0], [0], [1], [0, 0, 1, 1], [], []>} : vector<128x4xbf16>, vector<4x8xbf16>, vector<128x8xf32> -> vector<128x8xf32>
    %c0_11 = arith.constant 0 : index
    %c0_12 = arith.constant 0 : index
    %c1 = arith.constant 1 : index
    %c0_13 = arith.constant 0 : index
    %c0_14 = arith.constant 0 : index
    %10 = vector.load %arg1[%c0_11, %c0_12, %c1, %c0_13, %c0_14] : memref<1x9x2x16x8xbf16, #tpu.memory_space<vmem>>, vector<1x8x1x16x8xbf16>
    %11 = vector.shape_cast %10 : vector<1x8x1x16x8xbf16> to vector<8x16x8xbf16>
    %12 = vector.shape_cast %11 : vector<8x16x8xbf16> to vector<128x8xbf16>
    %c1_15 = arith.constant 1 : index
    %c0_16 = arith.constant 0 : index
    %c0_17 = arith.constant 0 : index
    %13 = vector.load %arg3[%c1_15, %c0_16, %c0_17] : memref<3x8x8xbf16, #tpu.memory_space<vmem>>, vector<1x8x8xbf16>
    %14 = vector.shape_cast %13 : vector<1x8x8xbf16> to vector<8x8xbf16>
    %cst_18 = arith.constant dense<0.000000e+00> : vector<128x8xf32>
    %15 = tpu.matmul %12, %14, %cst_18 {dimension_numbers = #tpu.dot_dimension_numbers<[1], [0], [0], [1], [0, 0, 1, 1], [], []>} : vector<128x8xbf16>, vector<8x8xbf16>, vector<128x8xf32> -> vector<128x8xf32>
    %16 = vector.extract_strided_slice %12 {offsets = [0, 0], sizes = [128, 4], strides = [1, 1]} : vector<128x8xbf16> to vector<128x4xbf16>
    %c1_19 = arith.constant 1 : index
    %c0_20 = arith.constant 0 : index
    %c0_21 = arith.constant 0 : index
    %17 = vector.load %arg4[%c1_19, %c0_20, %c0_21] : memref<3x4x8xbf16, #tpu.memory_space<vmem>>, vector<1x4x8xbf16>
    %18 = vector.shape_cast %17 : vector<1x4x8xbf16> to vector<4x8xbf16>
    %cst_22 = arith.constant dense<0.000000e+00> : vector<128x8xf32>
    %19 = tpu.matmul %16, %18, %cst_22 {dimension_numbers = #tpu.dot_dimension_numbers<[1], [0], [0], [1], [0, 0, 1, 1], [], []>} : vector<128x4xbf16>, vector<4x8xbf16>, vector<128x8xf32> -> vector<128x8xf32>
    %20 = arith.addf %5, %15 : vector<128x8xf32>
    %21 = arith.addf %9, %19 : vector<128x8xf32>
    %c0_23 = arith.constant 0 : index
    %c1_24 = arith.constant 1 : index
    %c0_25 = arith.constant 0 : index
    %c0_26 = arith.constant 0 : index
    %c0_27 = arith.constant 0 : index
    %22 = vector.load %arg1[%c0_23, %c1_24, %c0_25, %c0_26, %c0_27] : memref<1x9x2x16x8xbf16, #tpu.memory_space<vmem>>, vector<1x8x1x16x8xbf16>
    %23 = vector.shape_cast %22 : vector<1x8x1x16x8xbf16> to vector<8x16x8xbf16>
    %24 = vector.shape_cast %23 : vector<8x16x8xbf16> to vector<128x8xbf16>
    %c2 = arith.constant 2 : index
    %c0_28 = arith.constant 0 : index
    %c0_29 = arith.constant 0 : index
    %25 = vector.load %arg3[%c2, %c0_28, %c0_29] : memref<3x8x8xbf16, #tpu.memory_space<vmem>>, vector<1x8x8xbf16>
    %26 = vector.shape_cast %25 : vector<1x8x8xbf16> to vector<8x8xbf16>
    %cst_30 = arith.constant dense<0.000000e+00> : vector<128x8xf32>
    %27 = tpu.matmul %24, %26, %cst_30 {dimension_numbers = #tpu.dot_dimension_numbers<[1], [0], [0], [1], [0, 0, 1, 1], [], []>} : vector<128x8xbf16>, vector<8x8xbf16>, vector<128x8xf32> -> vector<128x8xf32>
    %28 = vector.extract_strided_slice %24 {offsets = [0, 0], sizes = [128, 4], strides = [1, 1]} : vector<128x8xbf16> to vector<128x4xbf16>
    %c2_31 = arith.constant 2 : index
    %c0_32 = arith.constant 0 : index
    %c0_33 = arith.constant 0 : index
    %29 = vector.load %arg4[%c2_31, %c0_32, %c0_33] : memref<3x4x8xbf16, #tpu.memory_space<vmem>>, vector<1x4x8xbf16>
    %30 = vector.shape_cast %29 : vector<1x4x8xbf16> to vector<4x8xbf16>
    %cst_34 = arith.constant dense<0.000000e+00> : vector<128x8xf32>
    %31 = tpu.matmul %28, %30, %cst_34 {dimension_numbers = #tpu.dot_dimension_numbers<[1], [0], [0], [1], [0, 0, 1, 1], [], []>} : vector<128x4xbf16>, vector<4x8xbf16>, vector<128x8xf32> -> vector<128x8xf32>
    %32 = arith.addf %20, %27 : vector<128x8xf32>
    %33 = arith.addf %21, %31 : vector<128x8xf32>
    %34 = vector.shape_cast %32 : vector<128x8xf32> to vector<8x16x8xf32>
    %35 = vector.shape_cast %33 : vector<128x8xf32> to vector<8x16x8xf32>
    %36 = vector.extract_strided_slice %34 {offsets = [0, 0, 0], sizes = [8, 8, 8], strides = [1, 1, 1]} : vector<8x16x8xf32> to vector<8x8x8xf32>
    %37 = vector.extract_strided_slice %35 {offsets = [0, 1, 0], sizes = [8, 8, 8], strides = [1, 1, 1]} : vector<8x16x8xf32> to vector<8x8x8xf32>
    %38 = arith.addf %36, %37 : vector<8x8x8xf32>
    %c0_35 = arith.constant 0 : index
    %c0_36 = arith.constant 0 : index
    %c0_37 = arith.constant 0 : index
    %c0_38 = arith.constant 0 : index
    %39 = vector.load %arg2[%c0_35, %c0_36, %c0_37, %c0_38] : memref<1x8x8x4xbf16, #tpu.memory_space<vmem>>, vector<1x8x8x4xbf16>
    %40 = vector.shape_cast %39 : vector<1x8x8x4xbf16> to vector<8x8x4xbf16>
    %41 = vector.shape_cast %40 : vector<8x8x4xbf16> to vector<64x4xbf16>
    %c0_39 = arith.constant 0 : index
    %c0_40 = arith.constant 0 : index
    %42 = vector.load %arg5[%c0_39, %c0_40] : memref<4x8xbf16, #tpu.memory_space<vmem>>, vector<4x8xbf16>
    %cst_41 = arith.constant dense<0.000000e+00> : vector<64x8xf32>
    %43 = tpu.matmul %41, %42, %cst_41 {dimension_numbers = #tpu.dot_dimension_numbers<[1], [0], [0], [1], [0, 0, 1, 1], [], []>} : vector<64x4xbf16>, vector<4x8xbf16>, vector<64x8xf32> -> vector<64x8xf32>
    %44 = vector.shape_cast %43 : vector<64x8xf32> to vector<8x8x8xf32>
    %45 = arith.addf %38, %44 : vector<8x8x8xf32>
    %c0_42 = arith.constant 0 : index
    %c0_43 = arith.constant 0 : index
    %46 = vector.load %arg6[%c0_42, %c0_43] : memref<1x8xf32, #tpu.memory_space<vmem>>, vector<1x8xf32>
    %47 = vector.shape_cast %46 : vector<1x8xf32> to vector<1x1x8xf32>
    %48 = vector.broadcast %47 : vector<1x1x8xf32> to vector<8x8x8xf32>
    %49 = arith.addf %45, %48 : vector<8x8x8xf32>
    %cst_44 = arith.constant 0.000000e+00 : f32
    %50 = vector.broadcast %cst_44 : f32 to vector<8x8x8xf32>
    %51 = arith.maximumf %49, %50 : vector<8x8x8xf32>
    %c0_45 = arith.constant 0 : index
    %c0_46 = arith.constant 0 : index
    %c0_47 = arith.constant 0 : index
    %c0_48 = arith.constant 0 : index
    %52 = vector.load %arg7[%c0_45, %c0_46, %c0_47, %c0_48] : memref<1x8x8x8xf32, #tpu.memory_space<vmem>>, vector<1x8x8x8xf32>
    %53 = vector.shape_cast %52 : vector<1x8x8x8xf32> to vector<8x8x8xf32>
    %54 = vector.shape_cast %51 : vector<8x8x8xf32> to vector<1x8x8x8xf32>
    tpu.vector_store %arg7[%c0_45, %c0_46, %c0_47, %c0_48], %54 {strides = array<i32>} : memref<1x8x8x8xf32, #tpu.memory_space<vmem>>, vector<1x8x8x8xf32>,
    return
  }
  func.func @transform_0(%arg0: i32) -> (i32, i32, i32, i32, i32) {
    %c0_i32 = arith.constant 0 : i32
    %c0_i32_0 = arith.constant 0 : i32
    %c0_i32_1 = arith.constant 0 : i32
    %c0_i32_2 = arith.constant 0 : i32
    %c0_i32_3 = arith.constant 0 : i32
    return %arg0, %c0_i32, %c0_i32_0, %c0_i32_1, %c0_i32_2 : i32, i32, i32, i32, i32
  }
  func.func @transform_1(%arg0: i32) -> (i32, i32, i32, i32) {
    %c0_i32 = arith.constant 0 : i32
    %c0_i32_0 = arith.constant 0 : i32
    %c0_i32_1 = arith.constant 0 : i32
    %c0_i32_2 = arith.constant 0 : i32
    return %arg0, %c0_i32, %c0_i32_0, %c0_i32_1 : i32, i32, i32, i32
  }
  func.func @transform_2(%arg0: i32) -> (i32, i32, i32) {
    %c0_i32 = arith.constant 0 : i32
    %c0_i32_0 = arith.constant 0 : i32
    %c0_i32_1 = arith.constant 0 : i32
    %c0_i32_2 = arith.constant 0 : i32
    return %c0_i32, %c0_i32_0, %c0_i32_1 : i32, i32, i32
  }
  func.func @transform_3(%arg0: i32) -> (i32, i32, i32) {
    %c0_i32 = arith.constant 0 : i32
    %c0_i32_0 = arith.constant 0 : i32
    %c0_i32_1 = arith.constant 0 : i32
    %c0_i32_2 = arith.constant 0 : i32
    return %c0_i32, %c0_i32_0, %c0_i32_1 : i32, i32, i32
  }
  func.func @transform_4(%arg0: i32) -> (i32, i32) {
    %c0_i32 = arith.constant 0 : i32
    %c0_i32_0 = arith.constant 0 : i32
    %c0_i32_1 = arith.constant 0 : i32
    return %c0_i32, %c0_i32_0 : i32, i32
  }
  func.func @transform_5(%arg0: i32) -> (i32, i32) {
    %c0_i32 = arith.constant 0 : i32
    %c0_i32_0 = arith.constant 0 : i32
    %c0_i32_1 = arith.constant 0 : i32
    return %c0_i32, %c0_i32_0 : i32, i32
  }
  func.func @transform_6(%arg0: i32) -> (i32, i32, i32, i32) {
    %c0_i32 = arith.constant 0 : i32
    %c0_i32_0 = arith.constant 0 : i32
    %c0_i32_1 = arith.constant 0 : i32
    %c0_i32_2 = arith.constant 0 : i32
    return %arg0, %c0_i32, %c0_i32_0, %c0_i32_1 : i32, i32, i32, i32
  }
}

</mosaic_0001>

<bundles_post_ra>
// kernel: block_forward.3
= control target key start
LH: loop header
LB: loop body
LE: loop exit
PB: predicated region body
PF: predicated region fallthrough
CT: control target
= control target key end

     0   :  { %s1879_s21 = smov 0   ;;  %s2065_s0 = inlined_call_operand.vmem [shape: bf16[2,9,2,16,8], index: 0, kind: input, shape index: {}]   ;;  %s2066_s1 = inlined_call_operand.vmem [shape: bf16[2,8,8,4], index: 1, kind: input, shape index: {}]   ;;  %s2067_s2 = inlined_call_operand.vmem [shape: bf16[3,8,8], index: 2, kind: input, shape index: {}]   ;;  %s2068_s3 = inlined_call_operand.vmem [shape: bf16[3,4,8], index: 3, kind: input, shape index: {}]   ;;  %s2069_s4 = inlined_call_operand.vmem [shape: bf16[4,8], index: 4, kind: input, shape index: {}]   ;;  %s2070_s5 = inlined_call_operand.vmem [shape: f32[1,8], index: 5, kind: input, shape index: {}]   ;;  %s2071_s6 = inlined_call_operand.vmem [shape: f32[2,8,8,8], index: 6, kind: output, shape index: {}]  }
   0x1 LB: > { %s1449_s22 = sadd.s32 4294967295, %s1842_s21   ;;  %p1453_p0 = scmp.ge.s32.totalorder %s1842_s21, 1  ;;  %s1842_s21 = sphi %s1879_s21, %s16_s21  }
   0x2   : > { %p222_p1 = scmp.lt.s32.totalorder %s1842_s21, 3 }
   0x4   : > { %p223_p2 = pnand %p1453_p0, %p222_p1 }
   0x5   : > { %v1475_v0 = vld [vmem:[%s2067_s2 + $0x4] sm:$0xf] (!%p223_p2)  ;;  %vm375_vm0 = vcmask (!%p223_p2), 1043456   ;;  %p257_p3 = scmp.lt.s32.totalorder (!%p223_p2), %s1449_s22, 1  ;;  %vm487_vm1 = vcmask (!%p223_p2), 1041408   ;;  %vm350_vm2 = vcmask (!%p223_p2), 64512  }
   0x6   : > { %226 = sbr.rel (%p223_p2) target bundleno = 343 (0x157), region = 44  ;;  %1792 = vmatprep.subr.msk.bf16.mxu1 (!%p223_p2), %vm375_vm0, %v1475_v0  ;;  %1791 = vmatprep.subr.msk.bf16.mxu0 (!%p223_p2), %vm375_vm0, %v1475_v0  ;;  %v377_v1 = vsel (!%p223_p2), %vm375_vm0, %v1475_v0, 0  ;;  %v1492_v2 = vld [vmem:[%s2068_s3 + $0x2] sm:$0x3] (!%p223_p2)  ;;  %v290_v8 = vld [vmem:[%s2068_s3] sm:$0x3] (!%p223_p2) }
   0x7   : > { %v289_v3 = vld [vmem:[%s2067_s2] sm:$0xf] (!%p223_p2)  ;;  %1758 = vmatpush3.bf16.msra.mxu1 (!%p223_p2), %v377_v1  ;;  %1640 = vmatpush3.bf16.msra.mxu0 (!%p223_p2), %v377_v1  ;;  %v489_v10 = vsel (!%p223_p2), %vm487_vm1, %v1492_v2, 0  ;;  %vm470_vm3 = vcmask (!%p223_p2), 31744   ;;  %v1541_v12 = vld [vmem:[%s2067_s2 + $0x8] sm:$0xf] (!%p223_p2) }
   0x8   : > { %1793 = vmatprep.subr.msk.bf16.mxu1 (!%p223_p2), %vm487_vm1, %v1492_v2  ;;  %1794 = vmatprep.subr.msk.bf16.mxu0 (!%p223_p2), %vm375_vm0, %v289_v3  ;;  %v653_v7 = vsel (!%p223_p2), %vm375_vm0, %v289_v3, 0  ;;  %v761_v15 = vsel (!%p223_p2), %vm487_vm1, %v290_v8, 0  ;;  %v1558_v16 = vld [vmem:[%s2068_s3 + $0x4] sm:$0x3] (!%p223_p2)  ;;  %v944_v20 = vsel (!%p223_p2), %vm375_vm0, %v1541_v12, 0  ;;  %vm1193_vm4 = vcmask (!%p223_p2), 1046528  }
   0x9   : > { %v1242_v22 = vld [vmem:[%s2069_s4] sm:$0x3] (!%p223_p2)  ;;  %v1054_v27 = vsel (!%p223_p2), %vm487_vm1, %v1558_v16, 0 }
   0xa   : > { %v1276_v31 = vsel (!%p223_p2), %vm487_vm1, %v1242_v22, 0 }
   0xd   : > { %s2073_s22 = smov (!%p257_p3, %s1449_s22), 1 }
   0xe   : > { %s1799_s29 = smul.u32 144, %s2073_s22  ;;  %s1578_s30 = sshll.u32 %s2073_s22, 5 }
   0xf   : > { %s1908_s9 = scalar_lea.vmem %s2066_s1, %s1578_s30  ;;  %s1579_s25 = sshll.u32 %s2073_s22, 6 }
  0x10   : > { %s1913_s12 = scalar_lea.vmem %s2065_s0, %s1799_s29  ;;  %v1832_v38 = vld [vmem:[%s1908_s9] sm:$0xff]   ;;  %v1833_v39 = vld [vmem:[%s1908_s9 + $0x8] sm:$0xff]   ;;  %v1834_v40 = vld [vmem:[%s1908_s9 + $0x10] sm:$0xff]   ;;  %s2036_s28 = scalar_lea.vmem %s2071_s6, %s1579_s25 }
  0x11   : > { %v1808_v4 = vld [vmem:[%s1913_s12 + $0x8] sm:$0xff]   ;;  %v1810_v6 = vld [vmem:[%s1913_s12 + $0x18] sm:$0xff]   ;;  %v1816_v18 = vld [vmem:[%s1913_s12] sm:$0xff]  }
  0x12   : > { %v1809_v5 = vld [vmem:[%s1913_s12 + $0x68] sm:$0xff]   ;;  %1641 = vmatprep.mubr.msk.bf16.mxu0 %vm350_vm2, %v1808_v4  ;;  %v1811_v9 = vld [vmem:[%s1913_s12 + $0x78] sm:$0xff]   ;;  %v1817_v19 = vld [vmem:[%s1913_s12 + $0x10] sm:$0xff]  }
  0x13   : > { %1653 = vmatprep.mubr.msk.bf16.mxu1 %vm350_vm2, %v1809_v5  ;;  %1642 = vmatmul.mubr.msk.bf16.vlgmr.msra.gmra.mrb[0].mxu0 %vm350_vm2, %v1810_v6  ;;  %v1812_v11 = vld [vmem:[%s1913_s12 + $0x28] sm:$0xff]   ;;  %v1813_v13 = vld [vmem:[%s1913_s12 + $0x38] sm:$0xff]   ;;  %v1818_v21 = vld [vmem:[%s1913_s12 + $0x20] sm:$0xff]  }
  0x14   : > { %1654 = vmatmul.mubr.msk.bf16.vlgmr.msra.gmra.mrb[0].mxu1 %vm350_vm2, %v1811_v9  ;;  %1676 = vmatpush3.bf16.msra.mxu0 %v653_v7  ;;  %v1814_v14 = vld [vmem:[%s1913_s12 + $0x48] sm:$0xff]   ;;  %v1815_v17 = vld [vmem:[%s1913_s12 + $0x58] sm:$0xff]   ;;  %v1819_v23 = vld [vmem:[%s1913_s12 + $0x30] sm:$0xff]  }
  0x15   : > { %1658 = vmatpush3.bf16.msra.mxu1 %v489_v10  ;;  %1645 = vmatprep.mubr.msk.bf16.mxu0 %vm350_vm2, %v1812_v11  ;;  %v1820_v24 = vld [vmem:[%s1913_s12 + $0x40] sm:$0xff]   ;;  %v1821_v25 = vld [vmem:[%s1913_s12 + $0x50] sm:$0xff]   ;;  %v1835_v41 = vld [vmem:[%s1908_s9 + $0x18] sm:$0xff]  }
  0x16   : > { %1659 = vmatprep.mubr.msk.bf16.mxu1 %vm470_vm3, %v1808_v4  ;;  %1795 = vmatprep.subr.msk.bf16.mxu1 %vm487_vm1, %v290_v8  ;;  %v1822_v26 = vld [vmem:[%s1913_s12 + $0x60] sm:$0xff]   ;;  %v1823_v28 = vld [vmem:[%s1913_s12 + $0x70] sm:$0xff]  }
  0x17   : > { %1796 = vmatprep.subr.msk.bf16.mxu0 %vm375_vm0, %v1541_v12  ;;  %v1824_v29 = vld [vmem:[%s1913_s12 + $0x10] sm:$0xff]   ;;  %v1825_v30 = vld [vmem:[%s1913_s12 + $0x20] sm:$0xff]  }
  0x18   : > { %v1826_v32 = vld [vmem:[%s1913_s12 + $0x30] sm:$0xff]   ;;  %v1827_v33 = vld [vmem:[%s1913_s12 + $0x40] sm:$0xff]  }
  0x19   : > { %v1828_v34 = vld [vmem:[%s1913_s12 + $0x50] sm:$0xff]   ;;  %v1829_v35 = vld [vmem:[%s1913_s12 + $0x60] sm:$0xff]  }
  0x1a   : > { %v1830_v36 = vld [vmem:[%s1913_s12 + $0x70] sm:$0xff]   ;;  %v1831_v37 = vld [vmem:[%s1913_s12 + $0x80] sm:$0xff]  }
  0x1b   : > { %1646 = vmatmul.mubr.msk.bf16.gmra.mrb[4].mxu0 %vm350_vm2, %v1813_v13 }
  0x1c   : > { %1660 = vmatmul.mubr.msk.bf16.vlgmr.msra.gmra.mrb[4].mxu1 %vm470_vm3, %v1810_v6  ;;  %1649 = vmatprep.mubr.msk.bf16.mxu0 %vm350_vm2, %v1814_v14 }
  0x1d   : > { %1694 = vmatpush3.bf16.msra.mxu1 %v761_v15  ;;  %1663 = vmatprep.mubr.msk.bf16.mxu1 %vm470_vm3, %v1812_v11 }
  0x1e   : > { %1797 = vmatprep.subr.msk.bf16.mxu1 %vm487_vm1, %v1558_v16 }
  0x23   : > { %1650 = vmatmul.mubr.msk.bf16.gmra.mrb[8].mxu0 %vm350_vm2, %v1815_v17 }
  0x24   : > { %1664 = vmatmul.mubr.msk.bf16.gmra.mrb[8].mxu1 %vm470_vm3, %v1813_v13  ;;  %1677 = vmatprep.mubr.msk.bf16.mxu0 %vm350_vm2, %v1816_v18 }
  0x25   : > { %1667 = vmatprep.mubr.msk.bf16.mxu1 %vm470_vm3, %v1814_v14 }
  0x2b   : > { %1678 = vmatmul.mubr.msk.bf16.vlgmr.msra.gmra.mrb[12].mxu0 %vm350_vm2, %v1817_v19 }
  0x2c   : > { %1668 = vmatmul.mubr.msk.bf16.gmra.mrb[12].mxu1 %vm470_vm3, %v1815_v17  ;;  %1712 = vmatpush3.bf16.msra.mxu0 %v944_v20 }
  0x2d   : > { %1671 = vmatprep.mubr.msk.bf16.mxu1 %vm470_vm3, %v1809_v5  ;;  %1681 = vmatprep.mubr.msk.bf16.mxu0 %vm350_vm2, %v1818_v21 }
  0x2e   : > { %1798 = vmatprep.subr.msk.bf16.mxu0 %vm487_vm1, %v1242_v22 }
  0x33   : > { %1682 = vmatmul.mubr.msk.bf16.gmra.mrb[16].mxu0 %vm350_vm2, %v1819_v23 }
  0x34   : > { %1672 = vmatmul.mubr.msk.bf16.gmra.mrb[16].mxu1 %vm470_vm3, %v1811_v9  ;;  %1685 = vmatprep.mubr.msk.bf16.mxu0 %vm350_vm2, %v1820_v24 }
  0x35   : > { %1695 = vmatprep.mubr.msk.bf16.mxu1 %vm470_vm3, %v1816_v18 }
  0x3b   : > { %1686 = vmatmul.mubr.msk.bf16.gmra.mrb[20].mxu0 %vm350_vm2, %v1821_v25 }
  0x3c   : > { %1696 = vmatmul.mubr.msk.bf16.vlgmr.msra.gmra.mrb[4].mxu1 %vm470_vm3, %v1817_v19  ;;  %1689 = vmatprep.mubr.msk.bf16.mxu0 %vm350_vm2, %v1822_v26 }
  0x3d   : > { %1730 = vmatpush3.bf16.msra.mxu1 %v1054_v27  ;;  %1699 = vmatprep.mubr.msk.bf16.mxu1 %vm470_vm3, %v1818_v21 }
  0x43   : > { %1690 = vmatmul.mubr.msk.bf16.gmra.mrb[24].mxu0 %vm350_vm2, %v1823_v28 }
  0x44   : > { %1700 = vmatmul.mubr.msk.bf16.gmra.mrb[8].mxu1 %vm470_vm3, %v1819_v23  ;;  %1713 = vmatprep.mubr.msk.bf16.mxu0 %vm350_vm2, %v1824_v29 }
  0x45   : > { %1703 = vmatprep.mubr.msk.bf16.mxu1 %vm470_vm3, %v1820_v24 }
  0x4b   : > { %1714 = vmatmul.mubr.msk.bf16.vlgmr.msra.gmra.mrb[28].mxu0 %vm350_vm2, %v1825_v30 }
  0x4c   : > { %1704 = vmatmul.mubr.msk.bf16.gmra.mrb[12].mxu1 %vm470_vm3, %v1821_v25  ;;  %1748 = vmatpush3.bf16.msra.mxu0 %v1276_v31 }
  0x4d   : > { %1707 = vmatprep.mubr.msk.bf16.mxu1 %vm470_vm3, %v1822_v26  ;;  %1717 = vmatprep.mubr.msk.bf16.mxu0 %vm350_vm2, %v1826_v32 }
  0x53   : > { %1718 = vmatmul.mubr.msk.bf16.gmra.mrb[32].mxu0 %vm350_vm2, %v1827_v33 }
  0x54   : > { %1708 = vmatmul.mubr.msk.bf16.gmra.mrb[16].mxu1 %vm470_vm3, %v1823_v28  ;;  %1721 = vmatprep.mubr.msk.bf16.mxu0 %vm350_vm2, %v1828_v34 }
  0x55   : > { %1731 = vmatprep.mubr.msk.bf16.mxu1 %vm470_vm3, %v1824_v29 }
  0x5b   : > { %1722 = vmatmul.mubr.msk.bf16.gmra.mrb[36].mxu0 %vm350_vm2, %v1829_v35 }
  0x5c   : > { %1732 = vmatmul.mubr.msk.bf16.vlgmr.msra.gmra.mrb[4].mxu1 %vm470_vm3, %v1825_v30  ;;  %1725 = vmatprep.mubr.msk.bf16.mxu0 %vm350_vm2, %v1830_v36 }
  0x5d   : > { %1735 = vmatprep.mubr.msk.bf16.mxu1 %vm470_vm3, %v1826_v32 }
  0x63   : > { %1726 = vmatmul.mubr.msk.bf16.gmra.mrb[40].mxu0 %vm350_vm2, %v1831_v37 }
  0x64   : > { %1736 = vmatmul.mubr.msk.bf16.gmra.mrb[8].mxu1 %vm470_vm3, %v1827_v33  ;;  %1749 = vmatprep.mubr.msk.bf16.mxu0 %vm470_vm3, %v1832_v38 }
  0x65   : > { %1739 = vmatprep.mubr.msk.bf16.mxu1 %vm470_vm3, %v1828_v34 }
  0x6b   : > { %1750 = vmatmul.mubr.msk.bf16.vlgmr.msra.gmra.mrb[44].mxu0 %vm470_vm3, %v1833_v39 }
  0x6c   : > { %1740 = vmatmul.mubr.msk.bf16.gmra.mrb[12].mxu1 %vm470_vm3, %v1829_v35  ;;  %1753 = vmatprep.mubr.msk.bf16.mxu0 %vm470_vm3, %v1834_v40 }
  0x6d   : > { %1743 = vmatprep.mubr.msk.bf16.mxu1 %vm470_vm3, %v1830_v36 }
  0x73   : > { %1754 = vmatmul.mubr.msk.bf16.gmra.mrb[48].mxu0 %vm470_vm3, %v1835_v41 }
  0x74   : > { %1744 = vmatmul.mubr.msk.bf16.gmra.mrb[16].mxu1 %vm470_vm3, %v1831_v37 }
  0xe6   : > { %v1643_v42 = vpop.f32.mrb[0].mxu0 }
  0xe7   : > { %v1655_v43 = vpop.f32.mrb[0].mxu1  ;;  %v413_v44 = vpop.f32.mrb[1].mxu0 }
  0xe8   : > { %v455_v45 = vpop.f32.mrb[1].mxu1  ;;  %v1644_v46 = vpop.f32.mrb[2].mxu0 }
  0xe9   : > { %v1656_v47 = vpop.f32.mrb[2].mxu1  ;;  %v416_v48 = vpop.f32.mrb[3].mxu0 }
  0xea   : > { %v458_v49 = vpop.f32.mrb[3].mxu1 }
  0xee   : > { %v1647_v50 = vpop.f32.mrb[4].mxu0 }
  0xef   : > { %v427_v51 = vpop.f32.mrb[5].mxu0 }
  0xf0   : > { %v1648_v52 = vpop.f32.mrb[6].mxu0 }
  0xf1   : > { %v430_v53 = vpop.f32.mrb[7].mxu0 }
  0xf6   : > { %v1651_v54 = vpop.f32.mrb[8].mxu0 }
  0xf7   : > { %v441_v55 = vpop.f32.mrb[9].mxu0 }
  0xf8   : > { %v1652_v56 = vpop.f32.mrb[10].mxu0 }
  0xf9   : > { %v444_v57 = vpop.f32.mrb[11].mxu0 }
  0xfe   : > { %v1679_v58 = vpop.f32.mrb[12].mxu0 }
  0xff   : > { %v697_v59 = vadd.f32 %v1679_v58, %v1643_v42  ;;  %v689_v60 = vpop.f32.mrb[13].mxu0 }
 0x100   : > { %v690_v61 = vadd.f32 %v689_v60, %v413_v44  ;;  %v1680_v62 = vpop.f32.mrb[14].mxu0 }
 0x101   : > { %v692_v63 = vpop.f32.mrb[15].mxu0 }
 0x106   : > { %v1683_v0 = vpop.f32.mrb[16].mxu0 }
 0x107   : > { %v711_v1 = vadd.f32 %v1683_v0, %v1647_v50  ;;  %v703_v2 = vpop.f32.mrb[17].mxu0 }
 0x108   : > { %v704_v3 = vadd.f32 %v703_v2, %v427_v51  ;;  %v1684_v4 = vpop.f32.mrb[18].mxu0 }
 0x109   : > { %v706_v5 = vpop.f32.mrb[19].mxu0  ;;  %v1575_v4 = vld [vmem:[%s2070_s5] ss:$0 sm:$0xff] }
 0x10e   : > { %v1687_v6 = vpop.f32.mrb[20].mxu0 }
 0x10f   : > { %v725_v7 = vadd.f32 %v1687_v6, %v1651_v54  ;;  %v717_v8 = vpop.f32.mrb[21].mxu0 }
 0x110   : > { %v718_v9 = vadd.f32 %v717_v8, %v441_v55  ;;  %v1688_v10 = vpop.f32.mrb[22].mxu0 }
 0x111   : > { %v720_v11 = vpop.f32.mrb[23].mxu0 }
 0x116   : > { %v1691_v12 = vpop.f32.mrb[24].mxu0 }
 0x117   : > { %v739_v13 = vadd.f32 %v1691_v12, %v1655_v43  ;;  %v731_v14 = vpop.f32.mrb[25].mxu0 }
 0x118   : > { %v732_v15 = vadd.f32 %v731_v14, %v455_v45  ;;  %v1692_v16 = vpop.f32.mrb[26].mxu0 }
 0x119   : > { %v734_v17 = vpop.f32.mrb[27].mxu0 }
 0x11e   : > { %v1715_v18 = vpop.f32.mrb[28].mxu0 }
 0x11f   : > { %v1154_v19 = vadd.f32 %v1715_v18, %v697_v59  ;;  %v980_v20 = vpop.f32.mrb[29].mxu0 }
 0x120   : > { %v1153_v21 = vadd.f32 %v980_v20, %v690_v61  ;;  %v1716_v22 = vpop.f32.mrb[30].mxu0 }
 0x121   : > { %v983_v23 = vpop.f32.mrb[31].mxu0 }
 0x126   : > { %v1719_v24 = vpop.f32.mrb[32].mxu0 }
 0x127   : > { %v1156_v25 = vadd.f32 %v1719_v24, %v711_v1  ;;  %v994_v26 = vpop.f32.mrb[33].mxu0 }
 0x128   : > { %v1155_v27 = vadd.f32 %v994_v26, %v704_v3  ;;  %v1720_v28 = vpop.f32.mrb[34].mxu0 }
 0x129   : > { %v997_v29 = vpop.f32.mrb[35].mxu0 }
 0x12e   : > { %v1723_v30 = vpop.f32.mrb[36].mxu0 }
 0x12f   : > { %v2017_v31 = vadd.f32 %v1723_v30, %v725_v7  ;;  %v1733_v32 = vpop.f32.mrb[4].mxu1  ;;  %v1008_v33 = vpop.f32.mrb[37].mxu0 }
 0x130   : > { %v2019_v34 = vadd.f32 %v1008_v33, %v718_v9  ;;  %v1090_v35 = vpop.f32.mrb[5].mxu1  ;;  %v1724_v36 = vpop.f32.mrb[38].mxu0  ;;  %v1197_v39 = vrot.slane %v1733_v32, 1 }
 0x131   : > { %v1734_v37 = vpop.f32.mrb[6].mxu1  ;;  %v1011_v38 = vpop.f32.mrb[39].mxu0  ;;  %v1194_v42 = vrot.slane %v1090_v35, 1 }
 0x132   : > { %v1198_v40 = vrot.slane %v1734_v37, 1  ;;  %v1093_v41 = vpop.f32.mrb[7].mxu1 }
 0x133   : > { %v1195_v43 = vrot.slane %v1093_v41, 1 }
 0x134   : > { %v1199_v44 = vsel %vm1193_vm4, %v1197_v39, %v1198_v40 }
 0x135   : > { %v1196_v45 = vsel %vm1193_vm4, %v1194_v42, %v1195_v43  ;;  %v1227_v46 = vadd.f32 %v1199_v44, %v1154_v19 }
 0x136   : > { %v1727_v47 = vpop.f32.mrb[40].mxu0  ;;  %v1226_v48 = vadd.f32 %v1196_v45, %v1153_v21 }
 0x137   : > { %v2023_v49 = vadd.f32 %v1727_v47, %v739_v13  ;;  %v1737_v50 = vpop.f32.mrb[8].mxu1  ;;  %v1022_v51 = vpop.f32.mrb[41].mxu0 }
 0x138   : > { %v2025_v52 = vadd.f32 %v1022_v51, %v732_v15  ;;  %v1106_v53 = vpop.f32.mrb[9].mxu1  ;;  %v1728_v54 = vpop.f32.mrb[42].mxu0  ;;  %v1203_v57 = vrot.slane %v1737_v50, 1 }
 0x139   : > { %v1738_v55 = vpop.f32.mrb[10].mxu1  ;;  %v1025_v56 = vpop.f32.mrb[43].mxu0  ;;  %v1200_v60 = vrot.slane %v1106_v53, 1 }
 0x13a   : > { %v1204_v58 = vrot.slane %v1738_v55, 1  ;;  %v1109_v59 = vpop.f32.mrb[11].mxu1 }
 0x13b   : > { %v1201_v61 = vrot.slane %v1109_v59, 1 }
 0x13c   : > { %v1205_v62 = vsel %vm1193_vm4, %v1203_v57, %v1204_v58 }
 0x13d   : > { %v1202_v63 = vsel %vm1193_vm4, %v1200_v60, %v1201_v61  ;;  %v1229_v0 = vadd.f32 %v1205_v62, %v1156_v25 }
 0x13e   : > { %v1228_v1 = vadd.f32 %v1202_v63, %v1155_v27  ;;  %v1751_v2 = vpop.f32.mrb[44].mxu0 }
 0x13f   : > { %v1741_v3 = vpop.f32.mrb[12].mxu1  ;;  %v1312_v5 = vpop.f32.mrb[45].mxu0 }
 0x140   : > { %v1345_v6 = vadd.f32 %v1751_v2, %v1228_v1  ;;  %v1122_v7 = vpop.f32.mrb[13].mxu1  ;;  %v1343_v8 = vadd.f32 %v1312_v5, %v1226_v48  ;;  %v1752_v9 = vpop.f32.mrb[46].mxu0  ;;  %v1209_v10 = vrot.slane %v1741_v3, 1 }
 0x141   : > { %v1742_v11 = vpop.f32.mrb[14].mxu1  ;;  %v1346_v12 = vadd.f32 %v1752_v9, %v1229_v0  ;;  %v1315_v13 = vpop.f32.mrb[47].mxu0  ;;  %v1206_v19 = vrot.slane %v1122_v7, 1 }
 0x142   : > { %v1360_v14 = vadd.f32 %v1575_v4, %v1345_v6  ;;  %v1358_v15 = vadd.f32 %v1575_v4, %v1343_v8  ;;  %v1210_v16 = vrot.slane %v1742_v11, 1  ;;  %v1125_v17 = vpop.f32.mrb[15].mxu1  ;;  %v1344_v18 = vadd.f32 %v1315_v13, %v1227_v46 }
 0x143   : > { %v1361_v20 = vadd.f32 %v1575_v4, %v1346_v12  ;;  %v1207_v21 = vrot.slane %v1125_v17, 1 }
 0x144   : > { %v1368_v22 = vmax.f32 %v1360_v14, 0.0  ;;  %v1366_v23 = vmax.f32 %v1358_v15, 0.0  ;;  %v1359_v24 = vadd.f32 %v1575_v4, %v1344_v18  ;;  %v1211_v25 = vsel %vm1193_vm4, %v1209_v10, %v1210_v16 }
 0x145   : > { %v1369_v26 = vmax.f32 %v1361_v20, 0.0  ;;  %v1208_v27 = vsel %vm1193_vm4, %v1206_v19, %v1207_v21  ;;  %v1231_v28 = vadd.f32 %v1211_v25, %v2017_v31 }
 0x146   : > { %1376 = vst.msk [vmem:[%s2036_s28 + $0x10] sm:$0xff] %vm350_vm2, %v1368_v22  ;;  %1374 = vst.msk [vmem:[%s2036_s28] sm:$0xff] %vm350_vm2, %v1366_v23  ;;  %v1367_v29 = vmax.f32 %v1359_v24, 0.0  ;;  %v1755_v30 = vpop.f32.mrb[48].mxu0  ;;  %v1230_v32 = vadd.f32 %v1208_v27, %v2019_v34 }
 0x147   : > { %1377 = vst.msk [vmem:[%s2036_s28 + $0x18] sm:$0xff] %vm350_vm2, %v1369_v26  ;;  %v1745_v33 = vpop.f32.mrb[16].mxu1  ;;  %v1328_v35 = vpop.f32.mrb[49].mxu0 }
 0x148   : > { %1375 = vst.msk [vmem:[%s2036_s28 + $0x8] sm:$0xff] %vm350_vm2, %v1367_v29  ;;  %v1138_v36 = vpop.f32.mrb[17].mxu1  ;;  %v1347_v37 = vadd.f32 %v1328_v35, %v1230_v32  ;;  %v1756_v38 = vpop.f32.mrb[50].mxu0  ;;  %v1215_v40 = vrot.slane %v1745_v33, 1 }
 0x149   : > { %v1746_v39 = vpop.f32.mrb[18].mxu1  ;;  %v1331_v31 = vpop.f32.mrb[51].mxu0  ;;  %v1212_v45 = vrot.slane %v1138_v36, 1 }
 0x14a   : > { %v1362_v41 = vadd.f32 %v1575_v4, %v1347_v37  ;;  %v1216_v42 = vrot.slane %v1746_v39, 1  ;;  %v1141_v43 = vpop.f32.mrb[19].mxu1  ;;  %v1348_v44 = vadd.f32 %v1331_v31, %v1231_v28 }
 0x14b   : > { %v1213_v34 = vrot.slane %v1141_v43, 1 }
 0x14c   : > { %v1370_v46 = vmax.f32 %v1362_v41, 0.0  ;;  %v1217_v47 = vsel %vm1193_vm4, %v1215_v40, %v1216_v42  ;;  %v1363_v48 = vadd.f32 %v1575_v4, %v1348_v44 }
 0x14d   : > { %v1233_v50 = vadd.f32 %v1217_v47, %v2023_v49  ;;  %v1214_v51 = vsel %vm1193_vm4, %v1212_v45, %v1213_v34 }
 0x14e   : > { %1378 = vst.msk [vmem:[%s2036_s28 + $0x20] sm:$0xff] %vm350_vm2, %v1370_v46  ;;  %v1232_v53 = vadd.f32 %v1214_v51, %v2025_v52  ;;  %v1371_v54 = vmax.f32 %v1363_v48, 0.0 }
 0x14f   : > { %v1350_v55 = vadd.f32 %v1756_v38, %v1233_v50 }
 0x150   : > { %v1349_v56 = vadd.f32 %v1755_v30, %v1232_v53  ;;  %1379 = vst.msk [vmem:[%s2036_s28 + $0x28] sm:$0xff] %vm350_vm2, %v1371_v54 }
 0x151   : > { %v1365_v57 = vadd.f32 %v1575_v4, %v1350_v55 }
 0x152   : > { %v1364_v58 = vadd.f32 %v1575_v4, %v1349_v56 }
 0x153   : > { %v1373_v59 = vmax.f32 %v1365_v57, 0.0 }
 0x154   : > { %v1372_v60 = vmax.f32 %v1364_v58, 0.0 }
 0x155   : > { %1381 = vst.msk [vmem:[%s2036_s28 + $0x38] sm:$0xff] %vm350_vm2, %v1373_v59 }
 0x156   : > { %1380 = vst.msk [vmem:[%s2036_s28 + $0x30] sm:$0xff] %vm350_vm2, %v1372_v60 }
 0x157 PF: > { %s16_s21 = sadd.s32 1, %s1842_s21  }
 0x158   : > { %p13_p4 = scmp.ge.s32.totalorder %s16_s21, 4  }
 0x15a   :  { %15 = sbr.rel (!%p13_p4) target bundleno = 1 (0x1), region = 83 }

// kernel: block_forward.2
= control target key start
LH: loop header
LB: loop body
LE: loop exit
PB: predicated region body
PF: predicated region fallthrough
CT: control target
= control target key end

     0   :  { %s8847_s21 = smov 0   ;;  %s11854_s0 = inlined_call_operand.vmem [shape: bf16[2,16,16,4], index: 0, kind: input, shape index: {}]   ;;  %s11855_s1 = inlined_call_operand.vmem [shape: bf16[4,12], index: 1, kind: input, shape index: {}]   ;;  %s11856_s2 = inlined_call_operand.vmem [shape: f32[1,12], index: 2, kind: input, shape index: {}]   ;;  %s11857_s3 = inlined_call_operand.vmem [shape: bf16[4,4], index: 3, kind: input, shape index: {}]   ;;  %s11858_s4 = inlined_call_operand.vmem [shape: bf16[4,4], index: 4, kind: input, shape index: {}]   ;;  %s11859_s5 = inlined_call_operand.vmem [shape: f32[1,4], index: 5, kind: input, shape index: {}]   ;;  %s11860_s6 = inlined_call_operand.vmem [shape: bf16[2,16,16,4], index: 6, kind: output, shape index: {}]  }
   0x1 LB: > { %s7605_s22 = sadd.s32 4294967295, %s8804_s21   ;;  %p7609_p0 = scmp.ge.s32.totalorder %s8804_s21, 1  ;;  %s8804_s21 = sphi %s8847_s21, %s16_s21  }
   0x2   : > { %p212_p1 = scmp.lt.s32.totalorder %s8804_s21, 3 }
   0x4   : > { %p213_p2 = pnand %p7609_p0, %p212_p1 }
   0x6   : > { %216 = sbr.rel (%p213_p2) target bundleno = 2233 (0x8b9), region = 44 }
   0xd   : > { %v285_v0 = vld [vmem:[%s11855_s1] sm:$0x3]  ;;  %vm422_vm0 = vcmask 1041408   ;;  %p242_p3 = scmp.lt.s32.totalorder %s7605_s22, 1  ;;  %vm373_vm1 = vcmask 31744   ;;  %v11861_v18 = vmov 0.0  }
   0xe   : > { %8509 = vmatprep.subr.msk.bf16.mxu1 %vm422_vm0, %v285_v0  ;;  %v424_v1 = vsel %vm422_vm0, %v285_v0, 0  ;;  %8073 = vmatprep.subr.bf16.mxu0 %v11861_v18  ;;  %v8907_v20 = vld [vmem:[%s11856_s2] ss:$0 sm:$0xff]  ;;  %vm8807_vm2 = vmmov 0   ;;  %s8808_s7 = smov 124   ;;  %s8809_s8 = smov 120  }
   0xf   : > { %7992 = vmatpush3.bf16.msra.mxu1 %v424_v1  ;;  %s12259_s22 = smov (!%p242_p3, %s7605_s22), 1  ;;  %8075 = vmatprep.mubr.msk.bf16.mxu0 %vm8807_vm2, %v11861_v18  ;;  %vm1435_vm3 = vcmask 130048   ;;  %vm7517_vm4 = vcmask 27648  }
  0x10   : > { %s7778_s25 = sshll.u32 %s12259_s22, 7  ;;  %8025 = vmatprep.subr.bf16.mxu1 %v11861_v18 }
  0x11   : > { %s8868_s28 = scalar_lea.vmem %s11854_s0, %s7778_s25  ;;  %s11756_s17 = scalar_lea.vmem %s11860_s6, %s7778_s25 }
  0x12   : > { %v8526_v2 = vld [vmem:[%s8868_s28] sm:$0xff]   ;;  %v8527_v3 = vld [vmem:[%s8868_s28 + $0x8] sm:$0xff]   ;;  %v8528_v4 = vld [vmem:[%s8868_s28 + $0x10] sm:$0xff]  }
  0x13   : > { %7993 = vmatprep.mubr.msk.bf16.mxu1 %vm373_vm1, %v8526_v2  ;;  %v8529_v5 = vld [vmem:[%s8868_s28 + $0x18] sm:$0xff]   ;;  %v8530_v6 = vld [vmem:[%s8868_s28 + $0x20] sm:$0xff]   ;;  %v8531_v7 = vld [vmem:[%s8868_s28 + $0x28] sm:$0xff]  }
  0x14   : > { %7994 = vmatmul.mubr.msk.bf16.vlgmr.msra.gmra.mrb[0].mxu1 %vm373_vm1, %v8527_v3  ;;  %v8532_v8 = vld [vmem:[%s8868_s28 + $0x30] sm:$0xff]   ;;  %v8533_v9 = vld [vmem:[%s8868_s28 + $0x38] sm:$0xff]   ;;  %v8534_v10 = vld [vmem:[%s8868_s28 + $0x40] sm:$0xff]  }
  0x15   : > { %7997 = vmatprep.mubr.msk.bf16.mxu1 %vm373_vm1, %v8528_v4  ;;  %v8535_v11 = vld [vmem:[%s8868_s28 + $0x48] sm:$0xff]   ;;  %v8536_v12 = vld [vmem:[%s8868_s28 + $0x50] sm:$0xff]   ;;  %v8537_v13 = vld [vmem:[%s8868_s28 + $0x58] sm:$0xff]  }
  0x16   : > { %v8538_v14 = vld [vmem:[%s8868_s28 + $0x60] sm:$0xff]   ;;  %v8539_v15 = vld [vmem:[%s8868_s28 + $0x68] sm:$0xff]   ;;  %v8540_v16 = vld [vmem:[%s8868_s28 + $0x70] sm:$0xff]  }
  0x17   : > { %v8541_v17 = vld [vmem:[%s8868_s28 + $0x78] sm:$0xff]  }
  0x1c   : > { %7998 = vmatmul.mubr.msk.bf16.gmra.mrb[4].mxu1 %vm373_vm1, %v8529_v5 }
  0x1d   : > { %8001 = vmatprep.mubr.msk.bf16.mxu1 %vm373_vm1, %v8530_v6 }
  0x24   : > { %8002 = vmatmul.mubr.msk.bf16.gmra.mrb[8].mxu1 %vm373_vm1, %v8531_v7 }
  0x25   : > { %8005 = vmatprep.mubr.msk.bf16.mxu1 %vm373_vm1, %v8532_v8 }
  0x2c   : > { %8006 = vmatmul.mubr.msk.bf16.gmra.mrb[12].mxu1 %vm373_vm1, %v8533_v9 }
  0x2d   : > { %8009 = vmatprep.mubr.msk.bf16.mxu1 %vm373_vm1, %v8534_v10 }
  0x34   : > { %8010 = vmatmul.mubr.msk.bf16.gmra.mrb[16].mxu1 %vm373_vm1, %v8535_v11 }
  0x35   : > { %8013 = vmatprep.mubr.msk.bf16.mxu1 %vm373_vm1, %v8536_v12 }
  0x3c   : > { %8014 = vmatmul.mubr.msk.bf16.gmra.mrb[20].mxu1 %vm373_vm1, %v8537_v13 }
  0x3d   : > { %8017 = vmatprep.mubr.msk.bf16.mxu1 %vm373_vm1, %v8538_v14 }
  0x44   : > { %8018 = vmatmul.mubr.msk.bf16.gmra.mrb[24].mxu1 %vm373_vm1, %v8539_v15 }
  0x45   : > { %8021 = vmatprep.mubr.msk.bf16.mxu1 %vm373_vm1, %v8540_v16 }
  0x4c   : > { %8022 = vmatmul.mubr.msk.bf16.gmra.mrb[28].mxu1 %vm373_vm1, %v8541_v17 }
  0x4d   : > { %8027 = vmatprep.mubr.msk.bf16.mxu1 %vm8807_vm2, %v11861_v18 }
  0xe7   : > { %v7995_v19 = vpop.f32.mrb[0].mxu1 }
  0xe8   : > { %v460_v21 = vpop.f32.mrb[1].mxu1  ;;  %v8927_v28 = vadd.f32 %v7995_v19, %v8907_v20 }
  0xe9   : > { %v7996_v22 = vpop.f32.mrb[2].mxu1  ;;  %v8914_v24 = vadd.f32 %v8907_v20, %v460_v21 }
  0xea   : > { %v463_v23 = vpop.f32.mrb[3].mxu1  ;;  %v8920_v26 = vadd.f32 %v7996_v22, %v8907_v20  ;;  %12001 = vst [vmem:[#allocation5_spill] sm:$0xff] %v8927_v28 }
  0xeb   : > { %11998 = vst [vmem:[#allocation2_spill] sm:$0xff] %v8914_v24  ;;  %v8917_v25 = vadd.f32 %v8907_v20, %v463_v23 }
  0xec   : > { %12000 = vst [vmem:[#allocation4_spill] sm:$0xff] %v8920_v26  ;;  %v8933_v32 = vpack.c.bf16 %v8920_v26, %v8927_v28 }
  0xed   : > { %11999 = vst [vmem:[#allocation3_spill] sm:$0xff] %v8917_v25  ;;  %v8924_v27 = vpack.c.bf16 %v8917_v25, %v8914_v24 }
  0xef   : > { %v7999_v29 = vpop.f32.mrb[4].mxu1  ;;  %604 = vrot.lane.b32.xlu0 %v8924_v27, %s8808_s7 }
  0xf0   : > { %v476_v30 = vpop.f32.mrb[5].mxu1  ;;  %v8944_v36 = vadd.f32 %v7999_v29, %v8907_v20 }
  0xf1   : > { %v8000_v31 = vpop.f32.mrb[6].mxu1  ;;  %v8941_v35 = vadd.f32 %v8907_v20, %v476_v30 }
  0xf2   : > { %v479_v33 = vpop.f32.mrb[7].mxu1  ;;  %12004 = vst [vmem:[#allocation8_spill] sm:$0xff] %v8944_v36  ;;  %v8947_v37 = vadd.f32 %v8000_v31, %v8907_v20 }
  0xf3   : > { %v8936_v34 = vadd.f32 %v8907_v20, %v479_v33  ;;  %654 = vrot.lane.b32.xlu0 %v8933_v32, %s8808_s7  ;;  %12003 = vst [vmem:[#allocation7_spill] sm:$0xff] %v8941_v35 }
  0xf4   : > { %12005 = vst [vmem:[#allocation9_spill] sm:$0xff] %v8947_v37  ;;  %v8957_v41 = vpack.c.bf16 %v8947_v37, %v8944_v36 }
  0xf5   : > { %12002 = vst [vmem:[#allocation6_spill] sm:$0xff] %v8936_v34  ;;  %v8951_v38 = vpack.c.bf16 %v8936_v34, %v8941_v35 }
  0xf7   : > { %v8003_v39 = vpop.f32.mrb[8].mxu1  ;;  %704 = vrot.lane.b32.xlu1 %v8951_v38, %s8808_s7 }
  0xf8   : > { %v492_v40 = vpop.f32.mrb[9].mxu1  ;;  %v8960_v44 = vadd.f32 %v8003_v39, %v8907_v20 }
  0xf9   : > { %v8004_v42 = vpop.f32.mrb[10].mxu1  ;;  %v8963_v45 = vadd.f32 %v8907_v20, %v492_v40 }
  0xfa   : > { %v495_v43 = vpop.f32.mrb[11].mxu1  ;;  %12006 = vst [vmem:[#allocation10_spill] sm:$0xff] %v8960_v44  ;;  %v8966_v46 = vadd.f32 %v8004_v42, %v8907_v20 }
  0xfb   : > { %12007 = vst [vmem:[#allocation11_spill] sm:$0xff] %v8963_v45  ;;  %v8969_v47 = vadd.f32 %v8907_v20, %v495_v43  ;;  %754 = vrot.lane.b32.xlu1 %v8957_v41, %s8808_s7 }
  0xfc   : > { %v8979_v49 = vpack.c.bf16 %v8966_v46, %v8960_v44 }
  0xfd   : > { %12008 = vst [vmem:[#allocation12_spill] sm:$0xff] %v8969_v47  ;;  %v8975_v48 = vpack.c.bf16 %v8969_v47, %v8963_v45 }
  0xff   : > { %v8007_v50 = vpop.f32.mrb[12].mxu1  ;;  %804 = vrot.lane.b32.xlu0 %v8975_v48, %s8808_s7  ;;  %854 = vrot.lane.b32.xlu1 %v8979_v49, %s8808_s7 }
 0x100   : > { %v508_v51 = vpop.f32.mrb[13].mxu1  ;;  %v8986_v54 = vadd.f32 %v8007_v50, %v8907_v20 }
 0x101   : > { %v8008_v52 = vpop.f32.mrb[14].mxu1  ;;  %v8989_v55 = vadd.f32 %v8907_v20, %v508_v51 }
 0x102   : > { %v511_v53 = vpop.f32.mrb[15].mxu1  ;;  %12009 = vst [vmem:[#allocation13_spill] sm:$0xff] %v8986_v54  ;;  %v8992_v56 = vadd.f32 %v8008_v52, %v8907_v20 }
 0x103   : > { %12010 = vst [vmem:[#allocation14_spill] sm:$0xff] %v8989_v55  ;;  %v8995_v57 = vadd.f32 %v8907_v20, %v511_v53 }
 0x104   : > { %v9003_v59 = vpack.c.bf16 %v8992_v56, %v8986_v54 }
 0x105   : > { %12011 = vst [vmem:[#allocation15_spill] sm:$0xff] %v8995_v57  ;;  %v8999_v58 = vpack.c.bf16 %v8995_v57, %v8989_v55 }
 0x106   : > { %954 = vrot.lane.b32.xlu1 %v9003_v59, %s8808_s7 }
 0x107   : > { %v8011_v60 = vpop.f32.mrb[16].mxu1  ;;  %904 = vrot.lane.b32.xlu0 %v8999_v58, %s8808_s7 }
 0x108   : > { %v524_v61 = vpop.f32.mrb[17].mxu1  ;;  %v9010_v62 = vadd.f32 %v8011_v60, %v8907_v20 }
 0x109   : > { %v9013_v63 = vadd.f32 %v8907_v20, %v524_v61  ;;  %v8012_v0 = vpop.f32.mrb[18].mxu1 }
 0x10a   : > { %12012 = vst [vmem:[#allocation16_spill] sm:$0xff] %v9010_v62  ;;  %v527_v1 = vpop.f32.mrb[19].mxu1  ;;  %v9016_v2 = vadd.f32 %v8012_v0, %v8907_v20 }
 0x10b   : > { %12013 = vst [vmem:[#allocation17_spill] sm:$0xff] %v9013_v63  ;;  %v9019_v3 = vadd.f32 %v8907_v20, %v527_v1 }
 0x10c   : > { %v9027_v5 = vpack.c.bf16 %v9016_v2, %v9010_v62 }
 0x10d   : > { %12014 = vst [vmem:[#allocation18_spill] sm:$0xff] %v9019_v3  ;;  %v9023_v4 = vpack.c.bf16 %v9019_v3, %v9013_v63 }
 0x10e   : > { %1054 = vrot.lane.b32.xlu1 %v9027_v5, %s8808_s7 }
 0x10f   : > { %v8015_v6 = vpop.f32.mrb[20].mxu1  ;;  %1004 = vrot.lane.b32.xlu0 %v9023_v4, %s8808_s7 }
 0x110   : > { %v540_v7 = vpop.f32.mrb[21].mxu1  ;;  %v9040_v12 = vadd.f32 %v8015_v6, %v8907_v20 }
 0x111   : > { %v8016_v8 = vpop.f32.mrb[22].mxu1  ;;  %v9034_v9 = vadd.f32 %v8907_v20, %v540_v7 }
 0x112   : > { %v543_v10 = vpop.f32.mrb[23].mxu1  ;;  %12016 = vst [vmem:[#allocation20_spill] sm:$0xff] %v9040_v12  ;;  %v9043_v13 = vadd.f32 %v8016_v8, %v8907_v20 }
 0x113   : > { %12015 = vst [vmem:[#allocation19_spill] sm:$0xff] %v9034_v9  ;;  %v9037_v11 = vadd.f32 %v8907_v20, %v543_v10 }
 0x114   : > { %12017 = vst [vmem:[#allocation21_spill] sm:$0xff] %v9043_v13  ;;  %v9051_v15 = vpack.c.bf16 %v9043_v13, %v9040_v12 }
 0x115   : > { %v9047_v14 = vpack.c.bf16 %v9037_v11, %v9034_v9 }
 0x116   : > { %1154 = vrot.lane.b32.xlu1 %v9051_v15, %s8808_s7 }
 0x117   : > { %v8019_v16 = vpop.f32.mrb[24].mxu1  ;;  %1104 = vrot.lane.b32.xlu0 %v9047_v14, %s8808_s7 }
 0x118   : > { %v556_v17 = vpop.f32.mrb[25].mxu1  ;;  %v9058_v19 = vadd.f32 %v8019_v16, %v8907_v20 }
 0x119   : > { %v9061_v21 = vadd.f32 %v8907_v20, %v556_v17  ;;  %v8020_v22 = vpop.f32.mrb[26].mxu1 }
 0x11a   : > { %12018 = vst [vmem:[#allocation22_spill] sm:$0xff] %v9058_v19  ;;  %v559_v23 = vpop.f32.mrb[27].mxu1  ;;  %v9064_v29 = vadd.f32 %v8020_v22, %v8907_v20 }
 0x11b   : > { %12019 = vst [vmem:[#allocation23_spill] sm:$0xff] %v9061_v21  ;;  %v9067_v30 = vadd.f32 %v8907_v20, %v559_v23 }
 0x11c   : > { %12020 = vst [vmem:[#allocation24_spill] sm:$0xff] %v9064_v29  ;;  %v9075_v33 = vpack.c.bf16 %v9064_v29, %v9058_v19 }
 0x11d   : > { %v9071_v31 = vpack.c.bf16 %v9067_v30, %v9061_v21 }
 0x11e   : > { %1254 = vrot.lane.b32.xlu1 %v9075_v33, %s8808_s7 }
 0x11f   : > { %v8023_v39 = vpop.f32.mrb[28].mxu1  ;;  %1204 = vrot.lane.b32.xlu0 %v9071_v31, %s8808_s7 }
 0x120   : > { %v572_v40 = vpop.f32.mrb[29].mxu1  ;;  %v9082_v43 = vadd.f32 %v8023_v39, %v8907_v20 }
 0x121   : > { %v8024_v42 = vpop.f32.mrb[30].mxu1  ;;  %v9091_v53 = vadd.f32 %v8907_v20, %v572_v40 }
 0x122   : > { %12021 = vst [vmem:[#allocation25_spill] sm:$0xff] %v9082_v43  ;;  %v9085_v50 = vadd.f32 %v8024_v42, %v8907_v20  ;;  %v575_v51 = vpop.f32.mrb[31].mxu1 }
 0x123   : > { %v9088_v52 = vadd.f32 %v8907_v20, %v575_v51  ;;  %12024 = vst [vmem:[#allocation28_spill] sm:$0xff] %v9091_v53 }
 0x124   : > { %12022 = vst [vmem:[#allocation26_spill] sm:$0xff] %v9085_v50  ;;  %v9095_v60 = vpack.c.bf16 %v9085_v50, %v9082_v43 }
 0x125   : > { %12023 = vst [vmem:[#allocation27_spill] sm:$0xff] %v9088_v52  ;;  %v9099_v61 = vpack.c.bf16 %v9088_v52, %v9091_v53 }
 0x126   : > { %1354 = vrot.lane.b32.xlu1 %v9095_v60, %s8808_s7 }
 0x127   : > { %1304 = vrot.lane.b32.xlu0 %v9099_v61, %s8808_s7 }
 0x12a   : > { %1804 = vrot.lane.b32.xlu1 %v8924_v27, %s8809_s8 }
 0x12b   : > { %1851 = vrot.lane.b32.xlu0 %v8933_v32, %s8809_s8 }
 0x12e   : > { %1898 = vrot.lane.b32.xlu1 %v8951_v38, %s8809_s8 }
 0x12f   : > { %1945 = vrot.lane.b32.xlu0 %v8957_v41, %s8809_s8 }
 0x132   : > { %1992 = vrot.lane.b32.xlu1 %v8975_v48, %s8809_s8 }
 0x133   : > { %2039 = vrot.lane.b32.xlu0 %v8979_v49, %s8809_s8 }
 0x136   : > { %2086 = vrot.lane.b32.xlu1 %v8999_v58, %s8809_s8 }
 0x137   : > { %2133 = vrot.lane.b32.xlu0 %v9003_v59, %s8809_s8 }
 0x13a   : > { %2180 = vrot.lane.b32.xlu1 %v9023_v4, %s8809_s8 }
 0x13b   : > { %2227 = vrot.lane.b32.xlu0 %v9027_v5, %s8809_s8 }
 0x13e   : > { %2274 = vrot.lane.b32.xlu1 %v9047_v14, %s8809_s8 }
 0x13f   : > { %2368 = vrot.lane.b32.xlu0 %v9071_v31, %s8809_s8 }
 0x142   : > { %2321 = vrot.lane.b32.xlu1 %v9051_v15, %s8809_s8 }
 0x143   : > { %3148 = vrot.lane.b32.xlu0 %v8914_v24, %s8808_s7 }
 0x146   : > { %2415 = vrot.lane.b32.xlu1 %v9075_v33, %s8809_s8 }
 0x147   : > { %3156 = vrot.lane.b32.xlu0 %v8941_v35, %s8808_s7 }
 0x14a   : > { %3152 = vrot.lane.b32.xlu1 %v8927_v28, %s8808_s7 }
 0x14b   : > { %3164 = vrot.lane.b32.xlu0 %v8963_v45, %s8808_s7 }
 0x14e   : > { %3160 = vrot.lane.b32.xlu1 %v8944_v36, %s8808_s7 }
 0x14f   : > { %3172 = vrot.lane.b32.xlu0 %v8989_v55, %s8808_s7 }
 0x152   : > { %3168 = vrot.lane.b32.xlu1 %v8960_v44, %s8808_s7 }
 0x153   : > { %3180 = vrot.lane.b32.xlu0 %v9013_v63, %s8808_s7 }
 0x156   : > { %3176 = vrot.lane.b32.xlu1 %v8986_v54, %s8808_s7 }
 0x157   : > { %3188 = vrot.lane.b32.xlu0 %v9034_v9, %s8808_s7 }
 0x15a   : > { %3184 = vrot.lane.b32.xlu1 %v9010_v62, %s8808_s7 }
 0x15b   : > { %3196 = vrot.lane.b32.xlu0 %v9061_v21, %s8808_s7 }
 0x15e   : > { %3192 = vrot.lane.b32.xlu1 %v9040_v12, %s8808_s7 }
 0x15f   : > { %3204 = vrot.lane.b32.xlu0 %v9091_v53, %s8808_s7 }
 0x161   : > { %v605_v20 = vpop.permute.xlu0 %604 }
 0x162   : > { %v610_v0 = vsel %vm373_vm1, %v605_v20, 0  ;;  %3200 = vrot.lane.b32.xlu1 %v9058_v19, %s8808_s7 }
 0x163   : > { %8026 = vmatpush3.bf16.xpose.msra.mxu1 %v610_v0  ;;  %3150 = vrot.lane.b32.xlu0 %v8917_v25, %s8808_s7 }
 0x164   : > { %8031 = vmatprep.subr.bf16.mxu1 %v11861_v18 }
 0x165   : > { %v655_v1 = vpop.permute.xlu0 %654 }
 0x166   : > { %3208 = vrot.lane.b32.xlu1 %v9082_v43, %s8808_s7  ;;  %v660_v6 = vsel %vm373_vm1, %v655_v1, 0 }
 0x167   : > { %2462 = vrot.lane.b32.xlu0 %v9099_v61, %s8809_s8 }
 0x169   : > { %v705_v7 = vpop.permute.xlu1 %704 }
 0x16a   : > { %8028 = vmatmul.mubr.msk.bf16.vlgmr.msra.gmra.mrb[32].mxu1 %vm373_vm1, %v8924_v27  ;;  %2509 = vrot.lane.b32.xlu1 %v9095_v60, %s8809_s8  ;;  %v710_v8 = vsel %vm373_vm1, %v705_v7, 0 }
 0x16b   : > { %8032 = vmatpush3.bf16.xpose.msra.mxu1 %v660_v6  ;;  %8033 = vmatprep.mubr.msk.bf16.mxu1 %vm8807_vm2, %v11861_v18 }
 0x16c   : > { %8037 = vmatprep.subr.bf16.mxu1 %v11861_v18 }
 0x16d   : > { %v755_v10 = vpop.permute.xlu1 %754 }
 0x16e   : > { %3154 = vrot.lane.b32.xlu1 %v8920_v26, %s8808_s7  ;;  %v760_v16 = vsel %vm373_vm1, %v755_v10, 0 }
 0x171   : > { %v805_v27 = vpop.permute.xlu0 %804 }
 0x172   : > { %8034 = vmatmul.mubr.msk.bf16.vlgmr.msra.gmra.mrb[36].mxu1 %vm373_vm1, %v8933_v32  ;;  %v810_v22 = vsel %vm373_vm1, %v805_v27, 0 }
 0x173   : > { %8038 = vmatpush3.bf16.xpose.msra.mxu1 %v710_v8  ;;  %8039 = vmatprep.mubr.msk.bf16.mxu1 %vm8807_vm2, %v11861_v18 }
 0x174   : > { %8043 = vmatprep.subr.bf16.mxu1 %v11861_v18 }
 0x179   : > { %v905_v17 = vpop.permute.xlu0 %904 }
 0x17a   : > { %8040 = vmatmul.mubr.msk.bf16.vlgmr.msra.gmra.mrb[40].mxu1 %vm373_vm1, %v8951_v38  ;;  %v855_v38 = vpop.permute.xlu1 %854  ;;  %v910_v0 = vsel %vm373_vm1, %v905_v17, 0 }
 0x17b   : > { %8044 = vmatpush3.bf16.xpose.msra.mxu1 %v760_v16  ;;  %8045 = vmatprep.mubr.msk.bf16.mxu1 %vm8807_vm2, %v11861_v18  ;;  %v860_v40 = vsel %vm373_vm1, %v855_v38, 0 }
 0x17c   : > { %8049 = vmatprep.subr.bf16.mxu1 %v11861_v18 }
 0x17e   : > { %v955_v39 = vpop.permute.xlu1 %954 }
 0x17f   : > { %v960_v6 = vsel %vm373_vm1, %v955_v39, 0 }
 0x181   : > { %v1005_v32 = vpop.permute.xlu0 %1004 }
 0x182   : > { %8046 = vmatmul.mubr.msk.bf16.vlgmr.msra.gmra.mrb[44].mxu1 %vm373_vm1, %v8957_v41  ;;  %v1010_v23 = vsel %vm373_vm1, %v1005_v32, 0  ;;  %v1055_v51 = vpop.permute.xlu1 %1054 }
 0x183   : > { %8050 = vmatpush3.bf16.xpose.msra.mxu1 %v810_v22  ;;  %8074 = vmatpush3.bf16.xpose.msra.mxu0 %v1010_v23 }
 0x184   : > { %8051 = vmatprep.mubr.msk.bf16.mxu1 %vm8807_vm2, %v11861_v18  ;;  %8055 = vmatprep.subr.bf16.mxu1 %v11861_v18 }
 0x185   : > { %8085 = vmatprep.subr.bf16.mxu0 %v11861_v18 }
 0x188   : > { %v1155_v20 = vpop.permute.xlu1 %1154 }
 0x189   : > { %v1105_v42 = vpop.permute.xlu0 %1104 }
 0x18a   : > { %8052 = vmatmul.mubr.msk.bf16.vlgmr.msra.gmra.mrb[48].mxu1 %vm373_vm1, %v8975_v48  ;;  %8076 = vmatmul.mubr.msk.bf16.vlgmr.msra.gmra.mrb[0].mxu0 %vm373_vm1, %v9023_v4  ;;  %v1110_v41 = vsel %vm373_vm1, %v1105_v42, 0 }
 0x18b   : > { %8056 = vmatpush3.bf16.xpose.msra.mxu1 %v860_v40  ;;  %8057 = vmatprep.mubr.msk.bf16.mxu1 %vm8807_vm2, %v11861_v18 }
 0x18c   : > { %8086 = vmatpush3.bf16.xpose.msra.mxu0 %v1110_v41  ;;  %8087 = vmatprep.mubr.msk.bf16.mxu0 %vm8807_vm2, %v11861_v18 }
 0x18d   : > { %8061 = vmatprep.subr.bf16.mxu1 %v11861_v18  ;;  %8097 = vmatprep.subr.bf16.mxu0 %v11861_v18 }
 0x190   : > { %v1255_v1 = vpop.permute.xlu1 %1254 }
 0x191   : > { %v1205_v48 = vpop.permute.xlu0 %1204 }
 0x192   : > { %v1210_v4 = vsel %vm373_vm1, %v1205_v48, 0  ;;  %8058 = vmatmul.mubr.msk.bf16.vlgmr.msra.gmra.mrb[52].mxu1 %vm373_vm1, %v8979_v49 }
 0x193   : > { %8088 = vmatmul.mubr.msk.bf16.vlgmr.msra.gmra.mrb[4].mxu0 %vm373_vm1, %v9047_v14  ;;  %8062 = vmatpush3.bf16.xpose.msra.mxu1 %v910_v0 }
 0x194   : > { %8098 = vmatpush3.bf16.xpose.msra.mxu0 %v1210_v4  ;;  %8063 = vmatprep.mubr.msk.bf16.mxu1 %vm8807_vm2, %v11861_v18 }
 0x195   : > { %8099 = vmatprep.mubr.msk.bf16.mxu0 %vm8807_vm2, %v11861_v18  ;;  %8067 = vmatprep.subr.bf16.mxu1 %v11861_v18 }
 0x196   : > { %8109 = vmatprep.subr.bf16.mxu0 %v11861_v18 }
 0x198   : > { %v1355_v14 = vpop.permute.xlu1 %1354 }
 0x199   : > { %v1305_v7 = vpop.permute.xlu0 %1304 }
 0x19a   : > { %8064 = vmatmul.mubr.msk.bf16.vlgmr.msra.gmra.mrb[56].mxu1 %vm373_vm1, %v8999_v58  ;;  %v1310_v49 = vsel %vm373_vm1, %v1305_v7, 0  ;;  %v1060_v58 = vsel %vm373_vm1, %v1055_v51, 0 }
 0x19b   : > { %8100 = vmatmul.mubr.msk.bf16.vlgmr.msra.gmra.mrb[8].mxu0 %vm373_vm1, %v9071_v31  ;;  %8068 = vmatpush3.bf16.xpose.msra.mxu1 %v960_v6  ;;  %v1160_v31 = vsel %vm373_vm1, %v1155_v20, 0 }
 0x19c   : > { %8110 = vmatpush3.bf16.xpose.msra.mxu0 %v1310_v49  ;;  %8069 = vmatprep.mubr.msk.bf16.mxu1 %vm8807_vm2, %v11861_v18  ;;  %v1805_v8 = vpop.permute.xlu1 %1804 }
 0x19d   : > { %8111 = vmatprep.mubr.msk.bf16.mxu0 %vm8807_vm2, %v11861_v18  ;;  %8079 = vmatprep.subr.bf16.mxu1 %v11861_v18 }
 0x19e   : > { %8121 = vmatprep.subr.bf16.mxu0 %v11861_v18 }
 0x1a2   : > { %8070 = vmatmul.mubr.msk.bf16.vlgmr.msra.gmra.mrb[60].mxu1 %vm373_vm1, %v9003_v59  ;;  %v1260_v59 = vsel %vm373_vm1, %v1255_v1, 0 }
 0x1a3   : > { %8112 = vmatmul.mubr.msk.bf16.vlgmr.msra.gmra.mrb[12].mxu0 %vm373_vm1, %v9099_v61  ;;  %8080 = vmatpush3.bf16.xpose.msra.mxu1 %v1060_v58  ;;  %v1360_v61 = vsel %vm373_vm1, %v1355_v14, 0 }
 0x1a4   : > { %8122 = vmatpush3.bf16.msra.mxu0 %v1805_v8  ;;  %8081 = vmatprep.mubr.msk.bf16.mxu1 %vm8807_vm2, %v11861_v18 }
 0x1a5   : > { %8091 = vmatprep.subr.bf16.mxu1 %v11861_v18  ;;  %8123 = vmatprep.mubr.msk.bf16.mxu0 %vm8807_vm2, %v11861_v18 }
 0x1a6   : > { %8133 = vmatprep.subr.bf16.mxu0 %v11861_v18 }
 0x1aa   : > { %8082 = vmatmul.mubr.msk.bf16.vlgmr.msra.gmra.mrb[64].mxu1 %vm373_vm1, %v9027_v5  ;;  %v1852_v5 = vpop.permute.xlu0 %1851 }
 0x1ab   : > { %8092 = vmatpush3.bf16.xpose.msra.mxu1 %v1160_v31  ;;  %8093 = vmatprep.mubr.msk.bf16.mxu1 %vm8807_vm2, %v11861_v18 }
 0x1ac   : > { %8103 = vmatprep.subr.bf16.mxu1 %v11861_v18 }
 0x1b2   : > { %8094 = vmatmul.mubr.msk.bf16.vlgmr.msra.gmra.mrb[68].mxu1 %vm373_vm1, %v9051_v15 }
 0x1b3   : > { %8104 = vmatpush3.bf16.xpose.msra.mxu1 %v1260_v59  ;;  %8105 = vmatprep.mubr.msk.bf16.mxu1 %vm8807_vm2, %v11861_v18 }
 0x1b4   : > { %8115 = vmatprep.subr.bf16.mxu1 %v11861_v18 }
 0x1ba   : > { %8106 = vmatmul.mubr.msk.bf16.vlgmr.msra.gmra.mrb[72].mxu1 %vm373_vm1, %v9075_v33 }
 0x1bb   : > { %8116 = vmatpush3.bf16.xpose.msra.mxu1 %v1360_v61  ;;  %8117 = vmatprep.mubr.msk.bf16.mxu1 %vm8807_vm2, %v11861_v18 }
 0x1bc   : > { %8127 = vmatprep.subr.bf16.mxu1 %v11861_v18 }
 0x1c2   : > { %8118 = vmatmul.mubr.msk.bf16.vlgmr.msra.gmra.mrb[76].mxu1 %vm373_vm1, %v9095_v60 }
 0x1c3   : > { %8128 = vmatpush3.bf16.msra.mxu1 %v1852_v5  ;;  %8129 = vmatprep.mubr.msk.bf16.mxu1 %vm8807_vm2, %v11861_v18 }
 0x1c4   : > { %8139 = vmatprep.subr.bf16.mxu1 %v11861_v18 }
 0x23d   : > { %v646_v15 = vpop.f32.mrb[32].mxu1 }
 0x23e   : > { %v9271_v27 = vmul.f32 0.5, %v646_v15  ;;  %v8029_v33 = vpop.f32.mrb[33].mxu1 }
 0x23f   : > { %v649_v10 = vpop.f32.mrb[34].mxu1 }
 0x240   : > { %v9273_v16 = vmul.f32 0.5, %v649_v10  ;;  %v8030_v17 = vpop.f32.mrb[35].mxu1  ;;  %v1436_v32 = vsel %vm1435_vm3, %v9271_v27, -inf }
 0x241   : > { %1437 = vmax.xlane.f32.xlu0 %v1436_v32 }
 0x242   : > { %v1439_v60 = vsel %vm1435_vm3, %v9273_v16, -inf }
 0x243   : > { %1440 = vmax.xlane.f32.xlu1 %v1439_v60 }
 0x245   : > { %v696_v22 = vpop.f32.mrb[36].mxu1 }
 0x246   : > { %v9279_v23 = vmul.f32 0.5, %v696_v22  ;;  %v8035_v38 = vpop.f32.mrb[37].mxu1 }
 0x247   : > { %v699_v39 = vpop.f32.mrb[38].mxu1 }
 0x248   : > { %v9281_v40 = vmul.f32 0.5, %v699_v39  ;;  %v8036_v42 = vpop.f32.mrb[39].mxu1  ;;  %v1442_v41 = vsel %vm1435_vm3, %v9279_v23, -inf }
 0x249   : > { %1443 = vmax.xlane.f32.xlu0 %v1442_v41 }
 0x24a   : > { %v1445_v51 = vsel %vm1435_vm3, %v9281_v40, -inf }
 0x24d   : > { %1446 = vmax.xlane.f32.xlu0 %v1445_v51  ;;  %v746_v20 = vpop.f32.mrb[40].mxu1 }
 0x24e   : > { %v9287_v48 = vmul.f32 0.5, %v746_v20  ;;  %v8041_v0 = vpop.f32.mrb[41].mxu1 }
 0x24f   : > { %v749_v4 = vpop.f32.mrb[42].mxu1 }
 0x250   : > { %v9289_v1 = vmul.f32 0.5, %v749_v4  ;;  %v8042_v6 = vpop.f32.mrb[43].mxu1  ;;  %v1448_v7 = vsel %vm1435_vm3, %v9287_v48, -inf }
 0x251   : > { %1449 = vmax.xlane.f32.xlu1 %v1448_v7  ;;  %v9317_v7 = vpop.permute.xlu1 %1898 }
 0x252   : > { %v1451_v49 = vsel %vm1435_vm3, %v9289_v1, -inf }
 0x253   : > { %1452 = vmax.xlane.f32.xlu0 %v1451_v49 }
 0x255   : > { %v796_v14 = vpop.f32.mrb[44].mxu1 }
 0x256   : > { %v9295_v58 = vmul.f32 0.5, %v796_v14  ;;  %v8047_v8 = vpop.f32.mrb[45].mxu1 }
 0x257   : > { %v799_v31 = vpop.f32.mrb[46].mxu1 }
 0x258   : > { %v9297_v59 = vmul.f32 0.5, %v799_v31  ;;  %v8048_v61 = vpop.f32.mrb[47].mxu1  ;;  %v1454_v5 = vsel %vm1435_vm3, %v9295_v58, -inf }
 0x259   : > { %1455 = vmax.xlane.f32.xlu1 %v1454_v5 }
 0x25a   : > { %v1457_v15 = vsel %vm1435_vm3, %v9297_v59, -inf }
 0x25b   : > { %1458 = vmax.xlane.f32.xlu0 %v1457_v15 }
 0x25d   : > { %v846_v33 = vpop.f32.mrb[48].mxu1  ;;  %v1046_v10 = vpop.f32.mrb[0].mxu0 }
 0x25e   : > { %v9303_v17 = vmul.f32 0.5, %v846_v33  ;;  %v8053_v32 = vpop.f32.mrb[49].mxu1  ;;  %v8077_v60 = vpop.f32.mrb[1].mxu0  ;;  %v9305_v39 = vmul.f32 0.5, %v1046_v10 }
 0x25f   : > { %v849_v22 = vpop.f32.mrb[50].mxu1  ;;  %v1049_v38 = vpop.f32.mrb[2].mxu0 }
 0x260   : > { %v9307_v42 = vmul.f32 0.5, %v849_v22  ;;  %v8054_v41 = vpop.f32.mrb[51].mxu1  ;;  %v8078_v51 = vpop.f32.mrb[3].mxu0  ;;  %v1460_v20 = vsel %vm1435_vm3, %v9303_v17, -inf  ;;  %v9311_v0 = vmul.f32 0.5, %v1049_v38  ;;  %v1484_v6 = vsel %vm1435_vm3, %v9305_v39, -inf }
 0x261   : > { %1461 = vmax.xlane.f32.xlu1 %v1460_v20 }
 0x262   : > { %v1463_v4 = vsel %vm1435_vm3, %v9307_v42, -inf  ;;  %v1487_v61 = vsel %vm1435_vm3, %v9311_v0, -inf }
 0x263   : > { %1464 = vmax.xlane.f32.xlu0 %v1463_v4  ;;  %v9335_v4 = vpop.permute.xlu1 %1992 }
 0x265   : > { %v896_v49 = vpop.f32.mrb[52].mxu1  ;;  %1485 = vmax.xlane.f32.xlu1 %v1484_v6 }
 0x266   : > { %v9319_v14 = vmul.f32 0.5, %v896_v49  ;;  %v1146_v8 = vpop.f32.mrb[4].mxu0  ;;  %v8059_v31 = vpop.f32.mrb[53].mxu1 }
 0x267   : > { %v8089_v5 = vpop.f32.mrb[5].mxu0  ;;  %v899_v15 = vpop.f32.mrb[54].mxu1  ;;  %1488 = vmax.xlane.f32.xlu0 %v1487_v61  ;;  %v9323_v33 = vmul.f32 0.5, %v1146_v8 }
 0x268   : > { %v9325_v10 = vmul.f32 0.5, %v899_v15  ;;  %v1149_v32 = vpop.f32.mrb[6].mxu0  ;;  %v8060_v60 = vpop.f32.mrb[55].mxu1  ;;  %v1466_v22 = vsel %vm1435_vm3, %v9319_v14, -inf }
 0x269   : > { %v8090_v38 = vpop.f32.mrb[7].mxu0  ;;  %1467 = vmax.xlane.f32.xlu1 %v1466_v22  ;;  %v9329_v41 = vmul.f32 0.5, %v1149_v32  ;;  %v1496_v20 = vsel %vm1435_vm3, %v9323_v33, -inf }
 0x26a   : > { %v1469_v51 = vsel %vm1435_vm3, %v9325_v10, -inf }
 0x26b   : > { %1470 = vmax.xlane.f32.xlu0 %v1469_v51  ;;  %v1499_v61 = vsel %vm1435_vm3, %v9329_v41, -inf }
 0x26d   : > { %v946_v6 = vpop.f32.mrb[56].mxu1  ;;  %1497 = vmax.xlane.f32.xlu1 %v1496_v20 }
 0x26e   : > { %v9337_v49 = vmul.f32 0.5, %v946_v6  ;;  %v1246_v8 = vpop.f32.mrb[8].mxu0  ;;  %v8065_v31 = vpop.f32.mrb[57].mxu1 }
 0x26f   : > { %v8101_v5 = vpop.f32.mrb[9].mxu0  ;;  %v949_v15 = vpop.f32.mrb[58].mxu1  ;;  %1500 = vmax.xlane.f32.xlu0 %v1499_v61  ;;  %v9341_v32 = vmul.f32 0.5, %v1246_v8 }
 0x270   : > { %v9343_v60 = vmul.f32 0.5, %v949_v15  ;;  %v1249_v22 = vpop.f32.mrb[10].mxu0  ;;  %v8066_v38 = vpop.f32.mrb[59].mxu1  ;;  %v1472_v51 = vsel %vm1435_vm3, %v9337_v49, -inf }
 0x271   : > { %v8102_v20 = vpop.f32.mrb[11].mxu0  ;;  %1473 = vmax.xlane.f32.xlu1 %v1472_v51  ;;  %v9347_v6 = vmul.f32 0.5, %v1249_v22  ;;  %v9351_v5 = vpop.permute.xlu0 %1945  ;;  %v1508_v8 = vsel %vm1435_vm3, %v9341_v32, -inf }
 0x272   : > { %v1475_v31 = vsel %vm1435_vm3, %v9343_v60, -inf  ;;  %v9355_v61 = vpop.permute.xlu1 %2086 }
 0x273   : > { %1476 = vmax.xlane.f32.xlu0 %v1475_v31  ;;  %12025 = vst [vmem:[#allocation29_spill] sm:$0xff] %v9355_v61  ;;  %v1511_v22 = vsel %vm1435_vm3, %v9347_v6, -inf }
 0x275   : > { %v996_v15 = vpop.f32.mrb[60].mxu1  ;;  %1509 = vmax.xlane.f32.xlu1 %v1508_v8 }
 0x276   : > { %v9357_v38 = vmul.f32 0.5, %v996_v15  ;;  %v1346_v18 = vpop.f32.mrb[12].mxu0  ;;  %v8071_v20 = vpop.f32.mrb[61].mxu1 }
 0x277   : > { %v8113_v51 = vpop.f32.mrb[13].mxu0  ;;  %v999_v25 = vpop.f32.mrb[62].mxu1  ;;  %1512 = vmax.xlane.f32.xlu0 %v1511_v22  ;;  %v9361_v31 = vmul.f32 0.5, %v1346_v18 }
 0x278   : > { %v9363_v26 = vmul.f32 0.5, %v999_v25  ;;  %v1349_v43 = vpop.f32.mrb[14].mxu0  ;;  %v8072_v53 = vpop.f32.mrb[63].mxu1  ;;  %v1478_v19 = vsel %vm1435_vm3, %v9357_v38, -inf }
 0x279   : > { %v8114_v8 = vpop.f32.mrb[15].mxu0  ;;  %1479 = vmax.xlane.f32.xlu1 %v1478_v19  ;;  %v9367_v15 = vmul.f32 0.5, %v1349_v43  ;;  %v9371_v51 = vpop.permute.xlu0 %2039  ;;  %v1520_v18 = vsel %vm1435_vm3, %v9361_v31, -inf }
 0x27a   : > { %v1481_v20 = vsel %vm1435_vm3, %v9363_v26, -inf  ;;  %12026 = vst [vmem:[#allocation30_spill] sm:$0xff] %v9371_v51  ;;  %v9375_v22 = vpop.permute.xlu1 %2180 }
 0x27b   : > { %1482 = vmax.xlane.f32.xlu0 %v1481_v20  ;;  %12027 = vst [vmem:[#allocation31_spill] sm:$0xff] %v9375_v22  ;;  %v1523_v19 = vsel %vm1435_vm3, %v9367_v15, -inf }
 0x27d   : > { %v1096_v25 = vpop.f32.mrb[64].mxu1  ;;  %1521 = vmax.xlane.f32.xlu1 %v1520_v18  ;;  %v9385_v9 = vpop.permute.xlu0 %2133 }
 0x27e   : > { %v9377_v53 = vmul.f32 0.5, %v1096_v25  ;;  %v8083_v21 = vpop.f32.mrb[65].mxu1  ;;  %12028 = vst [vmem:[#allocation32_spill] sm:$0xff] %v9385_v9  ;;  %v9389_v25 = vpop.permute.xlu1 %2274 }
 0x27f   : > { %v1099_v43 = vpop.f32.mrb[66].mxu1  ;;  %1524 = vmax.xlane.f32.xlu0 %v1523_v19  ;;  %12029 = vst [vmem:[#allocation33_spill] sm:$0xff] %v9389_v25 }
 0x280   : > { %v9381_v8 = vmul.f32 0.5, %v1099_v43  ;;  %v8084_v20 = vpop.f32.mrb[67].mxu1  ;;  %v1490_v12 = vsel %vm1435_vm3, %v9377_v53, -inf }
 0x281   : > { %1491 = vmax.xlane.f32.xlu1 %v1490_v12  ;;  %v9393_v43 = vpop.permute.xlu0 %2227 }
 0x282   : > { %v1493_v18 = vsel %vm1435_vm3, %v9381_v8, -inf  ;;  %12030 = vst [vmem:[#allocation34_spill] sm:$0xff] %v9393_v43  ;;  %v9399_v9 = vpop.permute.xlu1 %2321 }
 0x283   : > { %1494 = vmax.xlane.f32.xlu0 %v1493_v18  ;;  %12031 = vst [vmem:[#allocation35_spill] sm:$0xff] %v9399_v9 }
 0x285   : > { %v1196_v21 = vpop.f32.mrb[68].mxu1 }
 0x286   : > { %v9391_v22 = vmul.f32 0.5, %v1196_v21  ;;  %v8095_v62 = vpop.f32.mrb[69].mxu1  ;;  %v9403_v21 = vpop.permute.xlu0 %2368 }
 0x287   : > { %v1199_v19 = vpop.f32.mrb[70].mxu1  ;;  %12032 = vst [vmem:[#allocation36_spill] sm:$0xff] %v9403_v21 }
 0x288   : > { %v9395_v20 = vmul.f32 0.5, %v1199_v19  ;;  %v8096_v63 = vpop.f32.mrb[71].mxu1  ;;  %v1502_v12 = vsel %vm1435_vm3, %v9391_v22, -inf  ;;  %v9407_v19 = vpop.permute.xlu1 %2415 }
 0x289   : > { %1503 = vmax.xlane.f32.xlu1 %v1502_v12  ;;  %12033 = vst [vmem:[#allocation37_spill] sm:$0xff] %v9407_v19 }
 0x28a   : > { %v1505_v18 = vsel %vm1435_vm3, %v9395_v20, -inf }
 0x28b   : > { %1506 = vmax.xlane.f32.xlu0 %v1505_v18  ;;  %v9415_v18 = vpop.permute.xlu0 %3148 }
 0x28c   : > { %12034 = vst [vmem:[#allocation38_spill] sm:$0xff] %v9415_v18 }
 0x28d   : > { %v1296_v25 = vpop.f32.mrb[72].mxu1 }
 0x28e   : > { %v9405_v62 = vmul.f32 0.5, %v1296_v25  ;;  %v8107_v61 = vpop.f32.mrb[73].mxu1  ;;  %v9417_v25 = vpop.permute.xlu1 %3152 }
 0x28f   : > { %v1299_v43 = vpop.f32.mrb[74].mxu1  ;;  %12035 = vst [vmem:[#allocation39_spill] sm:$0xff] %v9417_v25 }
 0x290   : > { %v9409_v63 = vmul.f32 0.5, %v1299_v43  ;;  %v8108_v54 = vpop.f32.mrb[75].mxu1  ;;  %v1514_v12 = vsel %vm1435_vm3, %v9405_v62, -inf }
 0x291   : > { %1515 = vmax.xlane.f32.xlu1 %v1514_v12  ;;  %v9425_v12 = vpop.permute.xlu0 %3156 }
 0x292   : > { %v1517_v9 = vsel %vm1435_vm3, %v9409_v63, -inf  ;;  %12036 = vst [vmem:[#allocation40_spill] sm:$0xff] %v9425_v12  ;;  %v9429_v18 = vpop.permute.xlu1 %3160 }
 0x293   : > { %1518 = vmax.xlane.f32.xlu0 %v1517_v9  ;;  %12037 = vst [vmem:[#allocation41_spill] sm:$0xff] %v9429_v18 }
 0x295   : > { %v1396_v21 = vpop.f32.mrb[76].mxu1  ;;  %v9431_v25 = vpop.permute.xlu0 %3164 }
 0x296   : > { %v9419_v61 = vmul.f32 0.5, %v1396_v21  ;;  %v8119_v55 = vpop.f32.mrb[77].mxu1  ;;  %12038 = vst [vmem:[#allocation42_spill] sm:$0xff] %v9431_v25  ;;  %v9433_v21 = vpop.permute.xlu1 %3168 }
 0x297   : > { %v1399_v19 = vpop.f32.mrb[78].mxu1  ;;  %12039 = vst [vmem:[#allocation43_spill] sm:$0xff] %v9433_v21 }
 0x298   : > { %v9421_v43 = vmul.f32 0.5, %v1399_v19  ;;  %v8120_v54 = vpop.f32.mrb[79].mxu1  ;;  %v1526_v44 = vsel %vm1435_vm3, %v9419_v61, -inf }
 0x299   : > { %1527 = vmax.xlane.f32.xlu1 %v1526_v44  ;;  %v9435_v55 = vpop.permute.xlu0 %3172 }
 0x29a   : > { %v1529_v9 = vsel %vm1435_vm3, %v9421_v43, -inf  ;;  %12040 = vst [vmem:[#allocation44_spill] sm:$0xff] %v9435_v55  ;;  %v9437_v19 = vpop.permute.xlu1 %3176 }
 0x29b   : > { %1530 = vmax.xlane.f32.xlu0 %v1529_v9  ;;  %12041 = vst [vmem:[#allocation45_spill] sm:$0xff] %v9437_v19 }
 0x29d   : > { %v9439_v54 = vpop.permute.xlu0 %3180 }
 0x29e   : > { %12042 = vst [vmem:[#allocation46_spill] sm:$0xff] %v9439_v54  ;;  %v9441_v45 = vpop.permute.xlu1 %3184 }
 0x29f   : > { %12043 = vst [vmem:[#allocation47_spill] sm:$0xff] %v9441_v45 }
 0x2a1   : > { %v9443_v44 = vpop.permute.xlu0 %3188 }
 0x2a2   : > { %12044 = vst [vmem:[#allocation48_spill] sm:$0xff] %v9443_v44  ;;  %v9445_v12 = vpop.permute.xlu1 %3192 }
 0x2a3   : > { %12045 = vst [vmem:[#allocation49_spill] sm:$0xff] %v9445_v12 }
 0x2a5   : > { %v9447_v51 = vpop.permute.xlu0 %3196 }
 0x2a6   : > { %12046 = vst [vmem:[#allocation50_spill] sm:$0xff] %v9447_v51  ;;  %v9449_v9 = vpop.permute.xlu1 %3200 }
 0x2a7   : > { %12047 = vst [vmem:[#allocation51_spill] sm:$0xff] %v9449_v9 }
 0x2a9   : > { %v9451_v18 = vpop.permute.xlu0 %3204 }
 0x2aa   : > { %12048 = vst [vmem:[#allocation52_spill] sm:$0xff] %v9451_v18  ;;  %v9453_v25 = vpop.permute.xlu1 %3208 }
 0x2ab   : > { %12049 = vst [vmem:[#allocation53_spill] sm:$0xff] %v9453_v25 }
 0x2ad   : > { %v9455_v21 = vpop.permute.xlu0 %3150 }
 0x2ae   : > { %12050 = vst [vmem:[#allocation54_spill] sm:$0xff] %v9455_v21  ;;  %v9457_v55 = vpop.permute.xlu1 %2509 }
 0x2af   : > { %12051 = vst [vmem:[#allocation55_spill] sm:$0xff] %v9457_v55 }
 0x2b1   : > { %v9459_v19 = vpop.permute.xlu0 %2462 }
 0x2b2   : > { %12052 = vst [vmem:[#allocation56_spill] sm:$0xff] %v9459_v19  ;;  %v9461_v54 = vpop.permute.xlu1 %3154 }
 0x2b3   : > { %12053 = vst [vmem:[#allocation57_spill] sm:$0xff] %v9461_v54 }
 0x2ce   : > { %v1438_v45 = vpop.xlane.xlu0 %1437 }
 0x2cf   : > { %v1532_v44 = vsub.f32 %v9271_v27, %v1438_v45 }
 0x2d0   : > { %v1441_v12 = vpop.xlane.xlu1 %1440 }
 0x2d1   : > { %v1564_v36 = vmul.f32 1.442695, %v1532_v44  ;;  %v1533_v51 = vsub.f32 %v9273_v16, %v1441_v12 }
 0x2d3   : > { %8542 = vpow2.f32 %v1564_v36  ;;  %v1566_v9 = vmul.f32 1.442695, %v1533_v51 }
 0x2d5   : > { %8544 = vpow2.f32 %v1566_v9 }
 0x2d6   : > { %v1444_v18 = vpop.xlane.xlu0 %1443 }
 0x2d7   : > { %v1534_v25 = vsub.f32 %v9279_v23, %v1444_v18 }
 0x2d9   : > { %v1568_v21 = vmul.f32 1.442695, %v1534_v25 }
 0x2da   : > { %v1447_v28 = vpop.xlane.xlu0 %1446 }
 0x2db   : > { %8546 = vpow2.f32 %v1568_v21  ;;  %v1535_v55 = vsub.f32 %v9281_v40, %v1447_v28 }
 0x2dd   : > { %v9467_v19 = vpop.eup %8542  ;;  %v1570_v54 = vmul.f32 1.442695, %v1535_v55 }
 0x2de   : > { %v1450_v35 = vpop.xlane.xlu1 %1449  ;;  %v1628_v45 = vsel %vm1435_vm3, %v9467_v19, 0.0 }
 0x2df   : > { %v9471_v27 = vpop.eup %8544  ;;  %8548 = vpow2.f32 %v1570_v54  ;;  %v1536_v36 = vsub.f32 %v9287_v48, %v1450_v35  ;;  %1629 = vadd.xlane.f32.xlu1 %v1628_v45 }
 0x2e0   : > { %v1453_v16 = vpop.xlane.xlu0 %1452  ;;  %v1631_v23 = vsel %vm1435_vm3, %v9471_v27, 0.0 }
 0x2e1   : > { %v1572_v51 = vmul.f32 1.442695, %v1536_v36  ;;  %v1537_v28 = vsub.f32 %v9289_v1, %v1453_v16  ;;  %1632 = vadd.xlane.f32.xlu0 %v1631_v23 }
 0x2e3   : > { %8550 = vpow2.f32 %v1572_v51  ;;  %v1574_v40 = vmul.f32 1.442695, %v1537_v28 }
 0x2e5   : > { %v9477_v18 = vpop.eup %8546  ;;  %8552 = vpow2.f32 %v1574_v40 }
 0x2e6   : > { %v1456_v25 = vpop.xlane.xlu1 %1455  ;;  %v1634_v12 = vsel %vm1435_vm3, %v9477_v18, 0.0 }
 0x2e7   : > { %v1538_v35 = vsub.f32 %v9295_v58, %v1456_v25  ;;  %1635 = vadd.xlane.f32.xlu1 %v1634_v12 }
 0x2e8   : > { %v1459_v48 = vpop.xlane.xlu0 %1458 }
 0x2e9   : > { %v9482_v21 = vpop.eup %8548  ;;  %v1576_v55 = vmul.f32 1.442695, %v1538_v35  ;;  %v1539_v54 = vsub.f32 %v9297_v59, %v1459_v48 }
 0x2ea   : > { %v1637_v1 = vsel %vm1435_vm3, %v9482_v21, 0.0 }
 0x2eb   : > { %8554 = vpow2.f32 %v1576_v55  ;;  %v1578_v44 = vmul.f32 1.442695, %v1539_v54  ;;  %1638 = vadd.xlane.f32.xlu0 %v1637_v1 }
 0x2ed   : > { %v9487_v9 = vpop.eup %8550  ;;  %8556 = vpow2.f32 %v1578_v44 }
 0x2ee   : > { %v1462_v45 = vpop.xlane.xlu1 %1461  ;;  %v1640_v58 = vsel %vm1435_vm3, %v9487_v9, 0.0 }
 0x2ef   : > { %v9491_v36 = vpop.eup %8552  ;;  %v1540_v16 = vsub.f32 %v9303_v17, %v1462_v45  ;;  %1641 = vadd.xlane.f32.xlu1 %v1640_v58 }
 0x2f0   : > { %v1465_v23 = vpop.xlane.xlu0 %1464  ;;  %v1643_v59 = vsel %vm1435_vm3, %v9491_v36, 0.0 }
 0x2f1   : > { %v1580_v51 = vmul.f32 1.442695, %v1540_v16  ;;  %v1541_v28 = vsub.f32 %v9307_v42, %v1465_v23  ;;  %1644 = vadd.xlane.f32.xlu0 %v1643_v59 }
 0x2f2   : > { %v1486_v40 = vpop.xlane.xlu1 %1485 }
 0x2f3   : > { %8558 = vpow2.f32 %v1580_v51  ;;  %v1582_v25 = vmul.f32 1.442695, %v1541_v28  ;;  %v1548_v12 = vsub.f32 %v9305_v39, %v1486_v40 }
 0x2f4   : > { %v1489_v35 = vpop.xlane.xlu0 %1488 }
 0x2f5   : > { %v9498_v48 = vpop.eup %8554  ;;  %8560 = vpow2.f32 %v1582_v25  ;;  %v1596_v55 = vmul.f32 1.442695, %v1548_v12  ;;  %v1549_v17 = vsub.f32 %v9311_v0, %v1489_v35 }
 0x2f6   : > { %v1468_v54 = vpop.xlane.xlu1 %1467  ;;  %v1646_v1 = vsel %vm1435_vm3, %v9498_v48, 0.0 }
 0x2f7   : > { %v9503_v44 = vpop.eup %8556  ;;  %8562 = vpow2.f32 %v1596_v55  ;;  %v1598_v42 = vmul.f32 1.442695, %v1549_v17  ;;  %v1542_v45 = vsub.f32 %v9319_v14, %v1468_v54  ;;  %1647 = vadd.xlane.f32.xlu1 %v1646_v1 }
 0x2f8   : > { %v1471_v58 = vpop.xlane.xlu0 %1470  ;;  %v1649_v39 = vsel %vm1435_vm3, %v9503_v44, 0.0 }
 0x2f9   : > { %8564 = vpow2.f32 %v1598_v42  ;;  %v1584_v16 = vmul.f32 1.442695, %v1542_v45  ;;  %v1543_v23 = vsub.f32 %v9325_v10, %v1471_v58  ;;  %1650 = vadd.xlane.f32.xlu0 %v1649_v39 }
 0x2fa   : > { %v1498_v0 = vpop.xlane.xlu1 %1497 }
 0x2fb   : > { %8566 = vpow2.f32 %v1584_v16  ;;  %v1586_v59 = vmul.f32 1.442695, %v1543_v23  ;;  %v1552_v51 = vsub.f32 %v9323_v33, %v1498_v0 }
 0x2fc   : > { %v1501_v28 = vpop.xlane.xlu0 %1500 }
 0x2fd   : > { %v9510_v40 = vpop.eup %8558  ;;  %8568 = vpow2.f32 %v1586_v59  ;;  %v1604_v14 = vmul.f32 1.442695, %v1552_v51  ;;  %v1553_v25 = vsub.f32 %v9329_v41, %v1501_v28 }
 0x2fe   : > { %v1474_v12 = vpop.xlane.xlu1 %1473  ;;  %v1652_v35 = vsel %vm1435_vm3, %v9510_v40, 0.0 }
 0x2ff   : > { %v9515_v55 = vpop.eup %8560  ;;  %8570 = vpow2.f32 %v1604_v14  ;;  %v1606_v10 = vmul.f32 1.442695, %v1553_v25  ;;  %v1544_v17 = vsub.f32 %v9337_v49, %v1474_v12  ;;  %1653 = vadd.xlane.f32.xlu1 %v1652_v35 }
 0x300   : > { %v1477_v54 = vpop.xlane.xlu0 %1476  ;;  %v1655_v33 = vsel %vm1435_vm3, %v9515_v55, 0.0 }
 0x301   : > { %v9520_v1 = vpop.eup %8562  ;;  %8572 = vpow2.f32 %v1606_v10  ;;  %v1588_v42 = vmul.f32 1.442695, %v1544_v17  ;;  %v1545_v41 = vsub.f32 %v9343_v60, %v1477_v54  ;;  %1656 = vadd.xlane.f32.xlu0 %v1655_v33 }
 0x302   : > { %v1510_v45 = vpop.xlane.xlu1 %1509  ;;  %v1676_v58 = vsel %vm1435_vm3, %v9520_v1, 0.0 }
 0x303   : > { %v9525_v39 = vpop.eup %8564  ;;  %8574 = vpow2.f32 %v1588_v42  ;;  %v1590_v49 = vmul.f32 1.442695, %v1545_v41  ;;  %v1556_v16 = vsub.f32 %v9341_v32, %v1510_v45  ;;  %1677 = vadd.xlane.f32.xlu1 %v1676_v58 }
 0x304   : > { %v1513_v23 = vpop.xlane.xlu0 %1512  ;;  %v1679_v0 = vsel %vm1435_vm3, %v9525_v39, 0.0 }
 0x305   : > { %v9530_v59 = vpop.eup %8566  ;;  %8576 = vpow2.f32 %v1590_v49  ;;  %v1612_v60 = vmul.f32 1.442695, %v1556_v16  ;;  %v1557_v51 = vsub.f32 %v9347_v6, %v1513_v23  ;;  %1680 = vadd.xlane.f32.xlu0 %v1679_v0 }
 0x306   : > { %v1480_v28 = vpop.xlane.xlu1 %1479  ;;  %v1658_v14 = vsel %vm1435_vm3, %v9530_v59, 0.0 }
 0x307   : > { %v9535_v25 = vpop.eup %8568  ;;  %8578 = vpow2.f32 %v1612_v60  ;;  %v1614_v32 = vmul.f32 1.442695, %v1557_v51  ;;  %v1546_v12 = vsub.f32 %v9357_v38, %v1480_v28  ;;  %1659 = vadd.xlane.f32.xlu1 %v1658_v14 }
 0x308   : > { %v1483_v35 = vpop.xlane.xlu0 %1482  ;;  %v1661_v10 = vsel %vm1435_vm3, %v9535_v25, 0.0 }
 0x309   : > { %v9540_v17 = vpop.eup %8570  ;;  %8580 = vpow2.f32 %v1614_v32  ;;  %v1592_v6 = vmul.f32 1.442695, %v1546_v12  ;;  %v1547_v54 = vsub.f32 %v9363_v26, %v1483_v35  ;;  %1662 = vadd.xlane.f32.xlu0 %v1661_v10 }
 0x30a   : > { %v1522_v33 = vpop.xlane.xlu1 %1521  ;;  %v1688_v42 = vsel %vm1435_vm3, %v9540_v17, 0.0 }
 0x30b   : > { %v9545_v41 = vpop.eup %8572  ;;  %8582 = vpow2.f32 %v1592_v6  ;;  %v1594_v38 = vmul.f32 1.442695, %v1547_v54  ;;  %v1560_v45 = vsub.f32 %v9361_v31, %v1522_v33  ;;  %1689 = vadd.xlane.f32.xlu1 %v1688_v42 }
 0x30c   : > { %v1525_v58 = vpop.xlane.xlu0 %1524  ;;  %v1691_v49 = vsel %vm1435_vm3, %v9545_v41, 0.0 }
 0x30d   : > { %v9550_v16 = vpop.eup %8574  ;;  %8584 = vpow2.f32 %v1594_v38  ;;  %v1620_v26 = vmul.f32 1.442695, %v1560_v45  ;;  %v1561_v23 = vsub.f32 %v9367_v15, %v1525_v58  ;;  %1692 = vadd.xlane.f32.xlu0 %v1691_v49 }
 0x30e   : > { %v1492_v0 = vpop.xlane.xlu1 %1491  ;;  %v1664_v60 = vsel %vm1435_vm3, %v9550_v16, 0.0 }
 0x30f   : > { %v9555_v51 = vpop.eup %8576  ;;  %8586 = vpow2.f32 %v1620_v26  ;;  %v1622_v31 = vmul.f32 1.442695, %v1561_v23  ;;  %v1550_v28 = vsub.f32 %v9377_v53, %v1492_v0  ;;  %1665 = vadd.xlane.f32.xlu1 %v1664_v60 }
 0x310   : > { %v1495_v14 = vpop.xlane.xlu0 %1494  ;;  %v1667_v32 = vsel %vm1435_vm3, %v9555_v51, 0.0 }
 0x311   : > { %v9560_v12 = vpop.eup %8578  ;;  %8588 = vpow2.f32 %v1622_v31  ;;  %v1600_v15 = vmul.f32 1.442695, %v1550_v28  ;;  %v1551_v35 = vsub.f32 %v9381_v8, %v1495_v14  ;;  %1668 = vadd.xlane.f32.xlu0 %v1667_v32 }
 0x312   : > { %v1700_v10 = vsel %vm1435_vm3, %v9560_v12, 0.0 }
 0x313   : > { %v9565_v6 = vpop.eup %8580  ;;  %8590 = vpow2.f32 %v1600_v15  ;;  %v1602_v54 = vmul.f32 1.442695, %v1551_v35  ;;  %1701 = vadd.xlane.f32.xlu1 %v1700_v10 }
 0x314   : > { %v1703_v53 = vsel %vm1435_vm3, %v9565_v6, 0.0 }
 0x315   : > { %v9569_v33 = vpop.eup %8582  ;;  %8592 = vpow2.f32 %v1602_v54  ;;  %1704 = vadd.xlane.f32.xlu0 %v1703_v53 }
 0x316   : > { %v1504_v42 = vpop.xlane.xlu1 %1503  ;;  %v1670_v8 = vsel %vm1435_vm3, %v9569_v33, 0.0 }
 0x317   : > { %v9573_v38 = vpop.eup %8584  ;;  %v1554_v45 = vsub.f32 %v9391_v22, %v1504_v42  ;;  %1671 = vadd.xlane.f32.xlu1 %v1670_v8 }
 0x318   : > { %v1507_v58 = vpop.xlane.xlu0 %1506  ;;  %v1673_v49 = vsel %vm1435_vm3, %v9573_v38, 0.0 }
 0x319   : > { %v9578_v26 = vpop.eup %8586  ;;  %v1608_v23 = vmul.f32 1.442695, %v1554_v45  ;;  %v1555_v0 = vsub.f32 %v9395_v20, %v1507_v58  ;;  %1674 = vadd.xlane.f32.xlu0 %v1673_v49 }
 0x31a   : > { %12054 = vst [vmem:[#allocation58_spill] sm:$0xff] %v9578_v26  ;;  %v1712_v60 = vsel %vm1435_vm3, %v9578_v26, 0.0  ;;  %v12098_v26 = vld [vmem:[#allocation46_spill] sm:$0xff] }
 0x31b   : > { %v9583_v31 = vpop.eup %8588  ;;  %8594 = vpow2.f32 %v1608_v23  ;;  %v1610_v28 = vmul.f32 1.442695, %v1555_v0  ;;  %1713 = vadd.xlane.f32.xlu1 %v1712_v60 }
 0x31c   : > { %v1715_v22 = vsel %vm1435_vm3, %v9583_v31, 0.0 }
 0x31d   : > { %v9587_v14 = vpop.eup %8590  ;;  %8596 = vpow2.f32 %v1610_v28  ;;  %1716 = vadd.xlane.f32.xlu0 %v1715_v22 }
 0x31e   : > { %v1516_v32 = vpop.xlane.xlu1 %1515  ;;  %v1682_v20 = vsel %vm1435_vm3, %v9587_v14, 0.0 }
 0x31f   : > { %v9591_v15 = vpop.eup %8592  ;;  %v1558_v35 = vsub.f32 %v9405_v62, %v1516_v32  ;;  %1683 = vadd.xlane.f32.xlu1 %v1682_v20 }
 0x320   : > { %v1519_v10 = vpop.xlane.xlu0 %1518  ;;  %v1685_v54 = vsel %vm1435_vm3, %v9591_v15, 0.0 }
 0x321   : > { %v1616_v53 = vmul.f32 1.442695, %v1558_v35  ;;  %v1559_v42 = vsub.f32 %v9409_v63, %v1519_v10  ;;  %1686 = vadd.xlane.f32.xlu0 %v1685_v54 }
 0x323   : > { %8598 = vpow2.f32 %v1616_v53  ;;  %v1618_v8 = vmul.f32 1.442695, %v1559_v42 }
 0x325   : > { %v9597_v45 = vpop.eup %8594  ;;  %8600 = vpow2.f32 %v1618_v8 }
 0x326   : > { %v1694_v58 = vsel %vm1435_vm3, %v9597_v45, 0.0  ;;  %v1528_v28 = vpop.xlane.xlu1 %1527 }
 0x327   : > { %v9601_v49 = vpop.eup %8596  ;;  %1695 = vadd.xlane.f32.xlu1 %v1694_v58  ;;  %v1562_v32 = vsub.f32 %v9419_v61, %v1528_v28 }
 0x328   : > { %v1697_v62 = vsel %vm1435_vm3, %v9601_v49, 0.0  ;;  %v1531_v22 = vpop.xlane.xlu0 %1530 }
 0x329   : > { %1698 = vadd.xlane.f32.xlu0 %v1697_v62  ;;  %v1563_v20 = vsub.f32 %v9421_v43, %v1531_v22  ;;  %v1624_v35 = vmul.f32 1.442695, %v1562_v32 }
 0x32b   : > { %v1626_v10 = vmul.f32 1.442695, %v1563_v20  ;;  %8602 = vpow2.f32 %v1624_v35 }
 0x32d   : > { %v9605_v23 = vpop.eup %8598  ;;  %8604 = vpow2.f32 %v1626_v10  ;;  %v12059_v10 = vmov 0.0  }
 0x32e   : > { %12055 = vst [vmem:[#allocation59_spill] sm:$0xff] %v9605_v23  ;;  %v1706_v63 = vsel %vm1435_vm3, %v9605_v23, 0.0 }
 0x32f   : > { %v9609_v0 = vpop.eup %8600  ;;  %1707 = vadd.xlane.f32.xlu1 %v1706_v63 }
 0x330   : > { %12056 = vst [vmem:[#allocation60_spill] sm:$0xff] %v9609_v0  ;;  %v1709_v60 = vsel %vm1435_vm3, %v9609_v0, 0.0 }
 0x331   : > { %1710 = vadd.xlane.f32.xlu0 %v1709_v60 }
 0x335   : > { %v9619_v54 = vpop.eup %8602 }
 0x336   : > { %12057 = vst [vmem:[#allocation61_spill] sm:$0xff] %v9619_v54  ;;  %v1718_v42 = vsel %vm1435_vm3, %v9619_v54, 0.0 }
 0x337   : > { %v9621_v53 = vpop.eup %8604 }
 0x338   : > { %12058 = vst [vmem:[#allocation62_spill] sm:$0xff] %v9621_v53  ;;  %v1721_v8 = vsel %vm1435_vm3, %v9621_v53, 0.0  ;;  %v12073_v53 = vld [vmem:[#allocation32_spill] sm:$0xff] }
 0x340   : > { %3162 = vrot.lane.b32.xlu1 %v8947_v37, %s8808_s7 }
 0x347   : > { %3158 = vrot.lane.b32.xlu0 %v8936_v34, %s8808_s7 }
 0x364   : > { %1719 = vadd.xlane.f32.xlu1 %v1718_v42 }
 0x366   : > { %1722 = vadd.xlane.f32.xlu0 %v1721_v8 }
 0x36c   : > { %v1630_v58 = vpop.xlane.xlu1 %1629 }
 0x36d   : > { %8606 = vrcp.f32 %v1630_v58 }
 0x36e   : > { %v1633_v61 = vpop.xlane.xlu0 %1632 }
 0x36f   : > { %8608 = vrcp.f32 %v1633_v61 }
 0x374   : > { %v1636_v43 = vpop.xlane.xlu1 %1635 }
 0x375   : > { %3170 = vrot.lane.b32.xlu1 %v8966_v46, %s8808_s7  ;;  %8610 = vrcp.f32 %v1636_v43 }
 0x377   : > { %v8607_v62 = vpop.eup %8606 }
 0x378   : > { %v1639_v63 = vpop.xlane.xlu0 %1638  ;;  %v1756_v28 = vmul.f32 %v8607_v62, %v9467_v19 }
 0x379   : > { %v8609_v60 = vpop.eup %8608  ;;  %8612 = vrcp.f32 %v1639_v63  ;;  %3178 = vrot.lane.b32.xlu1 %v8992_v56, %s8808_s7 }
 0x37a   : > { %v1757_v22 = vmul.f32 %v8609_v60, %v9471_v27 }
 0x37c   : > { %v1642_v32 = vpop.xlane.xlu1 %1641  ;;  %3166 = vrot.lane.b32.xlu0 %v8969_v47, %s8808_s7  ;;  %v1788_v20 = vpack.c.bf16 %v1757_v22, %v1756_v28  ;;  %v12060_v22 = vld [vmem:[#allocation7_spill] sm:$0xff] }
 0x37d   : > { %8614 = vrcp.f32 %v1642_v32  ;;  %3186 = vrot.lane.b32.xlu1 %v9016_v2, %s8808_s7 }
 0x37e   : > { %8124 = vmatmul.mubr.msk.bf16.vlgmr.msra.gmra.mrb[16].mxu0 %vm1435_vm3, %v1788_v20  ;;  %v1645_v35 = vpop.xlane.xlu0 %1644 }
 0x37f   : > { %8134 = vmatpush3.bf16.msra.mxu0 %v9317_v7  ;;  %8616 = vrcp.f32 %v1645_v35  ;;  %8135 = vmatprep.mubr.msk.bf16.mxu0 %vm8807_vm2, %v12059_v10  ;;  %v8611_v19 = vpop.eup %8610 }
 0x380   : > { %3174 = vrot.lane.b32.xlu0 %v8995_v57, %s8808_s7  ;;  %8145 = vmatprep.subr.bf16.mxu0 %v12059_v10  ;;  %v1758_v42 = vmul.f32 %v8611_v19, %v9477_v18  ;;  %v12061_v19 = vld [vmem:[#allocation5_spill] sm:$0xff] }
 0x381   : > { %3194 = vrot.lane.b32.xlu1 %v9043_v13, %s8808_s7 }
 0x383   : > { %v8613_v27 = vpop.eup %8612 }
 0x384   : > { %v1759_v8 = vmul.f32 %v8613_v27, %v9482_v21  ;;  %v1648_v58 = vpop.xlane.xlu1 %1647  ;;  %3182 = vrot.lane.b32.xlu0 %v9019_v3, %s8808_s7 }
 0x385   : > { %8618 = vrcp.f32 %v1648_v58  ;;  %3202 = vrot.lane.b32.xlu1 %v9064_v29, %s8808_s7 }
 0x386   : > { %v1651_v7 = vpop.xlane.xlu0 %1650  ;;  %v1789_v61 = vpack.c.bf16 %v1759_v8, %v1758_v42  ;;  %v12062_v42 = vld [vmem:[#allocation8_spill] sm:$0xff] }
 0x387   : > { %v8615_v43 = vpop.eup %8614  ;;  %8620 = vrcp.f32 %v1651_v7  ;;  %v12063_v7 = vld [vmem:[#allocation30_spill] sm:$0xff] }
 0x388   : > { %3190 = vrot.lane.b32.xlu0 %v9037_v11, %s8808_s7  ;;  %8130 = vmatmul.mubr.msk.bf16.vlgmr.msra.gmra.mrb[80].mxu1 %vm1435_vm3, %v1789_v61  ;;  %v1760_v21 = vmul.f32 %v8615_v43, %v9487_v9  ;;  %v12065_v43 = vld [vmem:[#allocation10_spill] sm:$0xff] }
 0x389   : > { %v8617_v18 = vpop.eup %8616  ;;  %8140 = vmatpush3.bf16.msra.mxu1 %v9351_v5  ;;  %3210 = vrot.lane.b32.xlu1 %v9085_v50, %s8808_s7 }
 0x38a   : > { %v1761_v62 = vmul.f32 %v8617_v18, %v9491_v36  ;;  %8141 = vmatprep.mubr.msk.bf16.mxu1 %vm8807_vm2, %v12059_v10  ;;  %8151 = vmatprep.subr.bf16.mxu1 %v12059_v10 }
 0x38c   : > { %v1654_v63 = vpop.xlane.xlu1 %1653  ;;  %3198 = vrot.lane.b32.xlu0 %v9067_v30, %s8808_s7  ;;  %v1790_v60 = vpack.c.bf16 %v1761_v62, %v1760_v21 }
 0x38d   : > { %8622 = vrcp.f32 %v1654_v63  ;;  %3804 = vrot.lane.b32.xlu1 %v8914_v24, %s8809_s8 }
 0x38e   : > { %8136 = vmatmul.mubr.msk.bf16.vlgmr.msra.gmra.mrb[20].mxu0 %vm1435_vm3, %v1790_v60  ;;  %v1657_v5 = vpop.xlane.xlu0 %1656  ;;  %v12066_v60 = vld [vmem:[#allocation14_spill] sm:$0xff] }
 0x38f   : > { %v8619_v9 = vpop.eup %8618  ;;  %8146 = vmatpush3.bf16.msra.mxu0 %v9335_v4  ;;  %8624 = vrcp.f32 %v1657_v5  ;;  %8147 = vmatprep.mubr.msk.bf16.mxu0 %vm8807_vm2, %v12059_v10 }
 0x390   : > { %v1678_v36 = vpop.xlane.xlu1 %1677  ;;  %3206 = vrot.lane.b32.xlu0 %v9088_v52, %s8808_s7  ;;  %8157 = vmatprep.subr.bf16.mxu0 %v12059_v10  ;;  %v1762_v32 = vmul.f32 %v8619_v9, %v9498_v48  ;;  %v12067_v9 = vld [vmem:[#allocation13_spill] sm:$0xff]  ;;  %v8811_v52 = vmov 1934713408  }
 0x391   : > { %v8621_v28 = vpop.eup %8620  ;;  %3812 = vrot.lane.b32.xlu1 %v12060_v22, %s8809_s8  ;;  %v2623_v50 = vunpack.c.l.s4 %v8811_v52  ;;  %v12078_v52 = vld [vmem:[#allocation31_spill] sm:$0xff] }
 0x392   : > { %v1763_v20 = vmul.f32 %v8621_v28, %v9503_v44  ;;  %v1681_v35 = vpop.xlane.xlu0 %1680  ;;  %v12064_v44 = vld [vmem:[#allocation11_spill] sm:$0xff] }
 0x394   : > { %v1660_v4 = vpop.xlane.xlu1 %1659  ;;  %3808 = vrot.lane.b32.xlu0 %v12061_v19, %s8809_s8  ;;  %v1791_v27 = vpack.c.bf16 %v1763_v20, %v1762_v32  ;;  %v12068_v20 = vld [vmem:[#allocation29_spill] sm:$0xff] }
 0x395   : > { %8626 = vrcp.f32 %v1660_v4  ;;  %3816 = vrot.lane.b32.xlu1 %v12062_v42, %s8809_s8 }
 0x396   : > { %8142 = vmatmul.mubr.msk.bf16.vlgmr.msra.gmra.mrb[84].mxu1 %vm1435_vm3, %v1791_v27  ;;  %v1663_v8 = vpop.xlane.xlu0 %1662  ;;  %v12070_v27 = vld [vmem:[#allocation16_spill] sm:$0xff] }
 0x397   : > { %v8623_v58 = vpop.eup %8622  ;;  %8152 = vmatpush3.bf16.msra.mxu1 %v12063_v7  ;;  %8628 = vrcp.f32 %v1663_v8  ;;  %8153 = vmatprep.mubr.msk.bf16.mxu1 %vm8807_vm2, %v12059_v10 }
 0x398   : > { %v1690_v48 = vpop.xlane.xlu1 %1689  ;;  %3820 = vrot.lane.b32.xlu0 %v12064_v44, %s8809_s8  ;;  %8163 = vmatprep.subr.bf16.mxu1 %v12059_v10  ;;  %v1764_v18 = vmul.f32 %v8623_v58, %v9510_v40 }
 0x399   : > { %v8625_v61 = vpop.eup %8624  ;;  %3824 = vrot.lane.b32.xlu1 %v12065_v43, %s8809_s8 }
 0x39a   : > { %v1765_v21 = vmul.f32 %v8625_v61, %v9515_v55  ;;  %v1693_v62 = vpop.xlane.xlu0 %1692  ;;  %v12069_v55 = vld [vmem:[#allocation17_spill] sm:$0xff]  ;;  %v8810_v61 = vmov 1983009808  }
 0x39c   : > { %v1666_v63 = vpop.xlane.xlu1 %1665  ;;  %3828 = vrot.lane.b32.xlu0 %v12066_v60, %s8809_s8  ;;  %v1792_v5 = vpack.c.bf16 %v1765_v21, %v1764_v18  ;;  %v2559_v18 = vunpack.c.l.s4 %v8810_v61  ;;  %v2561_v21 = vlaneseq }
 0x39d   : > { %8630 = vrcp.f32 %v1666_v63  ;;  %3832 = vrot.lane.b32.xlu1 %v12067_v9, %s8809_s8 }
 0x39e   : > { %8148 = vmatmul.mubr.msk.bf16.vlgmr.msra.gmra.mrb[24].mxu0 %vm1435_vm3, %v1792_v5  ;;  %v1669_v28 = vpop.xlane.xlu0 %1668  ;;  %v12071_v5 = vld [vmem:[#allocation19_spill] sm:$0xff] }
 0x39f   : > { %v8627_v32 = vpop.eup %8626  ;;  %8158 = vmatpush3.bf16.msra.mxu0 %v12068_v20  ;;  %8632 = vrcp.f32 %v1669_v28  ;;  %8159 = vmatprep.mubr.msk.bf16.mxu0 %vm8807_vm2, %v12059_v10  ;;  %v12072_v20 = vld [vmem:[#allocation20_spill] sm:$0xff] }
 0x3a0   : > { %v9701_v40 = vpop.xlane.xlu1 %1701  ;;  %3836 = vrot.lane.b32.xlu0 %v12069_v55, %s8809_s8  ;;  %8169 = vmatprep.subr.bf16.mxu0 %v12059_v10  ;;  %v1766_v8 = vmul.f32 %v8627_v32, %v9530_v59  ;;  %8634 = vrcp.f32 %v1681_v35  ;;  %v2560_v32 = vunpack.c.0.s8 %v2559_v18  ;;  %v12074_v35 = vld [vmem:[#allocation23_spill] sm:$0xff] }
 0x3a1   : > { %v8629_v4 = vpop.eup %8628  ;;  %3840 = vrot.lane.b32.xlu1 %v12070_v27, %s8809_s8  ;;  %8636 = vrcp.f32 %v1678_v36 }
 0x3a2   : > { %v1767_v58 = vmul.f32 %v8629_v4, %v9535_v25  ;;  %v9710_v7 = vpop.xlane.xlu0 %1704  ;;  %v2562_v4 = vshrl.u32 %v2561_v21, 7 }
 0x3a4   : > { %v1672_v63 = vpop.xlane.xlu1 %1671  ;;  %3844 = vrot.lane.b32.xlu0 %v12071_v5, %s8809_s8  ;;  %v1793_v28 = vpack.c.bf16 %v1767_v58, %v1766_v8  ;;  %v12075_v58 = vld [vmem:[#allocation22_spill] sm:$0xff]  ;;  %v9731_v21 = vsub.s32 %v2560_v32, %v2562_v4 }
 0x3a5   : > { %8638 = vrcp.f32 %v1672_v63  ;;  %3848 = vrot.lane.b32.xlu1 %v12072_v20, %s8809_s8  ;;  %v2572_v63 = vcombine.low %v12061_v19, %v12062_v42 }
 0x3a6   : > { %8154 = vmatmul.mubr.msk.bf16.vlgmr.msra.gmra.mrb[88].mxu1 %vm1435_vm3, %v1793_v28  ;;  %v1675_v59 = vpop.xlane.xlu0 %1674 }
 0x3a7   : > { %v8631_v25 = vpop.eup %8630  ;;  %8164 = vmatpush3.bf16.msra.mxu1 %v12073_v53  ;;  %8640 = vrcp.f32 %v1675_v59  ;;  %8165 = vmatprep.mubr.msk.bf16.mxu1 %vm8807_vm2, %v12059_v10  ;;  %v12076_v59 = vld [vmem:[#allocation28_spill] sm:$0xff]  ;;  %v9754_v23 = vrot.slane %v2572_v63, %v9731_v21 }
 0x3a8   : > { %v9720_v36 = vpop.xlane.xlu1 %1713  ;;  %3852 = vrot.lane.b32.xlu0 %v12074_v35, %s8809_s8  ;;  %8175 = vmatprep.subr.bf16.mxu1 %v12059_v10  ;;  %v1768_v61 = vmul.f32 %v8631_v25, %v9550_v16  ;;  %8642 = vrcp.f32 %v1693_v62  ;;  %v2556_v16 = vcombine.low %v8914_v24, %v12060_v22  ;;  %v2588_v62 = vcombine.low %v12064_v44, %v12066_v60  ;;  %v12091_v22 = vld [vmem:[#allocation52_spill] sm:$0xff]  ;;  %v12092_v24 = vld [vmem:[#allocation50_spill] sm:$0xff] }
 0x3a9   : > { %v8633_v8 = vpop.eup %8632  ;;  %3856 = vrot.lane.b32.xlu1 %v12075_v58, %s8809_s8  ;;  %8644 = vrcp.f32 %v1690_v48  ;;  %v12077_v48 = vld [vmem:[#allocation25_spill] sm:$0xff] }
 0x3aa   : > { %v1769_v18 = vmul.f32 %v8633_v8, %v9555_v51  ;;  %v9729_v53 = vpop.xlane.xlu0 %1716  ;;  %v8635_v29 = vpop.eup %8634  ;;  %v2604_v51 = vcombine.low %v12065_v43, %v12067_v9 }
 0x3ab   : > { %v8637_v25 = vpop.eup %8636 }
 0x3ac   : > { %v1684_v28 = vpop.xlane.xlu1 %1683  ;;  %3860 = vrot.lane.b32.xlu0 %v12076_v59, %s8809_s8  ;;  %v1794_v54 = vpack.c.bf16 %v1769_v18, %v1768_v61  ;;  %v1773_v61 = vmul.f32 %v8635_v29, %v9525_v39  ;;  %v12079_v18 = vld [vmem:[#allocation4_spill] sm:$0xff]  ;;  %v12080_v29 = vld [vmem:[#allocation3_spill] sm:$0xff]  ;;  %v2708_v39 = vcombine.low %v12070_v27, %v12072_v20  ;;  %v12094_v20 = vld [vmem:[#allocation38_spill] sm:$0xff] }
 0x3ad   : > { %8646 = vrcp.f32 %v1684_v28  ;;  %3864 = vrot.lane.b32.xlu1 %v12077_v48, %s8809_s8  ;;  %v2624_v28 = vunpack.c.0.s8 %v2623_v50  ;;  %v1772_v50 = vmul.f32 %v8637_v25, %v9520_v1  ;;  %v12087_v1 = vld [vmem:[#allocation45_spill] sm:$0xff] }
 0x3ae   : > { %8160 = vmatmul.mubr.msk.bf16.vlgmr.msra.gmra.mrb[28].mxu0 %vm1435_vm3, %v1794_v54  ;;  %v1687_v32 = vpop.xlane.xlu0 %1686  ;;  %v9757_v54 = vrot.slane %v2556_v16, %v9731_v21  ;;  %v2692_v16 = vcombine.low %v12069_v55, %v12071_v5  ;;  %v9791_v25 = vrot.slane %v2708_v39, %v9731_v21  ;;  %v12083_v39 = vld [vmem:[#allocation41_spill] sm:$0xff]  ;;  %v3412_v55 = vcombine.low %v12092_v24, %v12091_v22  ;;  %v12093_v5 = vld [vmem:[#allocation40_spill] sm:$0xff] }
 0x3af   : > { %v8639_v8 = vpop.eup %8638  ;;  %8170 = vmatpush3.bf16.msra.mxu0 %v12078_v52  ;;  %8648 = vrcp.f32 %v1687_v32  ;;  %8171 = vmatprep.mubr.msk.bf16.mxu0 %vm8807_vm2, %v12059_v10  ;;  %v9760_v32 = vrot.slane %v2604_v51, %v9731_v21  ;;  %v9763_v52 = vrot.slane %v2588_v62, %v9731_v21 }
 0x3b0   : > { %3810 = vrot.lane.b32.xlu0 %v12079_v18, %s8809_s8  ;;  %8181 = vmatprep.subr.bf16.mxu0 %v12059_v10  ;;  %v1770_v63 = vmul.f32 %v8639_v8, %v9569_v33  ;;  %8650 = vrcp.f32 %v9710_v7  ;;  %v12086_v33 = vld [vmem:[#allocation51_spill] sm:$0xff] }
 0x3b1   : > { %v8641_v0 = vpop.eup %8640  ;;  %3806 = vrot.lane.b32.xlu1 %v12080_v29, %s8809_s8  ;;  %8652 = vrcp.f32 %v9701_v40  ;;  %v1796_v29 = vpack.c.bf16 %v1773_v61, %v1772_v50  ;;  %v12081_v50 = vld [vmem:[#allocation34_spill] sm:$0xff] }
 0x3b2   : > { %v1771_v18 = vmul.f32 %v8641_v0, %v9573_v38  ;;  %v8643_v27 = vpop.eup %8642  ;;  %v9784_v38 = vsub.s32 %v2624_v28, %v2562_v4  ;;  %v2740_v4 = vcombine.low %v12075_v58, %v12077_v48  ;;  %v2724_v28 = vcombine.low %v12074_v35, %v12076_v59  ;;  %v12095_v59 = vld [vmem:[#allocation44_spill] sm:$0xff]  ;;  %v12096_v58 = vld [vmem:[#allocation42_spill] sm:$0xff] }
 0x3b3   : > { %v8645_v0 = vpop.eup %8644  ;;  %v3244_v35 = vcombine.low %v12094_v20, %v12093_v5  ;;  %v3276_v48 = vcombine.low %v12096_v58, %v12095_v59 }
 0x3b4   : > { %v1696_v51 = vpop.xlane.xlu1 %1695  ;;  %3822 = vrot.lane.b32.xlu0 %v8969_v47, %s8809_s8  ;;  %v1795_v62 = vpack.c.bf16 %v1771_v18, %v1770_v63  ;;  %v9796_v18 = vrot.slane %v2692_v16, %v9731_v21  ;;  %v12082_v63 = vld [vmem:[#allocation33_spill] sm:$0xff]  ;;  %v1777_v16 = vmul.f32 %v8643_v27, %v9545_v41  ;;  %v1776_v41 = vmul.f32 %v8645_v0, %v9540_v17 }
 0x3b5   : > { %8654 = vrcp.f32 %v1696_v51  ;;  %3814 = vrot.lane.b32.xlu1 %v8936_v34, %s8809_s8  ;;  %v12084_v51 = vld [vmem:[#allocation39_spill] sm:$0xff] }
 0x3b6   : > { %8166 = vmatmul.mubr.msk.bf16.vlgmr.msra.gmra.mrb[92].mxu1 %vm1435_vm3, %v1795_v62  ;;  %8172 = vmatmul.mubr.msk.bf16.vlgmr.msra.gmra.mrb[32].mxu0 %vm1435_vm3, %v1796_v29  ;;  %v1699_v8 = vpop.xlane.xlu0 %1698  ;;  %v3260_v62 = vcombine.low %v12084_v51, %v12083_v39  ;;  %v12085_v29 = vld [vmem:[#allocation53_spill] sm:$0xff]  ;;  %v1798_v0 = vpack.c.bf16 %v1777_v16, %v1776_v41  ;;  %v9863_v16 = vrot.slane %v3244_v35, %v9731_v21 }
 0x3b7   : > { %v8647_v61 = vpop.eup %8646  ;;  %8176 = vmatpush3.bf16.msra.mxu1 %v12081_v50  ;;  %8182 = vmatpush3.bf16.msra.mxu0 %v12082_v63  ;;  %8656 = vrcp.f32 %v1699_v8  ;;  %v3428_v7 = vcombine.low %v12086_v33, %v12085_v29  ;;  %v12088_v50 = vld [vmem:[#allocation43_spill] sm:$0xff]  ;;  %v12089_v63 = vld [vmem:[#allocation49_spill] sm:$0xff]  ;;  %v9866_v41 = vrot.slane %v3276_v48, %v9731_v21 }
 0x3b8   : > { %3830 = vrot.lane.b32.xlu0 %v8995_v57, %s8809_s8  ;;  %8177 = vmatprep.mubr.msk.bf16.mxu1 %vm8807_vm2, %v12059_v10  ;;  %v3292_v47 = vcombine.low %v12088_v50, %v12087_v1  ;;  %v12090_v8 = vld [vmem:[#allocation47_spill] sm:$0xff]  ;;  %v1774_v27 = vmul.f32 %v8647_v61, %v9587_v14  ;;  %8658 = vrcp.f32 %v9729_v53  ;;  %v9842_v61 = vrot.slane %v3260_v62, %v9731_v21 }
 0x3b9   : > { %v8649_v40 = vpop.eup %8648  ;;  %v3396_v34 = vcombine.low %v12090_v8, %v12089_v63  ;;  %3818 = vrot.lane.b32.xlu1 %v8947_v37, %s8809_s8  ;;  %8183 = vmatprep.mubr.msk.bf16.mxu0 %vm8807_vm2, %v12059_v10  ;;  %v12097_v37 = vld [vmem:[#allocation48_spill] sm:$0xff]  ;;  %v9836_v17 = vrot.slane %v3428_v7, %v9731_v21  ;;  %8660 = vrcp.f32 %v9720_v36  ;;  %v2756_v7 = vcombine.low %v9796_v18, %v9791_v25 }
 0x3ba   : > { %v1775_v57 = vmul.f32 %v8649_v40, %v9591_v15  ;;  %8187 = vmatprep.subr.bf16.mxu1 %v12059_v10  ;;  %8193 = vmatprep.subr.bf16.mxu0 %v12059_v10  ;;  %v3380_v13 = vcombine.low %v12098_v26, %v12097_v37  ;;  %v8651_v40 = vpop.eup %8650  ;;  %v9845_v20 = vrot.slane %v3292_v47, %v9731_v21 }
 0x3bb   : > { %v9848_v53 = vrot.slane %v3396_v34, %v9731_v21  ;;  %v8653_v36 = vpop.eup %8652  ;;  %v9858_v62 = vrot.slane %v3412_v55, %v9731_v21  ;;  %v9874_v55 = vrot.slane %v2724_v28, %v9731_v21  ;;  %v1781_v35 = vmul.f32 %v8651_v40, %v9565_v6 }
 0x3bc   : > { %v1708_v14 = vpop.xlane.xlu1 %1707  ;;  %3838 = vrot.lane.b32.xlu0 %v9019_v3, %s8809_s8  ;;  %v1797_v15 = vpack.c.bf16 %v1775_v57, %v1774_v27  ;;  %v9855_v57 = vrot.slane %v2740_v4, %v9731_v21  ;;  %v9869_v27 = vrot.slane %v3380_v13, %v9731_v21  ;;  %v12099_v4 = vld [vmem:[#allocation35_spill] sm:$0xff]  ;;  %v3308_v48 = vcombine.low %v9863_v16, %v9842_v61 }
 0x3bd   : > { %8662 = vrcp.f32 %v1708_v14  ;;  %3826 = vrot.lane.b32.xlu1 %v8966_v46, %s8809_s8  ;;  %v12100_v14 = vld [vmem:[#allocation36_spill] sm:$0xff]  ;;  %v1780_v6 = vmul.f32 %v8653_v36, %v9560_v12  ;;  %v2605_v12 = vcombine.high %v12065_v43, %v12067_v9  ;;  %v12103_v3 = vcombine.low %v9763_v52, %v9760_v32 }
 0x3be   : > { %8178 = vmatmul.mubr.msk.bf16.vlgmr.msra.gmra.mrb[96].mxu1 %vm1435_vm3, %v1797_v15  ;;  %8184 = vmatmul.mubr.msk.bf16.vlgmr.msra.gmra.mrb[36].mxu0 %vm1435_vm3, %v1798_v0  ;;  %v1711_v34 = vpop.xlane.xlu0 %1710  ;;  %v3476_v15 = vcombine.low %v9858_v62, %v9836_v17  ;;  %v3340_v0 = vcombine.low %v9866_v41, %v9845_v20  ;;  %v3444_v28 = vcombine.low %v9869_v27, %v9848_v53 }
 0x3bf   : > { %v8655_v47 = vpop.eup %8654  ;;  %8188 = vmatpush3.bf16.msra.mxu1 %v12099_v4  ;;  %8194 = vmatpush3.bf16.msra.mxu0 %v12100_v14  ;;  %8664 = vrcp.f32 %v1711_v34  ;;  %v12101_v4 = vcombine.high %v12061_v19, %v12062_v42  ;;  %v1800_v42 = vpack.c.bf16 %v1781_v35, %v1780_v6  ;;  %v9932_v36 = vrot.slane %v12103_v3, %v9784_v38 }
 0x3c0   : > { %3846 = vrot.lane.b32.xlu0 %v9037_v11, %s8809_s8  ;;  %8189 = vmatprep.mubr.msk.bf16.mxu1 %vm8807_vm2, %v12059_v10  ;;  %v1778_v40 = vmul.f32 %v8655_v47, %v9597_v45  ;;  %v12102_v45 = vcombine.low %v9757_v54, %v9754_v23  ;;  %v9919_v47 = vrot.slane %v3476_v15, %v9784_v38 }
 0x3c1   : > { %v8657_v13 = vpop.eup %8656  ;;  %3834 = vrot.lane.b32.xlu1 %v8992_v56, %s8809_s8  ;;  %8195 = vmatprep.mubr.msk.bf16.mxu0 %vm8807_vm2, %v12059_v10  ;;  %v9902_v14 = vrot.slane %v12101_v4, %v9731_v21  ;;  %v2788_v4 = vcombine.low %v9874_v55, %v9855_v57  ;;  %v9935_v35 = vrot.slane %v2756_v7, %v9784_v38 }
 0x3c2   : > { %v1779_v34 = vmul.f32 %v8657_v13, %v9601_v49  ;;  %8199 = vmatprep.subr.bf16.mxu1 %v12059_v10  ;;  %8205 = vmatprep.subr.bf16.mxu0 %v12059_v10  ;;  %v9912_v49 = vrot.slane %v12102_v45, %v9784_v38  ;;  %v8659_v13 = vpop.eup %8658  ;;  %v9926_v45 = vrot.slane %v3340_v0, %v9784_v38 }
 0x3c3   : > { %v8661_v15 = vpop.eup %8660  ;;  %v3261_v6 = vcombine.high %v12084_v51, %v12083_v39  ;;  %v9942_v0 = vrot.slane %v3308_v48, %v9784_v38  ;;  %v3293_v3 = vcombine.high %v12088_v50, %v12087_v1  ;;  %v3341_v7 = vcombine.high %v9866_v41, %v9845_v20  ;;  %v12109_v41 = vld [vmem:[#allocation60_spill] sm:$0xff] }
 0x3c4   : > { %3854 = vrot.lane.b32.xlu0 %v9067_v30, %s8809_s8  ;;  %v1799_v19 = vpack.c.bf16 %v1779_v34, %v1778_v40  ;;  %v9945_v40 = vrot.slane %v3444_v28, %v9784_v38  ;;  %v3397_v39 = vcombine.high %v12090_v8, %v12089_v63  ;;  %v3429_v51 = vcombine.high %v12086_v33, %v12085_v29  ;;  %v12106_v29 = vld [vmem:[#allocation21_spill] sm:$0xff]  ;;  %v12107_v63 = vld [vmem:[#allocation58_spill] sm:$0xff] }
 0x3c5   : > { %3842 = vrot.lane.b32.xlu1 %v9016_v2, %s8809_s8  ;;  %v3477_v48 = vcombine.high %v9858_v62, %v9836_v17  ;;  %v1785_v28 = vmul.f32 %v8659_v13, %v9583_v31  ;;  %v3445_v50 = vcombine.high %v9869_v27, %v9848_v53  ;;  %v3413_v33 = vcombine.high %v12092_v24, %v12091_v22  ;;  %v12108_v17 = vld [vmem:[#allocation59_spill] sm:$0xff] }
 0x3c6   : > { %8190 = vmatmul.mubr.msk.bf16.vlgmr.msra.gmra.mrb[100].mxu1 %vm1435_vm3, %v1799_v19  ;;  %8196 = vmatmul.mubr.msk.bf16.vlgmr.msra.gmra.mrb[40].mxu0 %vm1435_vm3, %v1800_v42  ;;  %v12104_v19 = vld [vmem:[#allocation37_spill] sm:$0xff]  ;;  %v12105_v42 = vld [vmem:[#allocation56_spill] sm:$0xff]  ;;  %v3508_v20 = vcombine.low %v9945_v40, %v9919_v47  ;;  %v3372_v31 = vcombine.low %v9942_v0, %v9926_v45  ;;  %v1784_v8 = vmul.f32 %v8661_v15, %v12107_v63 }
 0x3c7   : > { %v8663_v34 = vpop.eup %8662  ;;  %8200 = vmatpush3.bf16.msra.mxu1 %v12104_v19  ;;  %8206 = vmatpush3.bf16.msra.mxu0 %v12105_v42  ;;  %v3309_v24 = vcombine.high %v9863_v16, %v9842_v61  ;;  %v3277_v22 = vcombine.high %v12096_v58, %v12095_v59  ;;  %v3381_v53 = vcombine.high %v12098_v26, %v12097_v37  ;;  %v12111_v58 = vld [vmem:[#allocation24_spill] sm:$0xff] }
 0x3c8   : > { %8201 = vmatprep.mubr.msk.bf16.mxu1 %vm8807_vm2, %v12059_v10  ;;  %8207 = vmatprep.mubr.msk.bf16.mxu0 %vm8807_vm2, %v12059_v10  ;;  %v1782_v62 = vmul.f32 %v8663_v34, %v12108_v17  ;;  %v9986_v27 = vrot.slane %v3429_v51, %v9731_v21  ;;  %v1802_v34 = vpack.c.bf16 %v1785_v28, %v1784_v8  ;;  %v12116_v8 = vld [vmem:[#allocation23_spill] sm:$0xff] }
 0x3c9   : > { %v8665_v1 = vpop.eup %8664  ;;  %3850 = vrot.lane.b32.xlu1 %v12106_v29, %s8809_s8  ;;  %8211 = vmatprep.subr.bf16.mxu1 %v12059_v10  ;;  %v3788_v19 = vpack.c.bf16 %v3508_v20, %v3372_v31  ;;  %v9989_v42 = vrot.slane %v3477_v48, %v9784_v38  ;;  %v9994_v61 = vrot.slane %v3293_v3, %v9731_v21  ;;  %v12113_v20 = vld [vmem:[#allocation25_spill] sm:$0xff]  ;;  %v12115_v31 = vld [vmem:[#allocation28_spill] sm:$0xff] }
 0x3ca   : > { %v1783_v13 = vmul.f32 %v8665_v1, %v12109_v41  ;;  %8217 = vmatprep.subr.bf16.mxu0 %v12059_v10  ;;  %v12110_v1 = vld [vmem:[#allocation38_spill] sm:$0xff]  ;;  %v9999_v37 = vrot.slane %v2788_v4, %v9784_v38  ;;  %v10002_v26 = vrot.slane %v3341_v7, %v9784_v38  ;;  %v10005_v59 = vrot.slane %v3397_v39, %v9731_v21  ;;  %v12112_v7 = vld [vmem:[#allocation55_spill] sm:$0xff] }
 0x3cb   : > { %v3245_v63 = vcombine.high %v12110_v1, %v12093_v5  ;;  %v10008_v16 = vrot.slane %v3413_v33, %v9731_v21  ;;  %v10013_v5 = vrot.slane %v3445_v50, %v9784_v38  ;;  %v10016_v3 = vrot.slane %v3261_v6, %v9731_v21  ;;  %v12114_v50 = vld [vmem:[#allocation22_spill] sm:$0xff]  ;;  %v12120_v1 = vld [vmem:[#allocation17_spill] sm:$0xff] }
 0x3cc   : > { %v1801_v15 = vpack.c.bf16 %v1783_v13, %v1782_v62  ;;  %v10019_v4 = vrot.slane %v3277_v22, %v9731_v21  ;;  %v10025_v39 = vrot.slane %v3309_v24, %v9784_v38  ;;  %v3395_v51 = vrot.slane %v3381_v53, %v9731_v21 }
 0x3cd   : > { %3858 = vrot.lane.b32.xlu1 %v12111_v58, %s8809_s8  ;;  %v3492_v48 = vcombine.low %v10008_v16, %v9986_v27  ;;  %v4464_v28 = vsel %vm373_vm1, %v3788_v19, 0  ;;  %v3510_v6 = vcombine.low %v10013_v5, %v9989_v42  ;;  %v2741_v33 = vcombine.high %v12114_v50, %v12113_v20  ;;  %v12119_v19 = vld [vmem:[#allocation19_spill] sm:$0xff] }
 0x3ce   : > { %8202 = vmatmul.mubr.msk.bf16.vlgmr.msra.gmra.mrb[104].mxu1 %vm1435_vm3, %v1801_v15  ;;  %8208 = vmatmul.mubr.msk.bf16.vlgmr.msra.gmra.mrb[44].mxu0 %vm1435_vm3, %v1802_v34  ;;  %v2725_v17 = vcombine.high %v12116_v8, %v12115_v31  ;;  %v2789_v62 = vcombine.high %v9874_v55, %v9855_v57  ;;  %v2820_v41 = vcombine.low %v9935_v35, %v9999_v37  ;;  %v12117_v57 = vld [vmem:[#allocation20_spill] sm:$0xff] }
 0x3cf   : > { %8212 = vmatpush3.bf16.msra.mxu1 %v12112_v7  ;;  %8219 = vmatprep.mubr.msk.bf16.mxu0 %vm8807_vm2, %v12059_v10  ;;  %v3259_v13 = vrot.slane %v3245_v63, %v9731_v21  ;;  %v3356_v24 = vcombine.low %v10019_v4, %v9994_v61  ;;  %v3460_v22 = vcombine.low %v3395_v51, %v10005_v59  ;;  %v12118_v55 = vld [vmem:[#allocation16_spill] sm:$0xff] }
 0x3d0   : > { %8213 = vmatprep.mubr.msk.bf16.mxu1 %vm8807_vm2, %v12059_v10  ;;  %8223 = vmatprep.subr.bf16.mxu1 %v12059_v10  ;;  %v3374_v53 = vcombine.low %v10025_v39, %v10002_v26  ;;  %v2653_v15 = vcombine.high %v9763_v52, %v9760_v32  ;;  %v2709_v34 = vcombine.high %v12118_v55, %v12117_v57 }
 0x3d1   : > { %8218 = vmatpush3.bf16.xpose.msra.mxu0 %v4464_v28  ;;  %v2693_v7 = vcombine.high %v12120_v1, %v12119_v19  ;;  %v2757_v63 = vcombine.high %v9796_v18, %v9791_v25  ;;  %v3324_v28 = vcombine.low %v3259_v13, %v10016_v3  ;;  %v2684_v20 = vcombine.low %v9912_v49, %v9932_v36 }
 0x3d2   : > { %8229 = vmatprep.subr.bf16.mxu0 %v12059_v10  ;;  %v3790_v50 = vpack.c.bf16 %v3510_v6, %v3374_v53  ;;  %v10063_v31 = vrot.slane %v3492_v48, %v9784_v38  ;;  %v10069_v32 = vrot.slane %v2605_v12, %v9731_v21  ;;  %v12121_v52 = vcombine.high %v12064_v44, %v12066_v60 }
 0x3d3   : > { %v2755_v18 = vrot.slane %v2741_v33, %v9731_v21  ;;  %v2739_v8 = vrot.slane %v2725_v17, %v9731_v21  ;;  %v3100_v57 = vpack.c.bf16 %v2820_v41, %v2684_v20  ;;  %v10078_v6 = vrot.slane %v2789_v62, %v9784_v38 }
 0x3d4   : > { %v2603_v25 = vrot.slane %v12121_v52, %v9731_v21  ;;  %v10081_v48 = vrot.slane %v3356_v24, %v9784_v38  ;;  %v10084_v43 = vrot.slane %v3460_v22, %v9784_v38  ;;  %v2723_v9 = vrot.slane %v2709_v34, %v9731_v21  ;;  %v12122_v24 = vld [vmem:[#allocation2_spill] sm:$0xff]  ;;  %v12123_v22 = vld [vmem:[#allocation7_spill] sm:$0xff] }
 0x3d5   : > { %v2707_v12 = vrot.slane %v2693_v7, %v9731_v21  ;;  %v10089_v44 = vrot.slane %v2653_v15, %v9784_v38  ;;  %v10092_v60 = vrot.slane %v2757_v63, %v9784_v38  ;;  %v3493_v33 = vcombine.high %v10008_v16, %v9986_v27 }
 0x3d6   : > { %v4558_v17 = vsel %vm373_vm1, %v3790_v50, 0  ;;  %v10099_v62 = vrot.slane %v3324_v28, %v9784_v38  ;;  %v3512_v41 = vcombine.low %v10084_v43, %v10063_v31  ;;  %v12124_v53 = vcombine.high %v12122_v24, %v12123_v22 }
 0x3d7   : > { %v2804_v55 = vcombine.low %v2739_v8, %v2755_v18  ;;  %v12125_v27 = vcombine.high %v9757_v54, %v9754_v23  ;;  %v3357_v34 = vcombine.high %v10019_v4, %v9994_v61  ;;  %v3461_v19 = vcombine.high %v3395_v51, %v10005_v59 }
 0x3d8   : > { %8220 = vmatmul.mubr.msk.bf16.vlgmr.msra.gmra.mrb[48].mxu0 %vm373_vm1, %v3100_v57  ;;  %v2571_v15 = vrot.slane %v12124_v53, %v9731_v21  ;;  %v2822_v1 = vcombine.low %v10092_v60, %v10078_v6  ;;  %v3376_v7 = vcombine.low %v10099_v62, %v10081_v48  ;;  %v2668_v63 = vcombine.low %v2603_v25, %v10069_v32 }
 0x3d9   : > { %8230 = vmatpush3.bf16.xpose.msra.mxu0 %v4558_v17  ;;  %8231 = vmatprep.mubr.msk.bf16.mxu0 %vm8807_vm2, %v12059_v10  ;;  %v10113_v16 = vrot.slane %v12125_v27, %v9784_v38  ;;  %v2772_v54 = vcombine.low %v2707_v12, %v2723_v9  ;;  %v3325_v28 = vcombine.high %v3259_v13, %v10016_v3 }
 0x3da   : > { %8241 = vmatprep.subr.bf16.mxu0 %v12059_v10  ;;  %v3792_v20 = vpack.c.bf16 %v3512_v41, %v3376_v7  ;;  %v10128_v61 = vrot.slane %v3493_v33, %v9784_v38  ;;  %v2636_v59 = vcombine.low %v2571_v15, %v9902_v14  ;;  %v10132_v51 = vrot.slane %v2804_v55, %v9784_v38  ;;  %v12128_v7 = vld [vmem:[#allocation9_spill] sm:$0xff] }
 0x3db   : > { %v2686_v23 = vcombine.low %v10113_v16, %v10089_v44  ;;  %v10135_v50 = vrot.slane %v3357_v34, %v9784_v38  ;;  %v10138_v52 = vrot.slane %v3461_v19, %v9784_v38  ;;  %v10141_v57 = vrot.slane %v2668_v63, %v9784_v38  ;;  %v12129_v63 = vld [vmem:[#allocation4_spill] sm:$0xff] }
 0x3dc   : > { %12126 = vst [vmem:[#allocation5_spill] sm:$0xff] %v10128_v61  ;;  %v4652_v3 = vsel %vm373_vm1, %v3792_v20, 0  ;;  %v10146_v13 = vrot.slane %v2772_v54, %v9784_v38  ;;  %v10149_v33 = vrot.slane %v3325_v28, %v9784_v38  ;;  %v2805_v41 = vcombine.high %v2739_v8, %v2755_v18  ;;  %v12130_v54 = vld [vmem:[#allocation6_spill] sm:$0xff]  ;;  %v12131_v28 = vld [vmem:[#allocation3_spill] sm:$0xff] }
 0x3dd   : > { %v3102_v4 = vpack.c.bf16 %v2822_v1, %v2686_v23  ;;  %12127 = vst [vmem:[#allocation8_spill] sm:$0xff] %v10138_v52  ;;  %v3514_v17 = vcombine.low %v10138_v52, %v10128_v61  ;;  %v10156_v24 = vrot.slane %v2636_v59, %v9784_v38  ;;  %v2669_v55 = vcombine.high %v2603_v25, %v10069_v32  ;;  %v12132_v59 = vld [vmem:[#allocation15_spill] sm:$0xff] }
 0x3de   : > { %v2824_v22 = vcombine.low %v10146_v13, %v10132_v51  ;;  %v3378_v53 = vcombine.low %v10149_v33, %v10135_v50  ;;  %v2773_v27 = vcombine.high %v2707_v12, %v2723_v9  ;;  %v2637_v18 = vcombine.high %v2571_v15, %v9902_v14 }
 0x3df   : > { %v2688_v34 = vcombine.low %v10156_v24, %v10141_v57  ;;  %v10168_v1 = vrot.slane %v2805_v41, %v9784_v38  ;;  %v2844_v23 = vcombine.low %v12129_v63, %v12128_v7  ;;  %v2828_v20 = vcombine.low %v12131_v28, %v12130_v54 }
 0x3e0   : > { %8232 = vmatmul.mubr.msk.bf16.vlgmr.msra.gmra.mrb[52].mxu0 %vm373_vm1, %v3102_v4  ;;  %v3794_v19 = vpack.c.bf16 %v3514_v17, %v3378_v53  ;;  %v10177_v25 = vrot.slane %v2669_v55, %v9784_v38  ;;  %v10180_v9 = vrot.slane %v2773_v27, %v9784_v38  ;;  %v2845_v14 = vcombine.high %v12129_v63, %v12128_v7  ;;  %v12133_v4 = vld [vmem:[#allocation12_spill] sm:$0xff] }
 0x3e1   : > { %8242 = vmatpush3.bf16.xpose.msra.mxu0 %v4652_v3  ;;  %8243 = vmatprep.mubr.msk.bf16.mxu0 %vm8807_vm2, %v12059_v10  ;;  %v3104_v8 = vpack.c.bf16 %v2824_v22, %v2688_v34  ;;  %v2829_v12 = vcombine.high %v12131_v28, %v12130_v54  ;;  %v2876_v15 = vcombine.low %v8966_v46, %v8992_v56  ;;  %v10214_v54 = vpop.permute.xlu0 %3158 }
 0x3e2   : > { %8253 = vmatprep.subr.bf16.mxu0 %v12059_v10  ;;  %v4746_v32 = vsel %vm373_vm1, %v3794_v19, 0  ;;  %v2860_v3 = vcombine.low %v12133_v4, %v12132_v59  ;;  %v10193_v17 = vrot.slane %v2637_v18, %v9784_v38  ;;  %v2826_v41 = vcombine.low %v10180_v9, %v10168_v1 }
 0x3e3   : > { %v2877_v22 = vcombine.high %v8966_v46, %v8992_v56  ;;  %v2861_v53 = vcombine.high %v12133_v4, %v12132_v59  ;;  %v2852_v55 = vrot.slane %v2844_v23, %v9731_v21  ;;  %v2836_v27 = vrot.slane %v2828_v20, %v9731_v21 }
 0x3e4   : > { %v2690_v34 = vcombine.low %v10193_v17, %v10177_v25  ;;  %v2859_v19 = vrot.slane %v2845_v14, %v9731_v21  ;;  %v2843_v18 = vrot.slane %v2829_v12, %v9731_v21  ;;  %v2884_v7 = vrot.slane %v2876_v15, %v9731_v21 }
 0x3e5   : > { %v2868_v46 = vrot.slane %v2860_v3, %v9731_v21  ;;  %v2891_v63 = vrot.slane %v2877_v22, %v9731_v21  ;;  %v2875_v23 = vrot.slane %v2861_v53, %v9731_v21  ;;  %v2892_v28 = vcombine.low %v2836_v27, %v2852_v55 }
 0x3e6   : > { %v3106_v56 = vpack.c.bf16 %v2826_v41, %v2690_v34  ;;  %v2893_v20 = vcombine.high %v2836_v27, %v2852_v55  ;;  %v2909_v12 = vcombine.high %v2843_v18, %v2859_v19  ;;  %v2980_v3 = vcombine.low %v9016_v2, %v12106_v29  ;;  %v12134_v41 = vld [vmem:[#allocation18_spill] sm:$0xff]  ;;  %v12136_v27 = vld [vmem:[#allocation27_spill] sm:$0xff] }
 0x3e7   : > { %v2924_v15 = vcombine.low %v2868_v46, %v2884_v7  ;;  %v2925_v59 = vcombine.high %v2868_v46, %v2884_v7  ;;  %v2940_v4 = vcombine.low %v2875_v23, %v2891_v63  ;;  %v2964_v22 = vcombine.low %v12134_v41, %v9037_v11  ;;  %v12135_v34 = vld [vmem:[#allocation26_spill] sm:$0xff] }
 0x3e8   : > { %8244 = vmatmul.mubr.msk.bf16.vlgmr.msra.gmra.mrb[56].mxu0 %vm373_vm1, %v3104_v8  ;;  %v10208_v8 = vpop.permute.xlu1 %3162  ;;  %v3012_v55 = vcombine.low %v12111_v58, %v12135_v34  ;;  %v2965_v7 = vcombine.high %v12134_v41, %v9037_v11  ;;  %v2941_v61 = vcombine.high %v2875_v23, %v2891_v63  ;;  %v2988_v11 = vrot.slane %v2980_v3, %v9731_v21 }
 0x3e9   : > { %8254 = vmatpush3.bf16.xpose.msra.mxu0 %v4746_v32  ;;  %8255 = vmatprep.mubr.msk.bf16.mxu0 %vm8807_vm2, %v12059_v10  ;;  %v2908_v32 = vcombine.low %v2843_v18, %v2859_v19  ;;  %v10228_v19 = vrot.slane %v2892_v28, %v9784_v38  ;;  %v2981_v18 = vcombine.high %v9016_v2, %v12106_v29 }
 0x3ea   : > { %8265 = vmatprep.subr.bf16.mxu0 %v12059_v10  ;;  %v10245_v28 = vrot.slane %v2924_v15, %v9784_v38  ;;  %v10248_v2 = vrot.slane %v2909_v12, %v9784_v38  ;;  %v2972_v29 = vrot.slane %v2964_v22, %v9731_v21  ;;  %v10258_v63 = vrot.slane %v2940_v4, %v9784_v38 }
 0x3eb   : > { %v10240_v52 = vrot.slane %v2908_v32, %v9784_v38  ;;  %v2997_v23 = vcombine.high %v9067_v30, %v12136_v27  ;;  %v2995_v12 = vrot.slane %v2981_v18, %v9731_v21  ;;  %v2979_v15 = vrot.slane %v2965_v7, %v9731_v21 }
 0x3ec   : > { %v2689_v4 = vcombine.high %v10156_v24, %v10141_v57  ;;  %v3029_v22 = vcombine.high %v2972_v29, %v2988_v11  ;;  %v2821_v24 = vcombine.high %v9935_v35, %v9999_v37 }
 0x3ed   : > { %12137 = vst [vmem:[#allocation30_spill] sm:$0xff] %v10240_v52 }
 0x3f0   : > { %8256 = vmatmul.mubr.msk.bf16.vlgmr.msra.gmra.mrb[60].mxu0 %vm373_vm1, %v3106_v56  ;;  %v2996_v56 = vcombine.low %v9067_v30, %v12136_v27  ;;  %v2691_v30 = vcombine.high %v10193_v17, %v10177_v25  ;;  %v3028_v17 = vcombine.low %v2972_v29, %v2988_v11  ;;  %v2823_v27 = vcombine.high %v10092_v60, %v10078_v6  ;;  %v12139_v29 = vld [vmem:[#allocation62_spill] sm:$0xff] }
 0x3f1   : > { %v1720_v14 = vpop.xlane.xlu1 %1719  ;;  %8267 = vmatprep.mubr.msk.bf16.mxu0 %vm8807_vm2, %v12059_v10 }
 0x3f2   : > { %8666 = vrcp.f32 %v1720_v14  ;;  %v10237_v14 = vrot.slane %v2893_v20, %v9784_v38  ;;  %v10255_v20 = vrot.slane %v2925_v59, %v9784_v38  ;;  %v3004_v32 = vrot.slane %v2996_v56, %v9731_v21 }
 0x3f3   : > { %v1723_v53 = vpop.xlane.xlu0 %1722  ;;  %v2687_v59 = vcombine.high %v10113_v16, %v10089_v44  ;;  %v3509_v44 = vcombine.high %v9945_v40, %v9919_v47  ;;  %v3373_v40 = vcombine.high %v9942_v0, %v9926_v45  ;;  %v2825_v45 = vcombine.high %v10146_v13, %v10132_v51 }
 0x3f4   : > { %8668 = vrcp.f32 %v1723_v53  ;;  %v2685_v53 = vcombine.high %v9912_v49, %v9932_v36  ;;  %v3013_v49 = vcombine.high %v12111_v58, %v12135_v34  ;;  %v3020_v36 = vrot.slane %v3012_v55, %v9731_v21 }
 0x3f5   : > { %v10234_v46 = vpop.permute.xlu1 %3170  ;;  %v10281_v55 = vrot.slane %v2941_v61, %v9784_v38  ;;  %v3011_v61 = vrot.slane %v2997_v23, %v9731_v21  ;;  %v3044_v58 = vcombine.low %v2979_v15, %v2995_v12  ;;  %v3045_v34 = vcombine.high %v2979_v15, %v2995_v12  ;;  %v12138_v23 = vld [vmem:[#allocation61_spill] sm:$0xff] }
 0x3f6   : > { %v3027_v18 = vrot.slane %v3013_v49, %v9731_v21  ;;  %v3060_v7 = vcombine.low %v3004_v32, %v3020_v36  ;;  %v3061_v57 = vcombine.high %v3004_v32, %v3020_v36  ;;  %v3789_v52 = vpack.c.bf16 %v3509_v44, %v3373_v40 }
 0x3f7   : > { %v10252_v41 = vpop.permute.xlu0 %3166  ;;  %v2962_v49 = vcombine.low %v10248_v2, %v10281_v55  ;;  %v10312_v35 = vrot.slane %v3028_v17, %v9784_v38  ;;  %v10320_v32 = vrot.slane %v3029_v22, %v9784_v38  ;;  %v10326_v44 = vrot.slane %v3045_v34, %v9784_v38 }
 0x3f8   : > { %v3076_v0 = vcombine.low %v3011_v61, %v3027_v18  ;;  %v3077_v36 = vcombine.high %v3011_v61, %v3027_v18  ;;  %v10315_v37 = vrot.slane %v3060_v7, %v9784_v38  ;;  %v3101_v51 = vpack.c.bf16 %v2821_v24, %v2685_v53  ;;  %v12140_v18 = vld [vmem:[#allocation54_spill] sm:$0xff] }
 0x3f9   : > { %v10268_v3 = vpop.permute.xlu1 %3178  ;;  %v10328_v13 = vpack.c.bf16 %v2823_v27, %v2687_v59  ;;  %v10333_v17 = vrot.slane %v3061_v57, %v9784_v38  ;;  %v3516_v61 = vcombine.low %v12140_v18, %v10214_v54  ;;  %v3511_v34 = vcombine.high %v10013_v5, %v9989_v42 }
 0x3fa   : > { %v10343_v27 = vpack.c.bf16 %v2825_v45, %v2689_v4  ;;  %v10350_v53 = vrot.slane %v3076_v0, %v9784_v38  ;;  %v10353_v59 = vrot.slane %v3077_v36, %v9784_v38  ;;  %v3375_v42 = vcombine.high %v10025_v39, %v10002_v26 }
 0x3fb   : > { %v10283_v56 = vpop.permute.xlu0 %3174  ;;  %v3093_v5 = vcombine.high %v10312_v35, %v10315_v37  ;;  %v3564_v4 = vcombine.low %v10234_v46, %v10268_v3  ;;  %v12142_v0 = vcombine.low %v10228_v19, %v10245_v28 }
 0x3fc   : > { %v8667_v25 = vpop.eup %8666  ;;  %v3791_v39 = vpack.c.bf16 %v3511_v34, %v3375_v42  ;;  %v12144_v34 = vld [vmem:[#allocation8_spill] sm:$0xff] }
 0x3fd   : > { %v10295_v47 = vpop.permute.xlu1 %3186  ;;  %v1786_v11 = vmul.f32 %v8667_v25, %v12138_v23  ;;  %v2827_v25 = vcombine.high %v10180_v9, %v10168_v1  ;;  %v3548_v1 = vcombine.low %v10252_v41, %v10283_v56  ;;  %v3092_v9 = vcombine.low %v10312_v35, %v10315_v37 }
 0x3fe   : > { %v8669_v16 = vpop.eup %8668  ;;  %v3094_v23 = vcombine.low %v10320_v32, %v10333_v17 }
 0x3ff   : > { %v1787_v12 = vmul.f32 %v8669_v16, %v12139_v29  ;;  %v10307_v15 = vpop.permute.xlu0 %3182  ;;  %v10323_v16 = vrot.slane %v3044_v58, %v9784_v38  ;;  %v4511_v58 = vsel %vm373_vm1, %v3789_v52, 0  ;;  %v12141_v52 = vld [vmem:[#allocation57_spill] sm:$0xff]  ;;  %v10370_v40 = vpack.c.bf16 %v2827_v25, %v2691_v30 }
 0x400   : > { %v3532_v57 = vcombine.low %v12141_v52, %v10208_v8  ;;  %v10377_v29 = vrot.slane %v3516_v61, %v9731_v21  ;;  %v10382_v45 = vrot.slane %v3548_v1, %v9731_v21  ;;  %v10389_v36 = vpack.c.bf16 %v3092_v9, %v12142_v0 }
 0x401   : > { %v10317_v6 = vpop.permute.xlu1 %3194  ;;  %v1803_v60 = vpack.c.bf16 %v1787_v12, %v1786_v11  ;;  %v3517_v11 = vcombine.high %v12140_v18, %v10214_v54  ;;  %v3513_v12 = vcombine.high %v10084_v43, %v10063_v31  ;;  %v3096_v54 = vcombine.low %v10323_v16, %v10350_v53 }
 0x402   : > { %v3668_v30 = vcombine.low %v10295_v47, %v10317_v6  ;;  %v3533_v35 = vcombine.high %v12141_v52, %v10208_v8  ;;  %v3540_v37 = vrot.slane %v3532_v57, %v9731_v21  ;;  %v3377_v43 = vcombine.high %v10099_v62, %v10081_v48 }
 0x403   : > { %8214 = vmatmul.mubr.msk.bf16.vlgmr.msra.gmra.mrb[108].mxu1 %vm1435_vm3, %v1803_v60  ;;  %v10339_v22 = vpop.permute.xlu0 %3190  ;;  %v3379_v60 = vcombine.high %v10149_v33, %v10135_v50  ;;  %v10401_v25 = vrot.slane %v3564_v4, %v9731_v21  ;;  %v10410_v1 = vrot.slane %v3517_v11, %v9731_v21  ;;  %v4605_v48 = vsel %vm373_vm1, %v3791_v39, 0 }
 0x404   : > { %8224 = vmatpush3.bf16.xpose.msra.mxu1 %v4511_v58  ;;  %8225 = vmatprep.mubr.msk.bf16.mxu1 %vm8807_vm2, %v12059_v10  ;;  %v3652_v7 = vcombine.low %v10307_v15, %v10339_v22  ;;  %v12143_v58 = vld [vmem:[#allocation5_spill] sm:$0xff]  ;;  %v3580_v9 = vcombine.low %v10377_v29, %v3540_v37  ;;  %v3793_v50 = vpack.c.bf16 %v3513_v12, %v3377_v43 }
 0x405   : > { %v10357_v24 = vpop.permute.xlu1 %3202  ;;  %8235 = vmatprep.subr.bf16.mxu1 %v12059_v10  ;;  %v3515_v8 = vcombine.high %v12144_v34, %v12143_v58  ;;  %v3565_v33 = vcombine.high %v10234_v46, %v10268_v3  ;;  %v3612_v52 = vcombine.low %v10382_v45, %v10401_v25  ;;  %v3676_v57 = vrot.slane %v3668_v30, %v9731_v21 }
 0x406   : > { %v10404_v18 = vrot.slane %v3652_v7, %v9731_v21  ;;  %v10421_v4 = vrot.slane %v3533_v35, %v9731_v21  ;;  %v12145_v46 = vcombine.high %v10228_v19, %v10245_v28  ;;  %v4699_v43 = vsel %vm373_vm1, %v3793_v50, 0 }
 0x407   : > { %v3199_v26 = vpop.permute.xlu0 %3198  ;;  %v3795_v30 = vpack.c.bf16 %v3515_v8, %v3379_v60  ;;  %v10441_v19 = vrot.slane %v3565_v33, %v9731_v21  ;;  %v3613_v34 = vcombine.high %v10382_v45, %v10401_v25 }
 0x408   : > { %v10431_v3 = vpack.c.bf16 %v3093_v5, %v12145_v46  ;;  %v3716_v11 = vcombine.low %v10404_v18, %v3676_v57  ;;  %v10444_v5 = vrot.slane %v3580_v9, %v9784_v38  ;;  %v3717_v50 = vcombine.high %v10404_v18, %v3676_v57 }
 0x409   : > { %v3211_v31 = vpop.permute.xlu1 %3210 }
 0x40a   : > { %v3700_v61 = vcombine.low %v10357_v24, %v3211_v31  ;;  %v10458_v9 = vrot.slane %v3716_v11, %v9784_v38 }
 0x40b   : > { %8226 = vmatmul.mubr.msk.bf16.vlgmr.msra.gmra.mrb[112].mxu1 %vm373_vm1, %v3101_v51  ;;  %v3207_v62 = vpop.permute.xlu0 %3206  ;;  %v3549_v51 = vcombine.high %v10252_v41, %v10283_v56  ;;  %v3581_v41 = vcombine.high %v10377_v29, %v3540_v37  ;;  %v3596_v56 = vcombine.low %v10410_v1, %v10421_v4  ;;  %v3653_v29 = vcombine.high %v10307_v15, %v10339_v22 }
 0x40c   : > { %8236 = vmatpush3.bf16.xpose.msra.mxu1 %v4605_v48  ;;  %v3684_v42 = vcombine.low %v3199_v26, %v3207_v62  ;;  %8237 = vmatprep.mubr.msk.bf16.mxu1 %vm8807_vm2, %v12059_v10  ;;  %v3708_v39 = vrot.slane %v3700_v61, %v9731_v21  ;;  %v3685_v0 = vcombine.high %v3199_v26, %v3207_v62 }
 0x40d   : > { %v3805_v7 = vpop.permute.xlu1 %3804  ;;  %8247 = vmatprep.subr.bf16.mxu1 %v12059_v10  ;;  %v10447_v61 = vrot.slane %v3612_v52, %v9784_v38  ;;  %v10450_v60 = vrot.slane %v3549_v51, %v9731_v21  ;;  %v3701_v26 = vcombine.high %v10357_v24, %v3211_v31  ;;  %v3669_v62 = vcombine.high %v10295_v47, %v10317_v6 }
 0x40e   : > { %v3692_v12 = vrot.slane %v3684_v42, %v9731_v21  ;;  %v10467_v15 = vrot.slane %v3685_v0, %v9731_v21  ;;  %v10480_v47 = vrot.slane %v3581_v41, %v9784_v38  ;;  %v10495_v51 = vrot.slane %v3613_v34, %v9784_v38 }
 0x40f   : > { %v3809_v35 = vpop.permute.xlu0 %3808  ;;  %v3644_v45 = vcombine.low %v10444_v5, %v10447_v61  ;;  %v3628_v6 = vcombine.low %v10450_v60, %v10441_v19  ;;  %v10488_v25 = vrot.slane %v3701_v26, %v9731_v21 }
 0x410   : > { %v3748_v28 = vcombine.low %v3692_v12, %v3708_v39  ;;  %v3749_v37 = vcombine.high %v3692_v12, %v3708_v39  ;;  %v10506_v12 = vrot.slane %v3717_v50, %v9784_v38 }
 0x411   : > { %v3813_v58 = vpop.permute.xlu1 %3812  ;;  %v3764_v46 = vcombine.low %v10467_v15, %v10488_v25 }
 0x412   : > { %v3901_v8 = vcombine.high %v3805_v7, %v3813_v58  ;;  %v10461_v48 = vrot.slane %v3748_v28, %v9784_v38  ;;  %v3900_v22 = vcombine.low %v3805_v7, %v3813_v58  ;;  %v10492_v33 = vrot.slane %v3749_v37, %v9784_v38 }
 0x413   : > { %8238 = vmatmul.mubr.msk.bf16.vlgmr.msra.gmra.mrb[116].mxu1 %vm373_vm1, %v10328_v13  ;;  %v10471_v24 = vpop.permute.xlu0 %3820  ;;  %v10485_v13 = vrot.slane %v3653_v29, %v9731_v21  ;;  %v10498_v7 = vrot.slane %v3669_v62, %v9731_v21  ;;  %v12146_v58 = vcombine.low %v10237_v14, %v10255_v20 }
 0x414   : > { %8248 = vmatpush3.bf16.xpose.msra.mxu1 %v4699_v43  ;;  %v3780_v31 = vcombine.low %v10458_v9, %v10461_v48  ;;  %8249 = vmatprep.mubr.msk.bf16.mxu1 %vm8807_vm2, %v12059_v10  ;;  %v10503_v11 = vrot.slane %v3900_v22, %v9731_v21  ;;  %v10509_v41 = vrot.slane %v3901_v8, %v9731_v21 }
 0x415   : > { %v3817_v18 = vpop.permute.xlu1 %3816  ;;  %8259 = vmatprep.subr.bf16.mxu1 %v12059_v10  ;;  %v3732_v28 = vcombine.low %v10485_v13, %v10498_v7  ;;  %v3782_v37 = vcombine.low %v10506_v12, %v10492_v33  ;;  %v10529_v34 = vpack.c.bf16 %v3094_v23, %v12146_v58  ;;  %v3646_v22 = vcombine.low %v10480_v47, %v10495_v51 }
 0x416   : > { %v3916_v52 = vcombine.low %v3809_v35, %v3817_v18  ;;  %v3917_v57 = vcombine.high %v3809_v35, %v3817_v18  ;;  %v3796_v42 = vpack.c.bf16 %v3780_v31, %v3644_v45  ;;  %v4793_v23 = vsel %vm373_vm1, %v3795_v30, 0 }
 0x417   : > { %v3829_v39 = vpop.permute.xlu0 %3828  ;;  %v3781_v18 = vcombine.high %v10458_v9, %v10461_v48  ;;  %v10562_v30 = vrot.slane %v3628_v6, %v9784_v38  ;;  %v3798_v48 = vpack.c.bf16 %v3782_v37, %v3646_v22 }
 0x418   : > { %v10512_v0 = vrot.slane %v3916_v52, %v9731_v21  ;;  %v10515_v35 = vrot.slane %v3917_v57, %v9731_v21  ;;  %v3933_v43 = vcombine.high %v10471_v24, %v3829_v39  ;;  %v4840_v26 = vsel %vm373_vm1, %v3796_v42, 0 }
 0x419   : > { %v3825_v29 = vpop.permute.xlu1 %3824  ;;  %8266 = vmatpush3.bf16.xpose.msra.mxu0 %v4840_v26  ;;  %v3932_v45 = vcombine.low %v10471_v24, %v3829_v39  ;;  %v10549_v52 = vrot.slane %v3764_v46, %v9784_v38  ;;  %v3597_v57 = vcombine.high %v10410_v1, %v10421_v4  ;;  %v3629_v24 = vcombine.high %v10450_v60, %v10441_v19 }
 0x41a   : > { %v3965_v8 = vcombine.high %v10503_v11, %v10512_v0  ;;  %v3980_v62 = vcombine.low %v10509_v41, %v10515_v35  ;;  %v3981_v50 = vcombine.high %v10509_v41, %v10515_v35  ;;  %8277 = vmatprep.subr.bf16.mxu0 %v12059_v10  ;;  %v3645_v19 = vcombine.high %v10444_v5, %v10447_v61 }
 0x41b   : > { %8250 = vmatmul.mubr.msk.bf16.vlgmr.msra.gmra.mrb[120].mxu1 %vm373_vm1, %v10343_v27  ;;  %v10543_v31 = vpop.permute.xlu0 %3836  ;;  %v10559_v27 = vrot.slane %v3596_v56, %v9784_v38  ;;  %v10570_v60 = vrot.slane %v3732_v28, %v9784_v38  ;;  %v3733_v1 = vcombine.high %v10485_v13, %v10498_v7  ;;  %v3765_v4 = vcombine.high %v10467_v15, %v10488_v25 }
 0x41c   : > { %8260 = vmatpush3.bf16.xpose.msra.mxu1 %v4793_v23  ;;  %8261 = vmatprep.mubr.msk.bf16.mxu1 %vm8807_vm2, %v12059_v10  ;;  %v10577_v42 = vrot.slane %v3932_v45, %v9731_v21  ;;  %v3797_v39 = vpack.c.bf16 %v3781_v18, %v3645_v19  ;;  %v3783_v5 = vcombine.high %v10506_v12, %v10492_v33  ;;  %v4934_v28 = vsel %vm373_vm1, %v3798_v48, 0 }
 0x41d   : > { %v3833_v9 = vpop.permute.xlu1 %3832  ;;  %8271 = vmatprep.subr.bf16.mxu1 %v12059_v10  ;;  %v3784_v26 = vcombine.low %v10570_v60, %v10549_v52  ;;  %v3947_v61 = vrot.slane %v3933_v43, %v9731_v21  ;;  %v3647_v33 = vcombine.high %v10480_v47, %v10495_v51  ;;  %v10597_v12 = vrot.slane %v3597_v57, %v9784_v38 }
 0x41e   : > { %v3948_v56 = vcombine.low %v3825_v29, %v3833_v9  ;;  %v3949_v6 = vcombine.high %v3825_v29, %v3833_v9  ;;  %v3648_v29 = vcombine.low %v10559_v27, %v10562_v30  ;;  %v10610_v47 = vrot.slane %v3629_v24, %v9784_v38 }
 0x41f   : > { %v3845_v46 = vpop.permute.xlu0 %3844  ;;  %v10613_v51 = vrot.slane %v3733_v1, %v9784_v38  ;;  %v10616_v23 = vrot.slane %v3765_v4, %v9784_v38  ;;  %v3799_v57 = vpack.c.bf16 %v3783_v5, %v3647_v33  ;;  %v10625_v9 = vrot.slane %v3965_v8, %v9784_v38 }
 0x420   : > { %v10585_v13 = vrot.slane %v3948_v56, %v9731_v21  ;;  %v3963_v15 = vrot.slane %v3949_v6, %v9731_v21  ;;  %v4037_v25 = vcombine.high %v10543_v31, %v3845_v46  ;;  %8268 = vmatmul.mubr.msk.bf16.vlgmr.msra.gmra.mrb[64].mxu0 %vm373_vm1, %v10389_v36  ;;  %v4036_v22 = vcombine.low %v10543_v31, %v3845_v46 }
 0x421   : > { %v3841_v7 = vpop.permute.xlu1 %3840  ;;  %8278 = vmatpush3.bf16.xpose.msra.mxu0 %v4934_v28  ;;  %v4887_v36 = vsel %vm373_vm1, %v3797_v39, 0  ;;  %8279 = vmatprep.mubr.msk.bf16.mxu0 %vm8807_vm2, %v12059_v10  ;;  %v3800_v18 = vpack.c.bf16 %v3784_v26, %v3648_v29  ;;  %v10628_v24 = vrot.slane %v3980_v62, %v9784_v38  ;;  %v10640_v1 = vrot.slane %v3981_v50, %v9784_v38 }
 0x422   : > { %v3997_v43 = vcombine.high %v10577_v42, %v10585_v13  ;;  %v4012_v37 = vcombine.low %v3947_v61, %v3963_v15  ;;  %v4013_v58 = vcombine.high %v3947_v61, %v3963_v15  ;;  %8289 = vmatprep.subr.bf16.mxu0 %v12059_v10  ;;  %v10643_v8 = vrot.slane %v4036_v22, %v9731_v21 }
 0x423   : > { %8262 = vmatmul.mubr.msk.bf16.vlgmr.msra.gmra.mrb[124].mxu1 %vm373_vm1, %v10370_v40  ;;  %v10605_v45 = vpop.permute.xlu0 %3852  ;;  %v10655_v35 = vrot.slane %v4037_v25, %v9731_v21  ;;  %v5028_v15 = vsel %vm373_vm1, %v3800_v18, 0  ;;  %v3785_v18 = vcombine.high %v10570_v60, %v10549_v52  ;;  %v3649_v52 = vcombine.high %v10559_v27, %v10562_v30 }
 0x424   : > { %v10619_v31 = vrot.slane %v3997_v43, %v9784_v38  ;;  %v10622_v40 = vrot.slane %v4012_v37, %v9784_v38  ;;  %8272 = vmatpush3.bf16.xpose.msra.mxu1 %v4887_v36  ;;  %v10631_v48 = vrot.slane %v4013_v58, %v9784_v38  ;;  %8273 = vmatprep.mubr.msk.bf16.mxu1 %vm8807_vm2, %v12059_v10  ;;  %v4981_v58 = vsel %vm373_vm1, %v3799_v57, 0 }
 0x425   : > { %v3849_v19 = vpop.permute.xlu1 %3848  ;;  %8283 = vmatprep.subr.bf16.mxu1 %v12059_v10  ;;  %v3095_v43 = vcombine.high %v10320_v32, %v10333_v17  ;;  %v3996_v37 = vcombine.low %v10577_v42, %v10585_v13  ;;  %v3650_v36 = vcombine.low %v10597_v12, %v10610_v47  ;;  %v3098_v17 = vcombine.low %v10326_v44, %v10353_v59 }
 0x426   : > { %v4052_v62 = vcombine.low %v3841_v7, %v3849_v19  ;;  %v4053_v4 = vcombine.high %v3841_v7, %v3849_v19  ;;  %v4030_v6 = vcombine.low %v10625_v9, %v10619_v31  ;;  %v4031_v46 = vcombine.high %v10625_v9, %v10619_v31 }
 0x427   : > { %v3861_v56 = vpop.permute.xlu0 %3860  ;;  %v4032_v39 = vcombine.low %v10628_v24, %v10622_v40  ;;  %v4033_v41 = vcombine.high %v10628_v24, %v10622_v40  ;;  %v3786_v7 = vcombine.low %v10613_v51, %v10616_v23  ;;  %v4034_v25 = vcombine.low %v10640_v1, %v10631_v48 }
 0x428   : > { %v10658_v50 = vrot.slane %v4052_v62, %v9731_v21  ;;  %v10661_v26 = vrot.slane %v4053_v4, %v9731_v21  ;;  %v4069_v5 = vcombine.high %v10605_v45, %v3861_v56  ;;  %8280 = vmatmul.mubr.msk.bf16.vlgmr.msra.gmra.mrb[68].mxu0 %vm373_vm1, %v10529_v34  ;;  %v4035_v28 = vcombine.high %v10640_v1, %v10631_v48 }
 0x429   : > { %v3857_v61 = vpop.permute.xlu1 %3856  ;;  %8290 = vmatpush3.bf16.xpose.msra.mxu0 %v5028_v15  ;;  %8291 = vmatprep.mubr.msk.bf16.mxu0 %vm8807_vm2, %v12059_v10  ;;  %v4068_v32 = vcombine.low %v10605_v45, %v3861_v56  ;;  %v3097_v13 = vcombine.high %v10323_v16, %v10350_v53  ;;  %v3964_v57 = vcombine.low %v10503_v11, %v10512_v0 }
 0x42a   : > { %v4101_v29 = vcombine.high %v10643_v8, %v10658_v50  ;;  %v4116_v33 = vcombine.low %v10655_v35, %v10661_v26  ;;  %v4117_v34 = vcombine.high %v10655_v35, %v10661_v26  ;;  %8301 = vmatprep.subr.bf16.mxu0 %v12059_v10  ;;  %v3802_v62 = vpack.c.bf16 %v3786_v7, %v3650_v36 }
 0x42b   : > { %8274 = vmatmul.mubr.msk.bf16.vlgmr.msra.gmra.mrb[128].mxu1 %vm373_vm1, %v10431_v3  ;;  %v10686_v22 = vpop.permute.xlu0 %3810  ;;  %v12147_v3 = vld [vmem:[#allocation30_spill] sm:$0xff]  ;;  %v12149_v11 = vcombine.high %v10237_v14, %v10255_v20  ;;  %v10719_v15 = vrot.slane %v3996_v37, %v9784_v38  ;;  %v4100_v27 = vcombine.low %v10643_v8, %v10658_v50  ;;  %v4076_v16 = vrot.slane %v4068_v32, %v9731_v21 }
 0x42c   : > { %8284 = vmatpush3.bf16.xpose.msra.mxu1 %v4981_v58  ;;  %v2961_v42 = vcombine.high %v12147_v3, %v10258_v63  ;;  %8285 = vmatprep.mubr.msk.bf16.mxu1 %vm8807_vm2, %v12059_v10  ;;  %v12148_v4 = vcombine.low %v12147_v3, %v10258_v63  ;;  %v3099_v63 = vcombine.high %v10326_v44, %v10353_v59  ;;  %v5122_v50 = vsel %vm373_vm1, %v3802_v62, 0 }
 0x42d   : > { %v3865_v19 = vpop.permute.xlu1 %3864  ;;  %8295 = vmatprep.subr.bf16.mxu1 %v12059_v10  ;;  %v3111_v0 = vpack.c.bf16 %v3095_v43, %v12149_v11  ;;  %v4083_v53 = vrot.slane %v4069_v5, %v9731_v21  ;;  %v10732_v20 = vrot.slane %v3964_v57, %v9784_v38  ;;  %v3114_v7 = vpack.c.bf16 %v3098_v17, %v2962_v49 }
 0x42e   : > { %v4084_v60 = vcombine.low %v3857_v61, %v3865_v19  ;;  %v4085_v45 = vcombine.high %v3857_v61, %v3865_v19  ;;  %v3112_v56 = vpack.c.bf16 %v3096_v54, %v12148_v4  ;;  %v3801_v61 = vpack.c.bf16 %v3785_v18, %v3649_v52 }
 0x42f   : > { %v10723_v30 = vpop.permute.xlu0 %3822  ;;  %v3113_v43 = vpack.c.bf16 %v3097_v13, %v2961_v42  ;;  %v4028_v3 = vcombine.low %v10732_v20, %v10719_v15  ;;  %v3651_v49 = vcombine.high %v10597_v12, %v10610_v47  ;;  %v3787_v17 = vcombine.high %v10613_v51, %v10616_v23 }
 0x430   : > { %v4092_v54 = vrot.slane %v4084_v60, %v9731_v21  ;;  %v4099_v14 = vrot.slane %v4085_v45, %v9731_v21  ;;  %8292 = vmatmul.mubr.msk.bf16.vlgmr.msra.gmra.mrb[72].mxu0 %vm373_vm1, %v3112_v56  ;;  %v5075_v18 = vsel %vm373_vm1, %v3801_v61, 0  ;;  %v10752_v42 = vrot.slane %v4100_v27, %v9784_v38 }
 0x431   : > { %v3807_v8 = vpop.permute.xlu1 %3806  ;;  %8302 = vmatpush3.bf16.xpose.msra.mxu0 %v5122_v50  ;;  %8303 = vmatprep.mubr.msk.bf16.mxu0 %vm8807_vm2, %v12059_v10  ;;  %v4115_v13 = vrot.slane %v4101_v29, %v9784_v38  ;;  %v4124_v45 = vrot.slane %v4116_v33, %v9784_v38  ;;  %v3803_v56 = vpack.c.bf16 %v3787_v17, %v3651_v49 }
 0x432   : > { %v4132_v37 = vcombine.low %v4076_v16, %v4092_v54  ;;  %v4133_v58 = vcombine.high %v4076_v16, %v4092_v54  ;;  %v4148_v5 = vcombine.low %v4083_v53, %v4099_v14  ;;  %v4149_v36 = vcombine.high %v4083_v53, %v4099_v14  ;;  %8313 = vmatprep.subr.bf16.mxu0 %v12059_v10 }
 0x433   : > { %8286 = vmatmul.mubr.msk.bf16.vlgmr.msra.gmra.mrb[132].mxu1 %vm373_vm1, %v3111_v0  ;;  %v10741_v32 = vpop.permute.xlu0 %3830  ;;  %v4131_v27 = vrot.slane %v4117_v34, %v9784_v38 }
 0x434   : > { %v10756_v57 = vrot.slane %v4132_v37, %v9784_v38  ;;  %v4147_v19 = vrot.slane %v4133_v58, %v9784_v38  ;;  %8296 = vmatpush3.bf16.xpose.msra.mxu1 %v5075_v18  ;;  %v4156_v62 = vrot.slane %v4148_v5, %v9784_v38  ;;  %v4204_v52 = vcombine.low %v10723_v30, %v10741_v32 }
 0x435   : > { %v4205_v12 = vcombine.high %v10723_v30, %v10741_v32  ;;  %v3815_v47 = vpop.permute.xlu1 %3814  ;;  %8297 = vmatprep.mubr.msk.bf16.mxu1 %vm8807_vm2, %v12059_v10  ;;  %v4163_v51 = vrot.slane %v4149_v36, %v9784_v38  ;;  %8307 = vmatprep.subr.bf16.mxu1 %v12059_v10  ;;  %v2963_v32 = vcombine.high %v10248_v2, %v10281_v55 }
 0x436   : > { %v4172_v23 = vcombine.low %v3807_v8, %v3815_v47  ;;  %v4173_v29 = vcombine.high %v3807_v8, %v3815_v47  ;;  %v4164_v60 = vcombine.low %v10752_v42, %v10756_v57  ;;  %v4166_v11 = vcombine.low %v4115_v13, %v4147_v19 }
 0x437   : > { %v10775_v4 = vpop.permute.xlu0 %3838  ;;  %v4167_v0 = vcombine.high %v4115_v13, %v4147_v19  ;;  %v4168_v26 = vcombine.low %v4124_v45, %v4156_v62  ;;  %v4169_v34 = vcombine.high %v4124_v45, %v4156_v62  ;;  %v4170_v8 = vcombine.low %v4131_v27, %v4163_v51 }
 0x438   : > { %v10782_v30 = vrot.slane %v4172_v23, %v9731_v21  ;;  %v10785_v61 = vrot.slane %v4173_v29, %v9731_v21  ;;  %v4444_v16 = vpack.c.bf16 %v4164_v60, %v4028_v3  ;;  %8304 = vmatmul.mubr.msk.bf16.vlgmr.msra.gmra.mrb[76].mxu0 %vm373_vm1, %v3114_v7  ;;  %v10791_v53 = vpack.c.bf16 %v4166_v11, %v4030_v6 }
 0x439   : > { %v3819_v33 = vpop.permute.xlu1 %3818  ;;  %v10796_v35 = vpack.c.bf16 %v4167_v0, %v4031_v46  ;;  %8315 = vmatprep.mubr.msk.bf16.mxu0 %vm8807_vm2, %v12059_v10  ;;  %v5169_v6 = vsel %vm373_vm1, %v3803_v56, 0  ;;  %v10808_v31 = vpack.c.bf16 %v4168_v26, %v4032_v39  ;;  %v10813_v9 = vpack.c.bf16 %v4169_v34, %v4033_v41 }
 0x43a   : > { %v4188_v54 = vcombine.low %v10686_v22, %v3819_v33  ;;  %v4189_v14 = vcombine.high %v10686_v22, %v3819_v33  ;;  %8314 = vmatpush3.bf16.msra.mxu0 %v4444_v16  ;;  %v4171_v46 = vcombine.high %v4131_v27, %v4163_v51  ;;  %v4165_v40 = vcombine.high %v10752_v42, %v10756_v57 }
 0x43b   : > { %8298 = vmatmul.mubr.msk.bf16.vlgmr.msra.gmra.mrb[136].mxu1 %vm373_vm1, %v3113_v43  ;;  %v3847_v50 = vpop.permute.xlu0 %3846  ;;  %8325 = vmatprep.subr.bf16.mxu0 %v12059_v10  ;;  %v10827_v24 = vpack.c.bf16 %v4170_v8, %v4034_v25  ;;  %v4029_v25 = vcombine.high %v10732_v20, %v10719_v15  ;;  %v3115_v48 = vpack.c.bf16 %v3099_v63, %v2963_v32 }
 0x43c   : > { %v4196_v22 = vrot.slane %v4188_v54, %v9731_v21  ;;  %v4203_v7 = vrot.slane %v4189_v14, %v9731_v21  ;;  %8308 = vmatpush3.bf16.xpose.msra.mxu1 %v5169_v6  ;;  %v4308_v43 = vcombine.low %v10775_v4, %v3847_v50  ;;  %v4309_v37 = vcombine.high %v10775_v4, %v3847_v50 }
 0x43d   : > { %v3827_v58 = vpop.permute.xlu1 %3826  ;;  %8309 = vmatprep.mubr.msk.bf16.mxu1 %vm8807_vm2, %v12059_v10  ;;  %8319 = vmatprep.subr.bf16.mxu1 %v12059_v10  ;;  %v10832_v39 = vpack.c.bf16 %v4171_v46, %v4035_v28  ;;  %v4445_v49 = vpack.c.bf16 %v4165_v40, %v4029_v25  ;;  %v4212_v17 = vrot.slane %v4204_v52, %v9731_v21 }
 0x43e   : > { %v4236_v41 = vcombine.low %v10782_v30, %v4196_v22  ;;  %v4237_v5 = vcombine.high %v10782_v30, %v4196_v22  ;;  %v4252_v36 = vcombine.low %v10785_v61, %v4203_v7  ;;  %v4253_v18 = vcombine.high %v10785_v61, %v4203_v7 }
 0x43f   : > { %v4219_v42 = vrot.slane %v4205_v12, %v9731_v21  ;;  %v10857_v57 = vrot.slane %v4308_v43, %v9731_v21  ;;  %v10881_v29 = vrot.slane %v4309_v37, %v9731_v21 }
 0x440   : > { %v10854_v20 = vrot.slane %v4236_v41, %v9784_v38  ;;  %v10872_v47 = vrot.slane %v4237_v5, %v9784_v38  ;;  %v10875_v51 = vrot.slane %v4252_v36, %v9784_v38  ;;  %v10878_v23 = vrot.slane %v4253_v18, %v9784_v38 }
 0x441   : > { %v3835_v3 = vpop.permute.xlu1 %3834 }
 0x442   : > { %v4220_v1 = vcombine.low %v3827_v58, %v3835_v3  ;;  %v4221_v28 = vcombine.high %v3827_v58, %v3835_v3  ;;  %12153 = vst [vmem:[#allocation13_spill] sm:$0xff] %v10872_v47  ;;  %12154 = vst [vmem:[#allocation29_spill] sm:$0xff] %v10875_v51 }
 0x443   : > { %8310 = vmatmul.mubr.msk.bf16.vlgmr.msra.gmra.mrb[140].mxu1 %vm373_vm1, %v3115_v48  ;;  %12155 = vst [vmem:[#allocation32_spill] sm:$0xff] %v10878_v23 }
 0x444   : > { %v4228_v13 = vrot.slane %v4220_v1, %v9731_v21  ;;  %v4235_v2 = vrot.slane %v4221_v28, %v9731_v21  ;;  %8320 = vmatpush3.bf16.msra.mxu1 %v4445_v49  ;;  %8321 = vmatprep.mubr.msk.bf16.mxu1 %vm8807_vm2, %v12059_v10 }
 0x445   : > { %v3843_v55 = vpop.permute.xlu1 %3842  ;;  %8331 = vmatprep.subr.bf16.mxu1 %v12059_v10 }
 0x446   : > { %v4268_v44 = vcombine.low %v4212_v17, %v4228_v13  ;;  %v4269_v59 = vcombine.high %v4212_v17, %v4228_v13  ;;  %v4284_v15 = vcombine.low %v4219_v42, %v4235_v2  ;;  %v4285_v63 = vcombine.high %v4219_v42, %v4235_v2 }
 0x448   : > { %v10860_v19 = vrot.slane %v4268_v44, %v9784_v38  ;;  %v10863_v62 = vrot.slane %v4269_v59, %v9784_v38  ;;  %v10866_v52 = vrot.slane %v4284_v15, %v9784_v38  ;;  %v10869_v12 = vrot.slane %v4285_v63, %v9784_v38 }
 0x449   : > { %v3851_v60 = vpop.permute.xlu1 %3850 }
 0x44a   : > { %12150 = vst [vmem:[#allocation11_spill] sm:$0xff] %v10863_v62  ;;  %12151 = vst [vmem:[#allocation10_spill] sm:$0xff] %v10866_v52  ;;  %v4324_v45 = vcombine.low %v3843_v55, %v3851_v60  ;;  %v4325_v4 = vcombine.high %v3843_v55, %v3851_v60 }
 0x44b   : > { %12152 = vst [vmem:[#allocation14_spill] sm:$0xff] %v10869_v12 }
 0x44c   : > { %v10896_v16 = vrot.slane %v4324_v45, %v9731_v21  ;;  %v10899_v33 = vrot.slane %v4325_v4, %v9731_v21 }
 0x451   : > { %v10913_v50 = vpop.f32.mrb[16].mxu0 }
 0x452   : > { %12156 = vst [vmem:[#allocation31_spill] sm:$0xff] %v10913_v50  ;;  %v8125_v46 = vpop.f32.mrb[17].mxu0 }
 0x453   : > { %v10915_v22 = vpop.f32.mrb[18].mxu0 }
 0x454   : > { %12157 = vst [vmem:[#allocation34_spill] sm:$0xff] %v10915_v22  ;;  %v8126_v43 = vpop.f32.mrb[19].mxu0 }
 0x45b   : > { %v10919_v37 = vpop.f32.mrb[80].mxu1 }
 0x45c   : > { %12158 = vst [vmem:[#allocation33_spill] sm:$0xff] %v10919_v37  ;;  %v8131_v58 = vpop.f32.mrb[81].mxu1 }
 0x45d   : > { %v10921_v40 = vpop.f32.mrb[82].mxu1 }
 0x45e   : > { %12159 = vst [vmem:[#allocation41_spill] sm:$0xff] %v10921_v40  ;;  %v8132_v5 = vpop.f32.mrb[83].mxu1 }
 0x461   : > { %v10925_v36 = vpop.f32.mrb[20].mxu0 }
 0x462   : > { %12160 = vst [vmem:[#allocation39_spill] sm:$0xff] %v10925_v36  ;;  %v8137_v18 = vpop.f32.mrb[21].mxu0 }
 0x463   : > { %v10927_v32 = vpop.f32.mrb[22].mxu0 }
 0x464   : > { %12161 = vst [vmem:[#allocation53_spill] sm:$0xff] %v10927_v32  ;;  %v8138_v3 = vpop.f32.mrb[23].mxu0 }
 0x469   : > { %v10931_v48 = vpop.f32.mrb[84].mxu1 }
 0x46a   : > { %12162 = vst [vmem:[#allocation51_spill] sm:$0xff] %v10931_v48  ;;  %v8143_v1 = vpop.f32.mrb[85].mxu1 }
 0x46b   : > { %v10933_v28 = vpop.f32.mrb[86].mxu1 }
 0x46c   : > { %12163 = vst [vmem:[#allocation45_spill] sm:$0xff] %v10933_v28  ;;  %v8144_v17 = vpop.f32.mrb[87].mxu1 }
 0x471   : > { %v10937_v42 = vpop.f32.mrb[24].mxu0 }
 0x472   : > { %12164 = vst [vmem:[#allocation43_spill] sm:$0xff] %v10937_v42  ;;  %v8149_v13 = vpop.f32.mrb[25].mxu0 }
 0x473   : > { %v10939_v2 = vpop.f32.mrb[26].mxu0 }
 0x474   : > { %12165 = vst [vmem:[#allocation49_spill] sm:$0xff] %v10939_v2  ;;  %v8150_v44 = vpop.f32.mrb[27].mxu0 }
 0x479   : > { %v10943_v59 = vpop.f32.mrb[88].mxu1 }
 0x47a   : > { %12166 = vst [vmem:[#allocation47_spill] sm:$0xff] %v10943_v59  ;;  %v8155_v15 = vpop.f32.mrb[89].mxu1 }
 0x47b   : > { %v10945_v63 = vpop.f32.mrb[90].mxu1 }
 0x47c   : > { %12167 = vst [vmem:[#allocation52_spill] sm:$0xff] %v10945_v63  ;;  %v8156_v45 = vpop.f32.mrb[91].mxu1 }
 0x481   : > { %v10949_v4 = vpop.f32.mrb[28].mxu0 }
 0x482   : > { %12168 = vst [vmem:[#allocation50_spill] sm:$0xff] %v10949_v4  ;;  %v8161_v46 = vpop.f32.mrb[29].mxu0 }
 0x483   : > { %v10951_v43 = vpop.f32.mrb[30].mxu0 }
 0x484   : > { %12169 = vst [vmem:[#allocation40_spill] sm:$0xff] %v10951_v43  ;;  %v8162_v5 = vpop.f32.mrb[31].mxu0 }
 0x489   : > { %v10955_v18 = vpop.f32.mrb[92].mxu1  ;;  %v10957_v3 = vpop.f32.mrb[32].mxu0 }
 0x48a   : > { %12170 = vst [vmem:[#allocation44_spill] sm:$0xff] %v10955_v18  ;;  %12171 = vst [vmem:[#allocation42_spill] sm:$0xff] %v10957_v3  ;;  %v8167_v1 = vpop.f32.mrb[93].mxu1  ;;  %v8173_v17 = vpop.f32.mrb[33].mxu0 }
 0x48b   : > { %v10959_v13 = vpop.f32.mrb[94].mxu1  ;;  %v10961_v44 = vpop.f32.mrb[34].mxu0 }
 0x48c   : > { %12172 = vst [vmem:[#allocation48_spill] sm:$0xff] %v10959_v13  ;;  %12173 = vst [vmem:[#allocation46_spill] sm:$0xff] %v10961_v44  ;;  %v8168_v46 = vpop.f32.mrb[95].mxu1  ;;  %v8174_v60 = vpop.f32.mrb[35].mxu0 }
 0x491   : > { %v10967_v58 = vpop.f32.mrb[96].mxu1  ;;  %v10969_v5 = vpop.f32.mrb[36].mxu0 }
 0x492   : > { %12174 = vst [vmem:[#allocation35_spill] sm:$0xff] %v10967_v58  ;;  %12175 = vst [vmem:[#allocation36_spill] sm:$0xff] %v10969_v5  ;;  %v8179_v55 = vpop.f32.mrb[97].mxu1  ;;  %v8185_v49 = vpop.f32.mrb[37].mxu0 }
 0x493   : > { %v10971_v1 = vpop.f32.mrb[98].mxu1  ;;  %v10973_v17 = vpop.f32.mrb[38].mxu0 }
 0x494   : > { %12176 = vst [vmem:[#allocation37_spill] sm:$0xff] %v10971_v1  ;;  %12177 = vst [vmem:[#allocation56_spill] sm:$0xff] %v10973_v17  ;;  %v8180_v41 = vpop.f32.mrb[99].mxu1  ;;  %v8186_v45 = vpop.f32.mrb[39].mxu0 }
 0x499   : > { %v10979_v46 = vpop.f32.mrb[100].mxu1  ;;  %v10981_v60 = vpop.f32.mrb[40].mxu0 }
 0x49a   : > { %12178 = vst [vmem:[#allocation21_spill] sm:$0xff] %v10979_v46  ;;  %12179 = vst [vmem:[#allocation58_spill] sm:$0xff] %v10981_v60  ;;  %v8191_v7 = vpop.f32.mrb[101].mxu1  ;;  %v8197_v34 = vpop.f32.mrb[41].mxu0 }
 0x49b   : > { %v10983_v55 = vpop.f32.mrb[102].mxu1  ;;  %v10985_v49 = vpop.f32.mrb[42].mxu0 }
 0x49c   : > { %12180 = vst [vmem:[#allocation59_spill] sm:$0xff] %v10983_v55  ;;  %12181 = vst [vmem:[#allocation60_spill] sm:$0xff] %v10985_v49  ;;  %v8192_v61 = vpop.f32.mrb[103].mxu1  ;;  %v8198_v15 = vpop.f32.mrb[43].mxu0 }
 0x4a1   : > { %v10991_v41 = vpop.f32.mrb[104].mxu1  ;;  %v10993_v45 = vpop.f32.mrb[44].mxu0 }
 0x4a2   : > { %12182 = vst [vmem:[#allocation38_spill] sm:$0xff] %v10991_v41  ;;  %12183 = vst [vmem:[#allocation24_spill] sm:$0xff] %v10993_v45  ;;  %v8203_v30 = vpop.f32.mrb[105].mxu1  ;;  %v8209_v27 = vpop.f32.mrb[45].mxu0 }
 0x4a3   : > { %v10995_v7 = vpop.f32.mrb[106].mxu1  ;;  %v10997_v34 = vpop.f32.mrb[46].mxu0 }
 0x4a4   : > { %12184 = vst [vmem:[#allocation55_spill] sm:$0xff] %v10995_v7  ;;  %12185 = vst [vmem:[#allocation25_spill] sm:$0xff] %v10997_v34  ;;  %v8204_v11 = vpop.f32.mrb[107].mxu1  ;;  %v8210_v25 = vpop.f32.mrb[47].mxu0 }
 0x4ab   : > { %v4500_v61 = vpop.f32.mrb[48].mxu0 }
 0x4ac   : > { %v11003_v15 = vmul.f32 0.5, %v4500_v61  ;;  %v8221_v56 = vpop.f32.mrb[49].mxu0 }
 0x4ad   : > { %v4503_v6 = vpop.f32.mrb[50].mxu0 }
 0x4ae   : > { %v11005_v8 = vmul.f32 0.5, %v4503_v6  ;;  %v8222_v27 = vpop.f32.mrb[51].mxu0  ;;  %v5244_v30 = vsel %vm1435_vm3, %v11003_v15, -inf }
 0x4af   : > { %5245 = vmax.xlane.f32.xlu0 %v5244_v30 }
 0x4b0   : > { %v5247_v0 = vsel %vm1435_vm3, %v11005_v8, -inf }
 0x4b1   : > { %5248 = vmax.xlane.f32.xlu1 %v5247_v0 }
 0x4b3   : > { %v4594_v14 = vpop.f32.mrb[52].mxu0 }
 0x4b4   : > { %v11011_v26 = vmul.f32 0.5, %v4594_v14  ;;  %v8233_v11 = vpop.f32.mrb[53].mxu0 }
 0x4b5   : > { %v4597_v25 = vpop.f32.mrb[54].mxu0 }
 0x4b6   : > { %v8234_v61 = vpop.f32.mrb[55].mxu0  ;;  %v5256_v56 = vsel %vm1435_vm3, %v11011_v26, -inf }
 0x4b7   : > { %5257 = vmax.xlane.f32.xlu1 %v5256_v56 }
 0x4bb   : > { %v4688_v6 = vpop.f32.mrb[56].mxu0 }
 0x4bc   : > { %v8245_v27 = vpop.f32.mrb[57].mxu0 }
 0x4bd   : > { %v4691_v54 = vpop.f32.mrb[58].mxu0 }
 0x4be   : > { %v8246_v45 = vpop.f32.mrb[59].mxu0 }
 0x4c3   : > { %v4782_v34 = vpop.f32.mrb[60].mxu0 }
 0x4c4   : > { %v8257_v30 = vpop.f32.mrb[61].mxu0  ;;  %v11049_v5 = vmul.f32 0.5, %v4782_v34 }
 0x4c5   : > { %v4785_v41 = vpop.f32.mrb[62].mxu0  ;;  %v11027_v30 = vmul.f32 0.5, %v4597_v25 }
 0x4c6   : > { %v8258_v7 = vpop.f32.mrb[63].mxu0 }
 0x4d6   : > { %v11015_v60 = vpop.f32.mrb[108].mxu1 }
 0x4d7   : > { %12186 = vst [vmem:[#allocation22_spill] sm:$0xff] %v11015_v60  ;;  %v8215_v0 = vpop.f32.mrb[109].mxu1 }
 0x4d8   : > { %v11017_v14 = vpop.f32.mrb[110].mxu1 }
 0x4d9   : > { %12187 = vst [vmem:[#allocation28_spill] sm:$0xff] %v11017_v14  ;;  %v8216_v61 = vpop.f32.mrb[111].mxu1  ;;  %v5259_v14 = vsel %vm1435_vm3, %v11027_v30, -inf }
 0x4de   : > { %v4547_v49 = vpop.f32.mrb[112].mxu1 }
 0x4df   : > { %v11021_v46 = vmul.f32 0.5, %v4547_v49  ;;  %v8227_v56 = vpop.f32.mrb[113].mxu1 }
 0x4e0   : > { %v4550_v27 = vpop.f32.mrb[114].mxu1  ;;  %v11033_v56 = vmul.f32 0.5, %v4688_v6 }
 0x4e1   : > { %v11023_v55 = vmul.f32 0.5, %v4550_v27  ;;  %v8228_v45 = vpop.f32.mrb[115].mxu1  ;;  %v5250_v7 = vsel %vm1435_vm3, %v11021_v46, -inf }
 0x4e2   : > { %5251 = vmax.xlane.f32.xlu0 %v5250_v7  ;;  %v11041_v7 = vmul.f32 0.5, %v4691_v54 }
 0x4e3   : > { %v5253_v0 = vsel %vm1435_vm3, %v11023_v55, -inf }
 0x4e4   : > { %v5271_v54 = vsel %vm1435_vm3, %v11041_v7, -inf }
 0x4e6   : > { %5254 = vmax.xlane.f32.xlu0 %v5253_v0  ;;  %v4641_v11 = vpop.f32.mrb[116].mxu1 }
 0x4e7   : > { %v11031_v61 = vmul.f32 0.5, %v4641_v11  ;;  %v8239_v49 = vpop.f32.mrb[117].mxu1  ;;  %v5268_v11 = vsel %vm1435_vm3, %v11033_v56, -inf }
 0x4e8   : > { %v4644_v60 = vpop.f32.mrb[118].mxu1 }
 0x4e9   : > { %v11035_v27 = vmul.f32 0.5, %v4644_v60  ;;  %v8240_v45 = vpop.f32.mrb[119].mxu1  ;;  %v5262_v25 = vsel %vm1435_vm3, %v11031_v61, -inf }
 0x4ea   : > { %5260 = vmax.xlane.f32.xlu0 %v5259_v14  ;;  %5263 = vmax.xlane.f32.xlu1 %v5262_v25 }
 0x4eb   : > { %v5265_v6 = vsel %vm1435_vm3, %v11035_v27, -inf }
 0x4ee   : > { %5269 = vmax.xlane.f32.xlu1 %v5268_v11  ;;  %5266 = vmax.xlane.f32.xlu0 %v5265_v6  ;;  %v4735_v60 = vpop.f32.mrb[120].mxu1  ;;  %v11057_v6 = vmul.f32 0.5, %v4785_v41 }
 0x4ef   : > { %v11047_v0 = vmul.f32 0.5, %v4735_v60  ;;  %v8251_v49 = vpop.f32.mrb[121].mxu1 }
 0x4f0   : > { %v4738_v45 = vpop.f32.mrb[122].mxu1  ;;  %v5280_v49 = vsel %vm1435_vm3, %v11049_v5, -inf  ;;  %v5283_v44 = vsel %vm1435_vm3, %v11057_v6, -inf }
 0x4f1   : > { %v11051_v17 = vmul.f32 0.5, %v4738_v45  ;;  %v8252_v14 = vpop.f32.mrb[123].mxu1  ;;  %v5274_v25 = vsel %vm1435_vm3, %v11047_v0, -inf }
 0x4f2   : > { %5272 = vmax.xlane.f32.xlu0 %v5271_v54  ;;  %5275 = vmax.xlane.f32.xlu1 %v5274_v25 }
 0x4f3   : > { %v4876_v11 = vpop.f32.mrb[64].mxu0  ;;  %v5277_v34 = vsel %vm1435_vm3, %v11051_v17, -inf }
 0x4f4   : > { %v8269_v60 = vpop.f32.mrb[65].mxu0  ;;  %v11065_v25 = vmul.f32 0.5, %v4876_v11 }
 0x4f5   : > { %v4879_v45 = vpop.f32.mrb[66].mxu0 }
 0x4f6   : > { %5281 = vmax.xlane.f32.xlu1 %v5280_v49  ;;  %5278 = vmax.xlane.f32.xlu0 %v5277_v34  ;;  %v4829_v14 = vpop.f32.mrb[124].mxu1  ;;  %v8270_v1 = vpop.f32.mrb[67].mxu0  ;;  %v11073_v34 = vmul.f32 0.5, %v4879_v45 }
 0x4f7   : > { %v11063_v58 = vmul.f32 0.5, %v4829_v14  ;;  %v8263_v3 = vpop.f32.mrb[125].mxu1  ;;  %v5292_v1 = vsel %vm1435_vm3, %v11065_v25, -inf }
 0x4f8   : > { %v4832_v54 = vpop.f32.mrb[126].mxu1  ;;  %v5295_v59 = vsel %vm1435_vm3, %v11073_v34, -inf }
 0x4f9   : > { %v11067_v41 = vmul.f32 0.5, %v4832_v54  ;;  %v8264_v60 = vpop.f32.mrb[127].mxu1  ;;  %v5286_v18 = vsel %vm1435_vm3, %v11063_v58, -inf }
 0x4fa   : > { %5284 = vmax.xlane.f32.xlu0 %v5283_v44  ;;  %5287 = vmax.xlane.f32.xlu1 %v5286_v18 }
 0x4fb   : > { %v4970_v49 = vpop.f32.mrb[68].mxu0  ;;  %v5289_v3 = vsel %vm1435_vm3, %v11067_v41, -inf }
 0x4fc   : > { %v8281_v14 = vpop.f32.mrb[69].mxu0  ;;  %v11081_v18 = vmul.f32 0.5, %v4970_v49 }
 0x4fd   : > { %v4973_v11 = vpop.f32.mrb[70].mxu0 }
 0x4fe   : > { %5290 = vmax.xlane.f32.xlu0 %v5289_v3  ;;  %v4923_v54 = vpop.f32.mrb[128].mxu1  ;;  %5293 = vmax.xlane.f32.xlu1 %v5292_v1  ;;  %v8282_v13 = vpop.f32.mrb[71].mxu0  ;;  %v11089_v1 = vmul.f32 0.5, %v4973_v11 }
 0x4ff   : > { %v11079_v60 = vmul.f32 0.5, %v4923_v54  ;;  %v8275_v4 = vpop.f32.mrb[129].mxu1  ;;  %v5304_v13 = vsel %vm1435_vm3, %v11081_v18, -inf }
 0x500   : > { %v4926_v44 = vpop.f32.mrb[130].mxu1  ;;  %v5307_v48 = vsel %vm1435_vm3, %v11089_v1, -inf }
 0x501   : > { %v11083_v45 = vmul.f32 0.5, %v4926_v44  ;;  %v8276_v14 = vpop.f32.mrb[131].mxu1  ;;  %v5298_v43 = vsel %vm1435_vm3, %v11079_v60, -inf }
 0x502   : > { %5299 = vmax.xlane.f32.xlu1 %v5298_v43  ;;  %5296 = vmax.xlane.f32.xlu0 %v5295_v59 }
 0x503   : > { %v5064_v3 = vpop.f32.mrb[72].mxu0  ;;  %v5301_v4 = vsel %vm1435_vm3, %v11083_v45, -inf }
 0x504   : > { %v8293_v54 = vpop.f32.mrb[73].mxu0  ;;  %v11097_v59 = vmul.f32 0.5, %v5064_v3 }
 0x505   : > { %v5067_v49 = vpop.f32.mrb[74].mxu0 }
 0x506   : > { %v5017_v44 = vpop.f32.mrb[132].mxu1  ;;  %5302 = vmax.xlane.f32.xlu0 %v5301_v4  ;;  %5305 = vmax.xlane.f32.xlu1 %v5304_v13  ;;  %v8294_v63 = vpop.f32.mrb[75].mxu0  ;;  %v11105_v13 = vmul.f32 0.5, %v5067_v49 }
 0x507   : > { %v11095_v14 = vmul.f32 0.5, %v5017_v44  ;;  %v8287_v42 = vpop.f32.mrb[133].mxu1  ;;  %v5316_v63 = vsel %vm1435_vm3, %v11097_v59, -inf }
 0x508   : > { %v5020_v43 = vpop.f32.mrb[134].mxu1  ;;  %v5319_v37 = vsel %vm1435_vm3, %v11105_v13, -inf }
 0x509   : > { %v11099_v11 = vmul.f32 0.5, %v5020_v43  ;;  %v8288_v54 = vpop.f32.mrb[135].mxu1  ;;  %v5310_v2 = vsel %vm1435_vm3, %v11095_v14, -inf }
 0x50a   : > { %5311 = vmax.xlane.f32.xlu1 %v5310_v2  ;;  %5308 = vmax.xlane.f32.xlu0 %v5307_v48 }
 0x50b   : > { %v5158_v4 = vpop.f32.mrb[76].mxu0  ;;  %v5313_v42 = vsel %vm1435_vm3, %v11099_v11, -inf }
 0x50c   : > { %v8305_v44 = vpop.f32.mrb[77].mxu0  ;;  %v11113_v48 = vmul.f32 0.5, %v5158_v4 }
 0x50d   : > { %v5161_v3 = vpop.f32.mrb[78].mxu0 }
 0x50e   : > { %v5111_v43 = vpop.f32.mrb[136].mxu1  ;;  %5314 = vmax.xlane.f32.xlu0 %v5313_v42  ;;  %5317 = vmax.xlane.f32.xlu1 %v5316_v63  ;;  %v8306_v28 = vpop.f32.mrb[79].mxu0  ;;  %v11121_v42 = vmul.f32 0.5, %v5161_v3 }
 0x50f   : > { %v11111_v54 = vmul.f32 0.5, %v5111_v43  ;;  %v8299_v36 = vpop.f32.mrb[137].mxu1 }
 0x510   : > { %v5114_v2 = vpop.f32.mrb[138].mxu1  ;;  %v5328_v36 = vsel %vm1435_vm3, %v11113_v48, -inf }
 0x511   : > { %v11115_v49 = vmul.f32 0.5, %v5114_v2  ;;  %v8300_v44 = vpop.f32.mrb[139].mxu1  ;;  %v5322_v32 = vsel %vm1435_vm3, %v11111_v54, -inf }
 0x512   : > { %5323 = vmax.xlane.f32.xlu1 %v5322_v32  ;;  %5320 = vmax.xlane.f32.xlu0 %v5319_v37  ;;  %v5331_v32 = vsel %vm1435_vm3, %v11121_v42, -inf }
 0x513   : > { %v5325_v28 = vsel %vm1435_vm3, %v11115_v49, -inf }
 0x516   : > { %v5205_v4 = vpop.f32.mrb[140].mxu1  ;;  %5326 = vmax.xlane.f32.xlu0 %v5325_v28  ;;  %5329 = vmax.xlane.f32.xlu1 %v5328_v36  ;;  %v12188_v28 = vld [vmem:[#allocation27_spill] sm:$0xff]  ;;  %v11139_v36 = vpop.permute.xlu0 %3854 }
 0x517   : > { %v11127_v63 = vmul.f32 0.5, %v5205_v4  ;;  %v8311_v43 = vpop.f32.mrb[141].mxu1  ;;  %v11141_v4 = vpop.permute.xlu1 %3858 }
 0x518   : > { %v5208_v2 = vpop.f32.mrb[142].mxu1 }
 0x519   : > { %v11129_v44 = vmul.f32 0.5, %v5208_v2  ;;  %v8312_v40 = vpop.f32.mrb[143].mxu1  ;;  %v5334_v37 = vsel %vm1435_vm3, %v11127_v63, -inf }
 0x51a   : > { %5335 = vmax.xlane.f32.xlu1 %v5334_v37  ;;  %5332 = vmax.xlane.f32.xlu0 %v5331_v32 }
 0x51b   : > { %v5337_v3 = vsel %vm1435_vm3, %v11129_v44, -inf }
 0x51e   : > { %5338 = vmax.xlane.f32.xlu0 %v5337_v3 }
 0x534   : > { %3862 = vrot.lane.b32.xlu0 %v12188_v28, %s8809_s8 }
 0x53c   : > { %v5246_v40 = vpop.xlane.xlu0 %5245 }
 0x53d   : > { %v5340_v43 = vsub.f32 %v11003_v15, %v5246_v40 }
 0x53e   : > { %v5249_v2 = vpop.xlane.xlu1 %5248 }
 0x53f   : > { %v5372_v50 = vmul.f32 1.442695, %v5340_v43  ;;  %v5341_v22 = vsub.f32 %v11005_v8, %v5249_v2 }
 0x541   : > { %8670 = vpow2.f32 %v5372_v50  ;;  %v5374_v37 = vmul.f32 1.442695, %v5341_v22 }
 0x543   : > { %8672 = vpow2.f32 %v5374_v37 }
 0x544   : > { %v5258_v15 = vpop.xlane.xlu1 %5257 }
 0x545   : > { %v5344_v40 = vsub.f32 %v11011_v26, %v5258_v15 }
 0x547   : > { %v5380_v50 = vmul.f32 1.442695, %v5344_v40 }
 0x54b   : > { %v11145_v32 = vpop.eup %8670 }
 0x54c   : > { %v5436_v3 = vsel %vm1435_vm3, %v11145_v32, 0.0 }
 0x54d   : > { %5437 = vadd.xlane.f32.xlu1 %v5436_v3  ;;  %v11149_v28 = vpop.eup %8672 }
 0x54e   : > { %v5439_v12 = vsel %vm1435_vm3, %v11149_v28, 0.0 }
 0x553   : > { %5440 = vadd.xlane.f32.xlu0 %v5439_v12 }
 0x56f   : > { %v5252_v43 = vpop.xlane.xlu0 %5251 }
 0x570   : > { %v5342_v8 = vsub.f32 %v11021_v46, %v5252_v43 }
 0x572   : > { %v5376_v22 = vmul.f32 1.442695, %v5342_v8 }
 0x573   : > { %v5255_v2 = vpop.xlane.xlu0 %5254 }
 0x574   : > { %8674 = vpow2.f32 %v5376_v22  ;;  %v5343_v37 = vsub.f32 %v11023_v55, %v5255_v2 }
 0x575   : > { %8676 = vpow2.f32 %v5380_v50 }
 0x576   : > { %v5378_v3 = vmul.f32 1.442695, %v5343_v37 }
 0x577   : > { %v5264_v23 = vpop.xlane.xlu1 %5263  ;;  %v5261_v52 = vpop.xlane.xlu0 %5260 }
 0x578   : > { %8678 = vpow2.f32 %v5378_v3  ;;  %v5346_v51 = vsub.f32 %v11031_v61, %v5264_v23  ;;  %v5345_v12 = vsub.f32 %v11027_v30, %v5261_v52 }
 0x57a   : > { %v5384_v62 = vmul.f32 1.442695, %v5346_v51  ;;  %v5382_v26 = vmul.f32 1.442695, %v5345_v12 }
 0x57b   : > { %v5270_v15 = vpop.xlane.xlu1 %5269  ;;  %v5267_v47 = vpop.xlane.xlu0 %5266 }
 0x57c   : > { %8680 = vpow2.f32 %v5384_v62  ;;  %v5348_v46 = vsub.f32 %v11033_v56, %v5270_v15  ;;  %v5347_v40 = vsub.f32 %v11035_v27, %v5267_v47 }
 0x57d   : > { %8682 = vpow2.f32 %v5382_v26 }
 0x57e   : > { %v11160_v55 = vpop.eup %8674  ;;  %v5388_v43 = vmul.f32 1.442695, %v5348_v46  ;;  %v5386_v8 = vmul.f32 1.442695, %v5347_v40 }
 0x57f   : > { %v5276_v50 = vpop.xlane.xlu1 %5275  ;;  %v5273_v22 = vpop.xlane.xlu0 %5272  ;;  %v5442_v23 = vsel %vm1435_vm3, %v11160_v55, 0.0 }
 0x580   : > { %v11164_v52 = vpop.eup %8676  ;;  %8684 = vpow2.f32 %v5388_v43  ;;  %v5350_v51 = vsub.f32 %v11047_v0, %v5276_v50  ;;  %v5349_v62 = vsub.f32 %v11041_v7, %v5273_v22  ;;  %5443 = vadd.xlane.f32.xlu1 %v5442_v23 }
 0x581   : > { %8686 = vpow2.f32 %v5386_v8  ;;  %v5448_v2 = vsel %vm1435_vm3, %v11164_v52, 0.0 }
 0x582   : > { %v11168_v30 = vpop.eup %8678  ;;  %v5390_v47 = vmul.f32 1.442695, %v5349_v62  ;;  %v5392_v61 = vmul.f32 1.442695, %v5350_v51 }
 0x583   : > { %v5282_v56 = vpop.xlane.xlu1 %5281  ;;  %v5279_v27 = vpop.xlane.xlu0 %5278  ;;  %v5445_v37 = vsel %vm1435_vm3, %v11168_v30, 0.0 }
 0x584   : > { %v5352_v3 = vsub.f32 %v11049_v5, %v5282_v56  ;;  %v5351_v0 = vsub.f32 %v11051_v17, %v5279_v27  ;;  %5449 = vadd.xlane.f32.xlu1 %v5448_v2  ;;  %5446 = vadd.xlane.f32.xlu0 %v5445_v37  ;;  %8688 = vpow2.f32 %v5390_v47 }
 0x585   : > { %8690 = vpow2.f32 %v5392_v61 }
 0x586   : > { %v11176_v7 = vpop.eup %8680  ;;  %v5396_v12 = vmul.f32 1.442695, %v5352_v3  ;;  %v5394_v15 = vmul.f32 1.442695, %v5351_v0 }
 0x587   : > { %v11178_v26 = vpop.eup %8682  ;;  %v5288_v46 = vpop.xlane.xlu1 %5287  ;;  %v5454_v43 = vsel %vm1435_vm3, %v11176_v7, 0.0 }
 0x588   : > { %v5285_v40 = vpop.xlane.xlu0 %5284  ;;  %8692 = vpow2.f32 %v5396_v12  ;;  %v5354_v5 = vsub.f32 %v11063_v58, %v5288_v46  ;;  %5455 = vadd.xlane.f32.xlu1 %v5454_v43  ;;  %v5451_v8 = vsel %vm1435_vm3, %v11178_v26, 0.0 }
 0x589   : > { %v5353_v17 = vsub.f32 %v11057_v6, %v5285_v40  ;;  %5452 = vadd.xlane.f32.xlu0 %v5451_v8  ;;  %8694 = vpow2.f32 %v5394_v15 }
 0x58a   : > { %v11186_v50 = vpop.eup %8684  ;;  %v5400_v22 = vmul.f32 1.442695, %v5354_v5 }
 0x58b   : > { %v5398_v23 = vmul.f32 1.442695, %v5353_v17  ;;  %v5294_v51 = vpop.xlane.xlu1 %5293  ;;  %v5460_v47 = vsel %vm1435_vm3, %v11186_v50, 0.0  ;;  %v11190_v61 = vpop.eup %8686 }
 0x58c   : > { %v5291_v62 = vpop.xlane.xlu0 %5290  ;;  %8696 = vpow2.f32 %v5400_v22  ;;  %v5356_v58 = vsub.f32 %v11065_v25, %v5294_v51  ;;  %v5457_v0 = vsel %vm1435_vm3, %v11190_v61, 0.0 }
 0x58d   : > { %v5355_v6 = vsub.f32 %v11067_v41, %v5291_v62  ;;  %5461 = vadd.xlane.f32.xlu0 %v5460_v47  ;;  %8698 = vpow2.f32 %v5398_v23 }
 0x58e   : > { %v5404_v56 = vmul.f32 1.442695, %v5356_v58  ;;  %v11194_v27 = vpop.eup %8688 }
 0x58f   : > { %v5402_v2 = vmul.f32 1.442695, %v5355_v6  ;;  %v5300_v37 = vpop.xlane.xlu1 %5299  ;;  %v5463_v25 = vsel %vm1435_vm3, %v11194_v27, 0.0  ;;  %v11202_v41 = vpop.eup %8690 }
 0x590   : > { %v5297_v3 = vpop.xlane.xlu0 %5296  ;;  %8700 = vpow2.f32 %v5404_v56  ;;  %v5358_v12 = vsub.f32 %v11079_v60, %v5300_v37  ;;  %5464 = vadd.xlane.f32.xlu1 %v5463_v25  ;;  %v5466_v22 = vsel %vm1435_vm3, %v11202_v41, 0.0 }
 0x591   : > { %v5357_v15 = vsub.f32 %v11073_v34, %v5297_v3  ;;  %5458 = vadd.xlane.f32.xlu0 %v5457_v0  ;;  %8702 = vpow2.f32 %v5402_v2 }
 0x592   : > { %v11204_v46 = vpop.eup %8692  ;;  %v5408_v40 = vmul.f32 1.442695, %v5358_v12 }
 0x593   : > { %v5406_v43 = vmul.f32 1.442695, %v5357_v15  ;;  %v5306_v5 = vpop.xlane.xlu1 %5305  ;;  %v5472_v8 = vsel %vm1435_vm3, %v11204_v46, 0.0  ;;  %v11212_v23 = vpop.eup %8694 }
 0x594   : > { %v5303_v17 = vpop.xlane.xlu0 %5302  ;;  %8704 = vpow2.f32 %v5408_v40  ;;  %v5360_v34 = vsub.f32 %v11081_v18, %v5306_v5  ;;  %5473 = vadd.xlane.f32.xlu1 %v5472_v8  ;;  %v5469_v2 = vsel %vm1435_vm3, %v11212_v23, 0.0 }
 0x595   : > { %v5359_v60 = vsub.f32 %v11083_v45, %v5303_v17  ;;  %5467 = vadd.xlane.f32.xlu0 %v5466_v22  ;;  %8706 = vpow2.f32 %v5406_v43 }
 0x596   : > { %v11214_v51 = vpop.eup %8696  ;;  %v5412_v62 = vmul.f32 1.442695, %v5360_v34 }
 0x597   : > { %v5410_v47 = vmul.f32 1.442695, %v5359_v60  ;;  %v5312_v58 = vpop.xlane.xlu1 %5311  ;;  %v5478_v56 = vsel %vm1435_vm3, %v11214_v51, 0.0  ;;  %v11222_v37 = vpop.eup %8698 }
 0x598   : > { %v5309_v6 = vpop.xlane.xlu0 %5308  ;;  %8708 = vpow2.f32 %v5412_v62  ;;  %v5362_v18 = vsub.f32 %v11095_v14, %v5312_v58  ;;  %5479 = vadd.xlane.f32.xlu1 %v5478_v56  ;;  %v5475_v14 = vsel %vm1435_vm3, %v11222_v37, 0.0 }
 0x599   : > { %v5361_v45 = vsub.f32 %v11089_v1, %v5309_v6  ;;  %5470 = vadd.xlane.f32.xlu0 %v5469_v2  ;;  %8710 = vpow2.f32 %v5410_v47 }
 0x59a   : > { %v11224_v3 = vpop.eup %8700  ;;  %v5416_v0 = vmul.f32 1.442695, %v5362_v18 }
 0x59b   : > { %v5414_v12 = vmul.f32 1.442695, %v5361_v45  ;;  %v5318_v15 = vpop.xlane.xlu1 %5317  ;;  %v5484_v40 = vsel %vm1435_vm3, %v11224_v3, 0.0  ;;  %v11231_v43 = vpop.eup %8702 }
 0x59c   : > { %v5315_v25 = vpop.xlane.xlu0 %5314  ;;  %8712 = vpow2.f32 %v5416_v0  ;;  %v5364_v1 = vsub.f32 %v11097_v59, %v5318_v15  ;;  %5485 = vadd.xlane.f32.xlu1 %v5484_v40  ;;  %v5481_v59 = vsel %vm1435_vm3, %v11231_v43, 0.0 }
 0x59d   : > { %5476 = vadd.xlane.f32.xlu0 %v5475_v14  ;;  %8714 = vpow2.f32 %v5414_v12  ;;  %v5363_v8 = vsub.f32 %v11099_v11, %v5315_v25 }
 0x59e   : > { %v11233_v5 = vpop.eup %8704  ;;  %v5420_v17 = vmul.f32 1.442695, %v5364_v1 }
 0x59f   : > { %v5490_v60 = vsel %vm1435_vm3, %v11233_v5, 0.0  ;;  %v5324_v22 = vpop.xlane.xlu1 %5323  ;;  %v11240_v62 = vpop.eup %8706  ;;  %v5418_v58 = vmul.f32 1.442695, %v5363_v8 }
 0x5a0   : > { %v5321_v34 = vpop.xlane.xlu0 %5320  ;;  %5491 = vadd.xlane.f32.xlu1 %v5490_v60  ;;  %8716 = vpow2.f32 %v5420_v17  ;;  %v5366_v6 = vsub.f32 %v11111_v54, %v5324_v22  ;;  %v5487_v18 = vsel %vm1435_vm3, %v11240_v62, 0.0 }
 0x5a1   : > { %5482 = vadd.xlane.f32.xlu0 %v5481_v59  ;;  %8718 = vpow2.f32 %v5418_v58 }
 0x5a2   : > { %v11242_v47 = vpop.eup %8708  ;;  %v5424_v0 = vmul.f32 1.442695, %v5366_v6 }
 0x5a3   : > { %v5496_v11 = vsel %vm1435_vm3, %v11242_v47, 0.0  ;;  %v11249_v45 = vpop.eup %8710 }
 0x5a4   : > { %v5327_v56 = vpop.xlane.xlu0 %5326  ;;  %5497 = vadd.xlane.f32.xlu1 %v5496_v11  ;;  %v5493_v25 = vsel %vm1435_vm3, %v11249_v45, 0.0  ;;  %8720 = vpow2.f32 %v5424_v0 }
 0x5a5   : > { %5488 = vadd.xlane.f32.xlu0 %v5487_v18  ;;  %v5367_v12 = vsub.f32 %v11115_v49, %v5327_v56 }
 0x5a6   : > { %v11251_v2 = vpop.eup %8712 }
 0x5a7   : > { %v5502_v54 = vsel %vm1435_vm3, %v11251_v2, 0.0  ;;  %v11258_v40 = vpop.eup %8714  ;;  %v5426_v1 = vmul.f32 1.442695, %v5367_v12 }
 0x5a8   : > { %v5333_v15 = vpop.xlane.xlu0 %5332  ;;  %5503 = vadd.xlane.f32.xlu1 %v5502_v54  ;;  %v5499_v8 = vsel %vm1435_vm3, %v11258_v40, 0.0 }
 0x5a9   : > { %5494 = vadd.xlane.f32.xlu0 %v5493_v25  ;;  %v5369_v14 = vsub.f32 %v11121_v42, %v5333_v15  ;;  %8722 = vpow2.f32 %v5426_v1  ;;  %v5330_v1 = vpop.xlane.xlu1 %5329 }
 0x5aa   : > { %v11263_v49 = vpop.eup %8716 }
 0x5ab   : > { %v5430_v60 = vmul.f32 1.442695, %v5369_v14  ;;  %v5508_v59 = vsel %vm1435_vm3, %v11263_v49, 0.0  ;;  %v11268_v58 = vpop.eup %8718  ;;  %v5365_v14 = vsub.f32 %v11105_v13, %v5321_v34 }
 0x5ac   : > { %v5339_v17 = vpop.xlane.xlu0 %5338  ;;  %v5505_v42 = vsel %vm1435_vm3, %v11268_v58, 0.0 }
 0x5ad   : > { %5500 = vadd.xlane.f32.xlu0 %v5499_v8  ;;  %v5371_v22 = vsub.f32 %v11129_v44, %v5339_v17  ;;  %8724 = vpow2.f32 %v5430_v60  ;;  %v12189_v44 = vld [vmem:[#allocation26_spill] sm:$0xff]  ;;  %v5422_v17 = vmul.f32 1.442695, %v5365_v14  ;;  %v5368_v8 = vsub.f32 %v11113_v48, %v5330_v1  ;;  %v5336_v60 = vpop.xlane.xlu1 %5335 }
 0x5ae   : > { %v11272_v56 = vpop.eup %8720 }
 0x5af   : > { %v5434_v6 = vmul.f32 1.442695, %v5371_v22  ;;  %v5514_v11 = vsel %vm1435_vm3, %v11272_v56, 0.0  ;;  %v5428_v22 = vmul.f32 1.442695, %v5368_v8 }
 0x5b1   : > { %5509 = vadd.xlane.f32.xlu0 %v5508_v59  ;;  %8726 = vpow2.f32 %v5434_v6  ;;  %v5370_v59 = vsub.f32 %v11127_v63, %v5336_v60 }
 0x5b2   : > { %8728 = vpow2.f32 %v5422_v17 }
 0x5b3   : > { %v11276_v18 = vpop.eup %8722  ;;  %8730 = vpow2.f32 %v5428_v22  ;;  %v5432_v6 = vmul.f32 1.442695, %v5370_v59 }
 0x5b4   : > { %v5517_v0 = vsel %vm1435_vm3, %v11276_v18, 0.0 }
 0x5b5   : > { %5506 = vadd.xlane.f32.xlu0 %v5505_v42  ;;  %8732 = vpow2.f32 %v5432_v6 }
 0x5b7   : > { %v11282_v12 = vpop.eup %8724 }
 0x5b8   : > { %v5523_v15 = vsel %vm1435_vm3, %v11282_v12, 0.0 }
 0x5b9   : > { %5515 = vadd.xlane.f32.xlu0 %v5514_v11  ;;  %3866 = vrot.lane.b32.xlu1 %v12189_v44, %s8809_s8  ;;  %v11295_v11 = vpop.permute.xlu0 %3862 }
 0x5bb   : > { %v11286_v54 = vpop.eup %8726 }
 0x5bc   : > { %v5529_v25 = vsel %vm1435_vm3, %v11286_v54, 0.0  ;;  %v11293_v42 = vpop.eup %8728 }
 0x5bd   : > { %5518 = vadd.xlane.f32.xlu0 %v5517_v0  ;;  %v5511_v0 = vsel %vm1435_vm3, %v11293_v42, 0.0  ;;  %v11299_v13 = vpop.eup %8730 }
 0x5be   : > { %v5520_v63 = vsel %vm1435_vm3, %v11299_v13, 0.0 }
 0x5bf   : > { %v11303_v34 = vpop.eup %8732 }
 0x5c1   : > { %5524 = vadd.xlane.f32.xlu0 %v5523_v15  ;;  %v5526_v15 = vsel %vm1435_vm3, %v11303_v34, 0.0 }
 0x5c5   : > { %5530 = vadd.xlane.f32.xlu0 %v5529_v25 }
 0x5da   : > { %v5438_v44 = vpop.xlane.xlu1 %5437 }
 0x5db   : > { %8734 = vrcp.f32 %v5438_v44 }
 0x5dd   : > { %5512 = vadd.xlane.f32.xlu1 %v5511_v0 }
 0x5e0   : > { %v5441_v48 = vpop.xlane.xlu0 %5440 }
 0x5e1   : > { %8736 = vrcp.f32 %v5441_v48  ;;  %5521 = vadd.xlane.f32.xlu1 %v5520_v63 }
 0x5e5   : > { %5527 = vadd.xlane.f32.xlu1 %v5526_v15  ;;  %v8735_v25 = vpop.eup %8734 }
 0x5e6   : > { %v5564_v14 = vmul.f32 %v8735_v25, %v11145_v32 }
 0x5eb   : > { %v8737_v1 = vpop.eup %8736 }
 0x5ec   : > { %v5565_v17 = vmul.f32 %v8737_v1, %v11149_v28 }
 0x5ee   : > { %v5596_v8 = vpack.c.bf16 %v5565_v17, %v5564_v14 }
 0x5f0   : > { %8316 = vmatmul.mubr.msk.bf16.vlgmr.msra.gmra.mrb[80].mxu0 %vm1435_vm3, %v5596_v8 }
 0x5f1   : > { %8326 = vmatpush3.bf16.msra.mxu0 %v10791_v53  ;;  %8327 = vmatprep.mubr.msk.bf16.mxu0 %vm8807_vm2, %v12059_v10 }
 0x5f2   : > { %8337 = vmatprep.subr.bf16.mxu0 %v12059_v10 }
 0x60d   : > { %v5444_v60 = vpop.xlane.xlu1 %5443 }
 0x60e   : > { %8738 = vrcp.f32 %v5444_v60 }
 0x611   : > { %v5447_v22 = vpop.xlane.xlu0 %5446  ;;  %v5450_v59 = vpop.xlane.xlu1 %5449 }
 0x612   : > { %8740 = vrcp.f32 %v5447_v22 }
 0x613   : > { %8742 = vrcp.f32 %v5450_v59 }
 0x615   : > { %v5456_v32 = vpop.xlane.xlu1 %5455 }
 0x616   : > { %v5453_v6 = vpop.xlane.xlu0 %5452 }
 0x617   : > { %8744 = vrcp.f32 %v5453_v6 }
 0x618   : > { %v8739_v44 = vpop.eup %8738 }
 0x619   : > { %v5566_v53 = vmul.f32 %v8739_v44, %v11160_v55 }
 0x61a   : > { %v5462_v28 = vpop.xlane.xlu0 %5461 }
 0x61b   : > { %8746 = vrcp.f32 %v5462_v28 }
 0x61c   : > { %v8741_v0 = vpop.eup %8740  ;;  %8748 = vrcp.f32 %v5456_v32 }
 0x61d   : > { %v5567_v48 = vmul.f32 %v8741_v0, %v11168_v30  ;;  %v5465_v63 = vpop.xlane.xlu1 %5464  ;;  %v8743_v25 = vpop.eup %8742 }
 0x61e   : > { %v5459_v15 = vpop.xlane.xlu0 %5458  ;;  %8750 = vrcp.f32 %v5465_v63  ;;  %v5568_v17 = vmul.f32 %v8743_v25, %v11164_v52 }
 0x61f   : > { %8752 = vrcp.f32 %v5459_v15  ;;  %v5597_v1 = vpack.c.bf16 %v5567_v48, %v5566_v53 }
 0x621   : > { %v8745_v14 = vpop.eup %8744  ;;  %v5474_v60 = vpop.xlane.xlu1 %5473  ;;  %8322 = vmatmul.mubr.msk.bf16.vlgmr.msra.gmra.mrb[144].mxu1 %vm1435_vm3, %v5597_v1 }
 0x622   : > { %v5569_v8 = vmul.f32 %v8745_v14, %v11178_v26  ;;  %v5468_v22 = vpop.xlane.xlu0 %5467  ;;  %8332 = vmatpush3.bf16.msra.mxu1 %v10796_v35  ;;  %8333 = vmatprep.mubr.msk.bf16.mxu1 %vm8807_vm2, %v12059_v10 }
 0x623   : > { %8343 = vmatprep.subr.bf16.mxu1 %v12059_v10  ;;  %8754 = vrcp.f32 %v5468_v22 }
 0x624   : > { %v5598_v55 = vpack.c.bf16 %v5569_v8, %v5568_v17 }
 0x625   : > { %v5480_v30 = vpop.xlane.xlu1 %5479  ;;  %v8747_v52 = vpop.eup %8746 }
 0x626   : > { %8328 = vmatmul.mubr.msk.bf16.vlgmr.msra.gmra.mrb[84].mxu0 %vm1435_vm3, %v5598_v55  ;;  %v5471_v59 = vpop.xlane.xlu0 %5470  ;;  %v8749_v26 = vpop.eup %8748  ;;  %v5572_v32 = vmul.f32 %v8747_v52, %v11186_v50 }
 0x627   : > { %8338 = vmatpush3.bf16.msra.mxu0 %v10808_v31  ;;  %8339 = vmatprep.mubr.msk.bf16.mxu0 %vm8807_vm2, %v12059_v10  ;;  %8756 = vrcp.f32 %v5471_v59  ;;  %v5570_v53 = vmul.f32 %v8749_v26, %v11176_v7  ;;  %v4340_v59 = vcombine.low %v11139_v36, %v11295_v11 }
 0x628   : > { %8349 = vmatprep.subr.bf16.mxu0 %v12059_v10  ;;  %v8751_v35 = vpop.eup %8750  ;;  %8758 = vrcp.f32 %v5474_v60 }
 0x629   : > { %v8753_v6 = vpop.eup %8752  ;;  %v5573_v28 = vmul.f32 %v8751_v35, %v11194_v27  ;;  %v5486_v44 = vpop.xlane.xlu1 %5485 }
 0x62a   : > { %v5477_v0 = vpop.xlane.xlu0 %5476  ;;  %v5571_v31 = vmul.f32 %v8753_v6, %v11190_v61 }
 0x62b   : > { %8760 = vrcp.f32 %v5477_v0  ;;  %v5600_v48 = vpack.c.bf16 %v5573_v28, %v5572_v32  ;;  %v4348_v32 = vrot.slane %v4340_v59, %v9731_v21 }
 0x62c   : > { %v5599_v63 = vpack.c.bf16 %v5571_v31, %v5570_v53  ;;  %8762 = vrcp.f32 %v5480_v30  ;;  %v12190_v31 = vcombine.low %v10857_v57, %v10896_v16 }
 0x62d   : > { %v5492_v15 = vpop.xlane.xlu1 %5491  ;;  %v8755_v50 = vpop.eup %8754 }
 0x62e   : > { %8340 = vmatmul.mubr.msk.bf16.vlgmr.msra.gmra.mrb[88].mxu0 %vm1435_vm3, %v5600_v48  ;;  %v5483_v25 = vpop.xlane.xlu0 %5482  ;;  %8334 = vmatmul.mubr.msk.bf16.vlgmr.msra.gmra.mrb[148].mxu1 %vm1435_vm3, %v5599_v63  ;;  %v5574_v1 = vmul.f32 %v8755_v50, %v11202_v41  ;;  %v4341_v41 = vcombine.high %v11139_v36, %v11295_v11  ;;  %v4380_v48 = vrot.slane %v12190_v31, %v9784_v38 }
 0x62f   : > { %8350 = vmatpush3.bf16.msra.mxu0 %v10827_v24  ;;  %8344 = vmatpush3.bf16.msra.mxu1 %v10813_v9  ;;  %8764 = vrcp.f32 %v5483_v25  ;;  %v12191_v63 = vcombine.high %v10857_v57, %v10896_v16  ;;  %v12193_v16 = vcombine.high %v10881_v29, %v10899_v33 }
 0x630   : > { %8345 = vmatprep.mubr.msk.bf16.mxu1 %vm8807_vm2, %v12059_v10  ;;  %8355 = vmatprep.subr.bf16.mxu1 %v12059_v10  ;;  %v4355_v36 = vrot.slane %v4341_v41, %v9731_v21 }
 0x631   : > { %8351 = vmatprep.mubr.msk.bf16.mxu0 %vm8807_vm2, %v12059_v10  ;;  %v8757_v7 = vpop.eup %8756  ;;  %v5498_v61 = vpop.xlane.xlu1 %5497  ;;  %8361 = vmatprep.subr.bf16.mxu0 %v12059_v10 }
 0x632   : > { %v5489_v27 = vpop.xlane.xlu0 %5488  ;;  %v5575_v24 = vmul.f32 %v8757_v7, %v11212_v23  ;;  %v8759_v14 = vpop.eup %8758 }
 0x633   : > { %8766 = vrcp.f32 %v5489_v27  ;;  %v5576_v22 = vmul.f32 %v8759_v14, %v11204_v46  ;;  %v12192_v14 = vcombine.low %v10881_v29, %v10899_v33  ;;  %v12194_v29 = vcombine.low %v10854_v20, %v10860_v19 }
 0x634   : > { %v5601_v9 = vpack.c.bf16 %v5575_v24, %v5574_v1  ;;  %8768 = vrcp.f32 %v5486_v44 }
 0x635   : > { %v8761_v17 = vpop.eup %8760  ;;  %v5504_v8 = vpop.xlane.xlu1 %5503  ;;  %v4396_v57 = vrot.slane %v12192_v14, %v9784_v38 }
 0x636   : > { %v5495_v60 = vpop.xlane.xlu0 %5494  ;;  %v5577_v55 = vmul.f32 %v8761_v17, %v11222_v37  ;;  %8346 = vmatmul.mubr.msk.bf16.vlgmr.msra.gmra.mrb[152].mxu1 %vm1435_vm3, %v5601_v9  ;;  %v8763_v30 = vpop.eup %8762 }
 0x637   : > { %8356 = vmatpush3.bf16.msra.mxu1 %v10832_v39  ;;  %8770 = vrcp.f32 %v5495_v60  ;;  %8357 = vmatprep.mubr.msk.bf16.mxu1 %vm8807_vm2, %v12059_v10  ;;  %v5578_v26 = vmul.f32 %v8763_v30, %v11214_v51 }
 0x638   : > { %8772 = vrcp.f32 %v5492_v15  ;;  %v5602_v46 = vpack.c.bf16 %v5577_v55, %v5576_v22  ;;  %8367 = vmatprep.subr.bf16.mxu1 %v12059_v10  ;;  %v4387_v15 = vrot.slane %v12191_v63, %v9784_v38 }
 0x639   : > { %v8765_v23 = vpop.eup %8764  ;;  %v3867_v37 = vpop.permute.xlu1 %3866 }
 0x63a   : > { %v5501_v52 = vpop.xlane.xlu0 %5500  ;;  %v5579_v35 = vmul.f32 %v8765_v23, %v11231_v43  ;;  %v4356_v39 = vcombine.low %v11141_v4, %v3867_v37  ;;  %v4357_v6 = vcombine.high %v11141_v4, %v3867_v37  ;;  %8352 = vmatmul.mubr.msk.bf16.vlgmr.msra.gmra.mrb[92].mxu0 %vm1435_vm3, %v5602_v46 }
 0x63b   : > { %8363 = vmatprep.mubr.msk.bf16.mxu0 %vm8807_vm2, %v12059_v10  ;;  %8774 = vrcp.f32 %v5501_v52 }
 0x63c   : > { %v4364_v11 = vrot.slane %v4356_v39, %v9731_v21  ;;  %v4371_v28 = vrot.slane %v4357_v6, %v9731_v21  ;;  %v5603_v51 = vpack.c.bf16 %v5579_v35, %v5578_v26  ;;  %8776 = vrcp.f32 %v5498_v61  ;;  %v12196_v39 = vld [vmem:[#allocation13_spill] sm:$0xff]  ;;  %v12197_v6 = vld [vmem:[#allocation11_spill] sm:$0xff] }
 0x63d   : > { %v8767_v43 = vpop.eup %8766  ;;  %8778 = vrcp.f32 %v5504_v8  ;;  %v4403_v61 = vrot.slane %v12193_v16, %v9784_v38 }
 0x63e   : > { %v11366_v44 = vpop.xlane.xlu0 %5509  ;;  %v4404_v0 = vcombine.low %v4348_v32, %v4364_v11  ;;  %v4405_v53 = vcombine.high %v4348_v32, %v4364_v11  ;;  %v4420_v4 = vcombine.low %v4355_v36, %v4371_v28  ;;  %8358 = vmatmul.mubr.msk.bf16.vlgmr.msra.gmra.mrb[156].mxu1 %vm1435_vm3, %v5603_v51  ;;  %v4421_v25 = vcombine.high %v4355_v36, %v4371_v28  ;;  %v8769_v50 = vpop.eup %8768  ;;  %v12200_v28 = vld [vmem:[#allocation29_spill] sm:$0xff]  ;;  %v12201_v51 = vld [vmem:[#allocation10_spill] sm:$0xff] }
 0x63f   : > { %8369 = vmatprep.mubr.msk.bf16.mxu1 %vm8807_vm2, %v12059_v10  ;;  %v5581_v9 = vmul.f32 %v8767_v43, %v11240_v62  ;;  %v5580_v37 = vmul.f32 %v8769_v50, %v11224_v3  ;;  %v12195_v62 = vcombine.high %v10854_v20, %v10860_v19  ;;  %v12198_v32 = vcombine.low %v12196_v39, %v12197_v6 }
 0x640   : > { %v4412_v7 = vrot.slane %v4404_v0, %v9784_v38  ;;  %v4419_v27 = vrot.slane %v4405_v53, %v9784_v38  ;;  %v4428_v1 = vrot.slane %v4420_v4, %v9784_v38  ;;  %v4435_v17 = vrot.slane %v4421_v25, %v9784_v38  ;;  %v12205_v53 = vld [vmem:[#allocation14_spill] sm:$0xff] }
 0x641   : > { %v8771_v24 = vpop.eup %8770  ;;  %v12199_v11 = vcombine.high %v12196_v39, %v12197_v6  ;;  %v12202_v43 = vcombine.low %v12200_v28, %v12201_v51  ;;  %v12203_v20 = vcombine.high %v12200_v28, %v12201_v51  ;;  %v5604_v63 = vpack.c.bf16 %v5581_v9, %v5580_v37 }
 0x642   : > { %v5507_v8 = vpop.xlane.xlu0 %5506  ;;  %v8773_v60 = vpop.eup %8772  ;;  %v5583_v22 = vmul.f32 %v8771_v24, %v11249_v45  ;;  %v4436_v55 = vcombine.low %v4380_v48, %v4412_v7  ;;  %v4437_v30 = vcombine.high %v4380_v48, %v4412_v7  ;;  %v4438_v59 = vcombine.low %v4387_v15, %v4419_v27 }
 0x643   : > { %8780 = vrcp.f32 %v5507_v8  ;;  %v4439_v41 = vcombine.high %v4387_v15, %v4419_v27  ;;  %v4440_v46 = vcombine.low %v4396_v57, %v4428_v1  ;;  %v4441_v23 = vcombine.high %v4396_v57, %v4428_v1 }
 0x644   : > { %v4452_v33 = vpack.c.bf16 %v4436_v55, %v12194_v29  ;;  %v4453_v52 = vpack.c.bf16 %v4437_v30, %v12195_v62  ;;  %v4443_v26 = vcombine.high %v4403_v61, %v4435_v17  ;;  %v5582_v45 = vmul.f32 %v8773_v60, %v11233_v5  ;;  %v12204_v5 = vld [vmem:[#allocation32_spill] sm:$0xff] }
 0x645   : > { %v4454_v36 = vpack.c.bf16 %v4438_v59, %v12198_v32  ;;  %v4455_v3 = vpack.c.bf16 %v4439_v41, %v12199_v11  ;;  %v4456_v0 = vpack.c.bf16 %v4440_v46, %v12202_v43  ;;  %v4457_v19 = vpack.c.bf16 %v4441_v23, %v12203_v20  ;;  %v8775_v25 = vpop.eup %8774 }
 0x646   : > { %v5516_v35 = vpop.xlane.xlu0 %5515  ;;  %8362 = vmatpush3.bf16.msra.mxu0 %v4452_v33  ;;  %8368 = vmatpush3.bf16.msra.mxu1 %v4453_v52  ;;  %v12206_v4 = vcombine.high %v12204_v5, %v12205_v53  ;;  %v4442_v48 = vcombine.low %v4403_v61, %v4435_v17  ;;  %v5605_v15 = vpack.c.bf16 %v5583_v22, %v5582_v45  ;;  %v8777_v27 = vpop.eup %8776 }
 0x647   : > { %8373 = vmatprep.subr.bf16.mxu0 %v12059_v10  ;;  %8379 = vmatprep.subr.bf16.mxu1 %v12059_v10  ;;  %8782 = vrcp.f32 %v5516_v35  ;;  %v12207_v50 = vcombine.low %v12204_v5, %v12205_v53  ;;  %v8779_v24 = vpop.eup %8778  ;;  %v5585_v14 = vmul.f32 %v8775_v25, %v11258_v40  ;;  %v5584_v16 = vmul.f32 %v8777_v27, %v11242_v47 }
 0x648   : > { %v4459_v31 = vpack.c.bf16 %v4443_v26, %v12206_v4  ;;  %v5586_v61 = vmul.f32 %v8779_v24, %v11251_v2 }
 0x649   : > { %v4458_v7 = vpack.c.bf16 %v4442_v48, %v12207_v50  ;;  %8364 = vmatmul.mubr.msk.bf16.vlgmr.msra.gmra.mrb[96].mxu0 %vm1435_vm3, %v5604_v63  ;;  %8370 = vmatmul.mubr.msk.bf16.vlgmr.msra.gmra.mrb[160].mxu1 %vm1435_vm3, %v5605_v15  ;;  %v5606_v17 = vpack.c.bf16 %v5585_v14, %v5584_v16 }
 0x64a   : > { %v5519_v1 = vpop.xlane.xlu0 %5518  ;;  %8374 = vmatpush3.bf16.msra.mxu0 %v4454_v36  ;;  %8380 = vmatpush3.bf16.msra.mxu1 %v4455_v3 }
 0x64b   : > { %8784 = vrcp.f32 %v5519_v1  ;;  %8375 = vmatprep.mubr.msk.bf16.mxu0 %vm8807_vm2, %v12059_v10  ;;  %8381 = vmatprep.mubr.msk.bf16.mxu1 %vm8807_vm2, %v12059_v10 }
 0x64c   : > { %8385 = vmatprep.subr.bf16.mxu0 %v12059_v10  ;;  %8391 = vmatprep.subr.bf16.mxu1 %v12059_v10  ;;  %8786 = vrcp.f32 %v11366_v44 }
 0x64d   : > { %v8781_v57 = vpop.eup %8780 }
 0x64e   : > { %v5587_v9 = vmul.f32 %v8781_v57, %v11268_v58  ;;  %v5525_v22 = vpop.xlane.xlu0 %5524 }
 0x650   : > { %v5607_v8 = vpack.c.bf16 %v5587_v9, %v5586_v61 }
 0x651   : > { %8376 = vmatmul.mubr.msk.bf16.vlgmr.msra.gmra.mrb[100].mxu0 %vm1435_vm3, %v5606_v17  ;;  %v8783_v40 = vpop.eup %8782 }
 0x652   : > { %8382 = vmatmul.mubr.msk.bf16.vlgmr.msra.gmra.mrb[164].mxu1 %vm1435_vm3, %v5607_v8  ;;  %8386 = vmatpush3.bf16.msra.mxu0 %v4456_v0  ;;  %v5590_v47 = vmul.f32 %v8783_v40, %v11272_v56  ;;  %v5531_v30 = vpop.xlane.xlu0 %5530 }
 0x653   : > { %8392 = vmatpush3.bf16.msra.mxu1 %v4457_v19  ;;  %8393 = vmatprep.mubr.msk.bf16.mxu1 %vm8807_vm2, %v12059_v10 }
 0x654   : > { %8403 = vmatprep.subr.bf16.mxu1 %v12059_v10  ;;  %8387 = vmatprep.mubr.msk.bf16.mxu0 %vm8807_vm2, %v12059_v10 }
 0x655   : > { %v8785_v60 = vpop.eup %8784  ;;  %8397 = vmatprep.subr.bf16.mxu0 %v12059_v10 }
 0x656   : > { %v5591_v2 = vmul.f32 %v8785_v60, %v11276_v18  ;;  %v8787_v41 = vpop.eup %8786 }
 0x657   : > { %v5588_v46 = vmul.f32 %v8787_v41, %v11263_v49 }
 0x658   : > { %v5609_v58 = vpack.c.bf16 %v5591_v2, %v5590_v47 }
 0x65a   : > { %8394 = vmatmul.mubr.msk.bf16.vlgmr.msra.gmra.mrb[168].mxu1 %vm1435_vm3, %v5609_v58 }
 0x65b   : > { %8404 = vmatpush3.bf16.msra.mxu1 %v4459_v31  ;;  %8405 = vmatprep.mubr.msk.bf16.mxu1 %vm8807_vm2, %v12059_v10 }
 0x66a   : > { %v5513_v55 = vpop.xlane.xlu1 %5512 }
 0x66b   : > { %8788 = vrcp.f32 %v5513_v55 }
 0x66e   : > { %v5522_v59 = vpop.xlane.xlu1 %5521 }
 0x66f   : > { %8790 = vrcp.f32 %v5522_v59 }
 0x670   : > { %8792 = vrcp.f32 %v5525_v22 }
 0x671   : > { %8794 = vrcp.f32 %v5531_v30 }
 0x672   : > { %v5528_v56 = vpop.xlane.xlu1 %5527 }
 0x673   : > { %8796 = vrcp.f32 %v5528_v56 }
 0x675   : > { %v8789_v18 = vpop.eup %8788 }
 0x676   : > { %v5589_v23 = vmul.f32 %v8789_v18, %v11293_v42 }
 0x678   : > { %v5608_v37 = vpack.c.bf16 %v5589_v23, %v5588_v46 }
 0x679   : > { %v8791_v29 = vpop.eup %8790 }
 0x67a   : > { %v8793_v33 = vpop.eup %8792  ;;  %8388 = vmatmul.mubr.msk.bf16.vlgmr.msra.gmra.mrb[104].mxu0 %vm1435_vm3, %v5608_v37  ;;  %v5592_v62 = vmul.f32 %v8791_v29, %v11299_v13 }
 0x67b   : > { %v8795_v44 = vpop.eup %8794  ;;  %8398 = vmatpush3.bf16.msra.mxu0 %v4458_v7  ;;  %8399 = vmatprep.mubr.msk.bf16.mxu0 %vm8807_vm2, %v12059_v10  ;;  %v5593_v26 = vmul.f32 %v8793_v33, %v11282_v12  ;;  %v6893_v10 = vld [vmem:[%s11858_s4] sm:$0x3] }
 0x67c   : > { %v5595_v45 = vmul.f32 %v8795_v44, %v11286_v54  ;;  %8510 = vmatprep.subr.msk.bf16.mxu0 %vm422_vm0, %v6893_v10  ;;  %v6943_v12 = vsel %vm422_vm0, %v6893_v10, 0 }
 0x67d   : > { %v8797_v52 = vpop.eup %8796  ;;  %v5610_v42 = vpack.c.bf16 %v5593_v26, %v5592_v62 }
 0x67e   : > { %v5594_v49 = vmul.f32 %v8797_v52, %v11303_v34 }
 0x680   : > { %v5611_v35 = vpack.c.bf16 %v5595_v45, %v5594_v49 }
 0x682   : > { %8400 = vmatmul.mubr.msk.bf16.vlgmr.msra.gmra.mrb[108].mxu0 %vm1435_vm3, %v5610_v42  ;;  %8406 = vmatmul.mubr.msk.bf16.vlgmr.msra.gmra.mrb[172].mxu1 %vm1435_vm3, %v5611_v35 }
 0x683   : > { %8410 = vmatpush3.bf16.msra.mxu0 %v6943_v12 }
 0x6c3   : > { %v5649_v39 = vpop.f32.mrb[80].mxu0 }
 0x6c4   : > { %v8317_v6 = vpop.f32.mrb[81].mxu0 }
 0x6c5   : > { %v5652_v32 = vpop.f32.mrb[82].mxu0 }
 0x6c6   : > { %v8318_v36 = vpop.f32.mrb[83].mxu0 }
 0x6f4   : > { %v5693_v54 = vpop.f32.mrb[144].mxu1 }
 0x6f5   : > { %v8323_v13 = vpop.f32.mrb[145].mxu1 }
 0x6f6   : > { %v5696_v34 = vpop.f32.mrb[146].mxu1 }
 0x6f7   : > { %v8324_v11 = vpop.f32.mrb[147].mxu1 }
 0x6f9   : > { %v5737_v3 = vpop.f32.mrb[84].mxu0 }
 0x6fa   : > { %v6316_v28 = vcombine.low %v5649_v39, %v5737_v3  ;;  %v6317_v51 = vcombine.high %v5649_v39, %v5737_v3  ;;  %v8329_v43 = vpop.f32.mrb[85].mxu0 }
 0x6fb   : > { %v5740_v0 = vpop.f32.mrb[86].mxu0 }
 0x6fc   : > { %v6588_v20 = vcombine.low %v5652_v32, %v5740_v0  ;;  %v6589_v19 = vcombine.high %v5652_v32, %v5740_v0  ;;  %v8330_v5 = vpop.f32.mrb[87].mxu0  ;;  %v6324_v50 = vrot.slane %v6316_v28, %v9731_v21  ;;  %v6331_v7 = vrot.slane %v6317_v51, %v9731_v21 }
 0x6fe   : > { %v6596_v60 = vrot.slane %v6588_v20, %v9731_v21  ;;  %v6603_v47 = vrot.slane %v6589_v19, %v9731_v21 }
 0x701   : > { %v5825_v53 = vpop.f32.mrb[88].mxu0  ;;  %v5781_v4 = vpop.f32.mrb[148].mxu1 }
 0x702   : > { %v8341_v31 = vpop.f32.mrb[89].mxu0  ;;  %v6332_v48 = vcombine.low %v5693_v54, %v5781_v4  ;;  %v6333_v63 = vcombine.high %v5693_v54, %v5781_v4  ;;  %v8335_v15 = vpop.f32.mrb[149].mxu1 }
 0x703   : > { %v5828_v25 = vpop.f32.mrb[90].mxu0  ;;  %v5784_v27 = vpop.f32.mrb[150].mxu1 }
 0x704   : > { %v8342_v1 = vpop.f32.mrb[91].mxu0  ;;  %v6340_v24 = vrot.slane %v6332_v48, %v9731_v21  ;;  %v6347_v14 = vrot.slane %v6333_v63, %v9731_v21  ;;  %v6604_v57 = vcombine.low %v5696_v34, %v5784_v27  ;;  %v6605_v16 = vcombine.high %v5696_v34, %v5784_v27  ;;  %v8336_v61 = vpop.f32.mrb[151].mxu1 }
 0x706   : > { %v6380_v9 = vcombine.low %v6324_v50, %v6340_v24  ;;  %v6381_v17 = vcombine.high %v6324_v50, %v6340_v24  ;;  %v6396_v8 = vcombine.low %v6331_v7, %v6347_v14  ;;  %v6397_v40 = vcombine.high %v6331_v7, %v6347_v14 }
 0x707   : > { %v6612_v2 = vrot.slane %v6604_v57, %v9731_v21  ;;  %v6619_v58 = vrot.slane %v6605_v16, %v9731_v21 }
 0x708   : > { %v11472_v49 = vrot.slane %v6380_v9, %v9784_v38  ;;  %v11475_v42 = vrot.slane %v6381_v17, %v9784_v38  ;;  %v11478_v32 = vrot.slane %v6396_v8, %v9784_v38  ;;  %v11481_v36 = vrot.slane %v6397_v40, %v9784_v38 }
 0x709   : > { %v6652_v22 = vcombine.low %v6596_v60, %v6612_v2  ;;  %v6653_v55 = vcombine.high %v6596_v60, %v6612_v2  ;;  %v6668_v30 = vcombine.low %v6603_v47, %v6619_v58  ;;  %v6669_v59 = vcombine.high %v6603_v47, %v6619_v58  ;;  %v5869_v56 = vpop.f32.mrb[152].mxu1  ;;  %v6876_v2 = vld [vmem:[%s11857_s3] sm:$0x3] }
 0x70a   : > { %v8347_v41 = vpop.f32.mrb[153].mxu1  ;;  %8511 = vmatprep.subr.msk.bf16.mxu0 %vm422_vm0, %v6876_v2 }
 0x70b   : > { %v5872_v18 = vpop.f32.mrb[154].mxu1  ;;  %v11488_v51 = vrot.slane %v6652_v22, %v9784_v38  ;;  %v11491_v43 = vrot.slane %v6653_v55, %v9784_v38  ;;  %v11494_v0 = vrot.slane %v6668_v30, %v9784_v38  ;;  %v11497_v20 = vrot.slane %v6669_v59, %v9784_v38 }
 0x70c   : > { %v8348_v46 = vpop.f32.mrb[155].mxu1 }
 0x70d   : > { %v5913_v23 = vpop.f32.mrb[92].mxu0 }
 0x70e   : > { %v6348_v37 = vcombine.low %v5825_v53, %v5913_v23  ;;  %v6349_v29 = vcombine.high %v5825_v53, %v5913_v23  ;;  %v8353_v33 = vpop.f32.mrb[93].mxu0 }
 0x70f   : > { %v5916_v44 = vpop.f32.mrb[94].mxu0 }
 0x710   : > { %v6620_v62 = vcombine.low %v5828_v25, %v5916_v44  ;;  %v6621_v52 = vcombine.high %v5828_v25, %v5916_v44  ;;  %v8354_v26 = vpop.f32.mrb[95].mxu0  ;;  %v6356_v10 = vrot.slane %v6348_v37, %v9731_v21  ;;  %v6363_v12 = vrot.slane %v6349_v29, %v9731_v21 }
 0x711   : > { %v5957_v45 = vpop.f32.mrb[156].mxu1 }
 0x712   : > { %v6364_v35 = vcombine.low %v5869_v56, %v5957_v45  ;;  %v6365_v39 = vcombine.high %v5869_v56, %v5957_v45  ;;  %v8359_v6 = vpop.f32.mrb[157].mxu1  ;;  %v6628_v31 = vrot.slane %v6620_v62, %v9731_v21  ;;  %v6635_v48 = vrot.slane %v6621_v52, %v9731_v21 }
 0x713   : > { %v5960_v54 = vpop.f32.mrb[158].mxu1 }
 0x714   : > { %v6372_v13 = vrot.slane %v6364_v35, %v9731_v21  ;;  %v6379_v34 = vrot.slane %v6365_v39, %v9731_v21  ;;  %v6636_v11 = vcombine.low %v5872_v18, %v5960_v54  ;;  %v6637_v3 = vcombine.high %v5872_v18, %v5960_v54  ;;  %v8360_v28 = vpop.f32.mrb[159].mxu1 }
 0x716   : > { %v6412_v19 = vcombine.low %v6356_v10, %v6372_v13  ;;  %v6413_v5 = vcombine.high %v6356_v10, %v6372_v13  ;;  %v6428_v53 = vcombine.low %v6363_v12, %v6379_v34  ;;  %v6429_v4 = vcombine.high %v6363_v12, %v6379_v34 }
 0x717   : > { %v6644_v63 = vrot.slane %v6636_v11, %v9731_v21  ;;  %v6651_v15 = vrot.slane %v6637_v3, %v9731_v21 }
 0x718   : > { %v11504_v25 = vrot.slane %v6412_v19, %v9784_v38  ;;  %v11507_v50 = vrot.slane %v6413_v5, %v9784_v38  ;;  %v11510_v7 = vrot.slane %v6428_v53, %v9784_v38  ;;  %v11513_v27 = vrot.slane %v6429_v4, %v9784_v38 }
 0x719   : > { %v6684_v1 = vcombine.low %v6628_v31, %v6644_v63  ;;  %v6685_v24 = vcombine.high %v6628_v31, %v6644_v63  ;;  %v6700_v14 = vcombine.low %v6635_v48, %v6651_v15  ;;  %v6701_v57 = vcombine.high %v6635_v48, %v6651_v15 }
 0x71a   : > { %v6445_v16 = vcombine.high %v11472_v49, %v11504_v25  ;;  %v6444_v61 = vcombine.low %v11472_v49, %v11504_v25  ;;  %v6446_v9 = vcombine.low %v11475_v42, %v11507_v50  ;;  %v6447_v17 = vcombine.high %v11475_v42, %v11507_v50 }
 0x71b   : > { %v11524_v8 = vrot.slane %v6684_v1, %v9784_v38  ;;  %v11527_v40 = vrot.slane %v6685_v24, %v9784_v38  ;;  %v11530_v60 = vrot.slane %v6700_v14, %v9784_v38  ;;  %v11533_v47 = vrot.slane %v6701_v57, %v9784_v38 }
 0x71c   : > { %v6001_v58 = vpop.f32.mrb[96].mxu0  ;;  %v6045_v22 = vpop.f32.mrb[160].mxu1  ;;  %v6448_v55 = vcombine.low %v11478_v32, %v11510_v7  ;;  %v6449_v30 = vcombine.high %v11478_v32, %v11510_v7  ;;  %v6450_v59 = vcombine.low %v11481_v36, %v11513_v27  ;;  %v6451_v56 = vcombine.high %v11481_v36, %v11513_v27 }
 0x71d   : > { %v8365_v41 = vpop.f32.mrb[97].mxu0  ;;  %v8371_v18 = vpop.f32.mrb[161].mxu1  ;;  %v6716_v46 = vcombine.low %v11488_v51, %v11524_v8  ;;  %v6717_v23 = vcombine.high %v11488_v51, %v11524_v8  ;;  %v6718_v37 = vcombine.low %v11491_v43, %v11527_v40  ;;  %v6719_v29 = vcombine.high %v11491_v43, %v11527_v40 }
 0x71e   : > { %v6004_v33 = vpop.f32.mrb[98].mxu0  ;;  %v6048_v44 = vpop.f32.mrb[162].mxu1  ;;  %v6720_v62 = vcombine.low %v11494_v0, %v11530_v60  ;;  %v6721_v52 = vcombine.high %v11494_v0, %v11530_v60  ;;  %v12208_v43 = vcombine.low %v11497_v20, %v11533_v47  ;;  %v12210_v0 = vld [vmem:[#allocation34_spill] sm:$0xff] }
 0x71f   : > { %v8366_v35 = vpop.f32.mrb[99].mxu0  ;;  %v8372_v39 = vpop.f32.mrb[163].mxu1 }
 0x724   : > { %v6089_v6 = vpop.f32.mrb[100].mxu0 }
 0x725   : > { %v6133_v10 = vpop.f32.mrb[164].mxu1  ;;  %v6452_v12 = vcombine.low %v6001_v58, %v6089_v6  ;;  %v6453_v54 = vcombine.high %v6001_v58, %v6089_v6  ;;  %v8377_v11 = vpop.f32.mrb[101].mxu0 }
 0x726   : > { %v6468_v13 = vcombine.low %v6045_v22, %v6133_v10  ;;  %v6469_v34 = vcombine.high %v6045_v22, %v6133_v10  ;;  %v8383_v3 = vpop.f32.mrb[165].mxu1  ;;  %v6092_v28 = vpop.f32.mrb[102].mxu0 }
 0x727   : > { %v6136_v19 = vpop.f32.mrb[166].mxu1  ;;  %v6460_v5 = vrot.slane %v6452_v12, %v9731_v21  ;;  %v6467_v53 = vrot.slane %v6453_v54, %v9731_v21  ;;  %v8378_v48 = vpop.f32.mrb[103].mxu0  ;;  %v6724_v15 = vcombine.low %v6004_v33, %v6092_v28  ;;  %v6725_v1 = vcombine.high %v6004_v33, %v6092_v28 }
 0x728   : > { %v6476_v4 = vrot.slane %v6468_v13, %v9731_v21  ;;  %v6483_v31 = vrot.slane %v6469_v34, %v9731_v21  ;;  %v8384_v63 = vpop.f32.mrb[167].mxu1  ;;  %v6740_v24 = vcombine.low %v6048_v44, %v6136_v19  ;;  %v6741_v14 = vcombine.high %v6048_v44, %v6136_v19 }
 0x729   : > { %v6732_v18 = vrot.slane %v6724_v15, %v9731_v21  ;;  %v6739_v35 = vrot.slane %v6725_v1, %v9731_v21 }
 0x72a   : > { %v6516_v57 = vcombine.low %v6460_v5, %v6476_v4  ;;  %v6517_v58 = vcombine.high %v6460_v5, %v6476_v4  ;;  %v6532_v22 = vcombine.low %v6467_v53, %v6483_v31  ;;  %v6533_v41 = vcombine.high %v6467_v53, %v6483_v31 }
 0x72b   : > { %v6748_v39 = vrot.slane %v6740_v24, %v9731_v21  ;;  %v6755_v6 = vrot.slane %v6741_v14, %v9731_v21  ;;  %v11572_v53 = vsel %vm422_vm0, %v6876_v2, 0 }
 0x72c   : > { %v6524_v4 = vrot.slane %v6516_v57, %v9784_v38  ;;  %v6531_v31 = vrot.slane %v6517_v58, %v9784_v38  ;;  %v11577_v48 = vrot.slane %v6532_v22, %v9784_v38  ;;  %v11580_v63 = vrot.slane %v6533_v41, %v9784_v38 }
 0x72d   : > { %v6788_v10 = vcombine.low %v6732_v18, %v6748_v39  ;;  %v6789_v12 = vcombine.high %v6732_v18, %v6748_v39  ;;  %v6804_v54 = vcombine.low %v6739_v35, %v6755_v6  ;;  %v6805_v13 = vcombine.high %v6739_v35, %v6755_v6  ;;  %v6221_v34 = vpop.f32.mrb[168].mxu1 }
 0x72e   : > { %v8395_v33 = vpop.f32.mrb[169].mxu1 }
 0x72f   : > { %v6224_v11 = vpop.f32.mrb[170].mxu1  ;;  %v6796_v2 = vrot.slane %v6788_v10, %v9784_v38  ;;  %v6803_v57 = vrot.slane %v6789_v12, %v9784_v38  ;;  %v11585_v58 = vrot.slane %v6804_v54, %v9784_v38  ;;  %v11588_v22 = vrot.slane %v6805_v13, %v9784_v38 }
 0x730   : > { %v8396_v44 = vpop.f32.mrb[171].mxu1 }
 0x74d   : > { %v6177_v3 = vpop.f32.mrb[104].mxu0 }
 0x74e   : > { %v8389_v28 = vpop.f32.mrb[105].mxu0 }
 0x74f   : > { %v6180_v19 = vpop.f32.mrb[106].mxu0 }
 0x750   : > { %v8390_v5 = vpop.f32.mrb[107].mxu0 }
 0x755   : > { %v6265_v15 = vpop.f32.mrb[108].mxu0  ;;  %v6309_v1 = vpop.f32.mrb[172].mxu1 }
 0x756   : > { %v6484_v24 = vcombine.low %v6177_v3, %v6265_v15  ;;  %v6485_v14 = vcombine.high %v6177_v3, %v6265_v15  ;;  %v6500_v18 = vcombine.low %v6221_v34, %v6309_v1  ;;  %v6501_v35 = vcombine.high %v6221_v34, %v6309_v1  ;;  %v8401_v39 = vpop.f32.mrb[109].mxu0  ;;  %v8407_v6 = vpop.f32.mrb[173].mxu1 }
 0x757   : > { %v6268_v41 = vpop.f32.mrb[110].mxu0  ;;  %v6312_v33 = vpop.f32.mrb[174].mxu1 }
 0x758   : > { %v6492_v44 = vrot.slane %v6484_v24, %v9731_v21  ;;  %v6499_v3 = vrot.slane %v6485_v14, %v9731_v21  ;;  %v6508_v34 = vrot.slane %v6500_v18, %v9731_v21  ;;  %v6515_v28 = vrot.slane %v6501_v35, %v9731_v21  ;;  %v8402_v5 = vpop.f32.mrb[111].mxu0  ;;  %v8408_v10 = vpop.f32.mrb[175].mxu1 }
 0x759   : > { %v6756_v15 = vcombine.low %v6180_v19, %v6268_v41  ;;  %v6757_v12 = vcombine.high %v6180_v19, %v6268_v41  ;;  %v6772_v1 = vcombine.low %v6224_v11, %v6312_v33  ;;  %v6773_v54 = vcombine.high %v6224_v11, %v6312_v33 }
 0x75a   : > { %v6548_v39 = vcombine.low %v6492_v44, %v6508_v34  ;;  %v6549_v6 = vcombine.high %v6492_v44, %v6508_v34  ;;  %v6564_v13 = vcombine.low %v6499_v3, %v6515_v28  ;;  %v6565_v45 = vcombine.high %v6499_v3, %v6515_v28 }
 0x75b   : > { %v6764_v26 = vrot.slane %v6756_v15, %v9731_v21  ;;  %v6771_v24 = vrot.slane %v6757_v12, %v9731_v21  ;;  %v6780_v14 = vrot.slane %v6772_v1, %v9731_v21  ;;  %v6787_v18 = vrot.slane %v6773_v54, %v9731_v21 }
 0x75c   : > { %v6556_v35 = vrot.slane %v6548_v39, %v9784_v38  ;;  %v6563_v5 = vrot.slane %v6549_v6, %v9784_v38  ;;  %v6572_v19 = vrot.slane %v6564_v13, %v9784_v38  ;;  %v6579_v11 = vrot.slane %v6565_v45, %v9784_v38 }
 0x75d   : > { %v6820_v41 = vcombine.low %v6764_v26, %v6780_v14  ;;  %v6821_v33 = vcombine.high %v6764_v26, %v6780_v14  ;;  %v6836_v44 = vcombine.low %v6771_v24, %v6787_v18  ;;  %v6837_v3 = vcombine.high %v6771_v24, %v6787_v18  ;;  %v12225_v24 = vld [vmem:[#allocation52_spill] sm:$0xff]  ;;  %v12226_v14 = vld [vmem:[#allocation47_spill] sm:$0xff] }
 0x75e   : > { %v6581_v34 = vcombine.high %v6524_v4, %v6556_v35  ;;  %v6580_v28 = vcombine.low %v6524_v4, %v6556_v35  ;;  %v6582_v10 = vcombine.low %v6531_v31, %v6563_v5  ;;  %v6583_v15 = vcombine.high %v6531_v31, %v6563_v5  ;;  %v12228_v35 = vld [vmem:[#allocation40_spill] sm:$0xff]  ;;  %v12229_v5 = vld [vmem:[#allocation50_spill] sm:$0xff] }
 0x75f   : > { %v6828_v12 = vrot.slane %v6820_v41, %v9784_v38  ;;  %v6835_v21 = vrot.slane %v6821_v33, %v9784_v38  ;;  %v6844_v1 = vrot.slane %v6836_v44, %v9784_v38  ;;  %v6851_v54 = vrot.slane %v6837_v3, %v9784_v38  ;;  %v12232_v41 = vld [vmem:[#allocation44_spill] sm:$0xff]  ;;  %v12234_v44 = vld [vmem:[#allocation46_spill] sm:$0xff] }
 0x760   : > { %v6878_v45 = vpack.c.bf16 %v6581_v34, %v6445_v16  ;;  %v6877_v26 = vpack.c.bf16 %v6580_v28, %v6444_v61  ;;  %v6879_v4 = vpack.c.bf16 %v6582_v10, %v6446_v9  ;;  %v6880_v31 = vpack.c.bf16 %v6583_v15, %v6447_v17  ;;  %v12235_v3 = vld [vmem:[#allocation42_spill] sm:$0xff]  ;;  %v12237_v28 = vld [vmem:[#allocation37_spill] sm:$0xff]  ;;  %v12238_v10 = vld [vmem:[#allocation35_spill] sm:$0xff] }
 0x761   : > { %v6584_v39 = vcombine.low %v11577_v48, %v6572_v19  ;;  %v6585_v38 = vcombine.high %v11577_v48, %v6572_v19  ;;  %v6586_v6 = vcombine.low %v11580_v63, %v6579_v11  ;;  %v6587_v16 = vcombine.high %v11580_v63, %v6579_v11  ;;  %v12220_v63 = vld [vmem:[#allocation51_spill] sm:$0xff]  ;;  %v12231_v11 = vld [vmem:[#allocation48_spill] sm:$0xff] }
 0x762   : > { %8411 = vmatprep.mubr.msk.bf16.mxu0 %vm373_vm1, %v6877_v26  ;;  %v6852_v49 = vcombine.low %v6796_v2, %v6828_v12  ;;  %v6853_v25 = vcombine.high %v6796_v2, %v6828_v12  ;;  %v6854_v61 = vcombine.low %v6803_v57, %v6835_v21  ;;  %v6855_v13 = vcombine.high %v6803_v57, %v6835_v21  ;;  %v12222_v57 = vld [vmem:[#allocation49_spill] sm:$0xff]  ;;  %v12240_v12 = vld [vmem:[#allocation56_spill] sm:$0xff] }
 0x763   : > { %8412 = vmatmul.mubr.msk.bf16.vlgmr.msra.gmra.mrb[112].mxu0 %vm373_vm1, %v6878_v45  ;;  %v6881_v42 = vpack.c.bf16 %v6584_v39, %v6448_v55  ;;  %v6882_v50 = vpack.c.bf16 %v6585_v38, %v6449_v30  ;;  %v6883_v9 = vpack.c.bf16 %v6586_v6, %v6450_v59  ;;  %v6884_v17 = vpack.c.bf16 %v6587_v16, %v6451_v56  ;;  %v12241_v21 = vld [vmem:[#allocation36_spill] sm:$0xff]  ;;  %v12244_v45 = vld [vmem:[#allocation21_spill] sm:$0xff]  ;;  %v12249_v38 = vld [vmem:[#allocation55_spill] sm:$0xff] }
 0x764   : > { %8415 = vmatprep.mubr.msk.bf16.mxu0 %vm373_vm1, %v6879_v4  ;;  %v6885_v48 = vpack.c.bf16 %v6852_v49, %v6716_v46  ;;  %v6886_v55 = vpack.c.bf16 %v6853_v25, %v6717_v23  ;;  %v6887_v32 = vpack.c.bf16 %v6854_v61, %v6718_v37  ;;  %v6888_v7 = vpack.c.bf16 %v6855_v13, %v6719_v29  ;;  %v12214_v23 = vld [vmem:[#allocation33_spill] sm:$0xff]  ;;  %v12246_v4 = vld [vmem:[#allocation60_spill] sm:$0xff]  ;;  %v12250_v6 = vld [vmem:[#allocation38_spill] sm:$0xff] }
 0x765   : > { %v6856_v36 = vcombine.low %v11585_v58, %v6844_v1  ;;  %v6857_v27 = vcombine.high %v11585_v58, %v6844_v1  ;;  %v6858_v30 = vcombine.low %v11588_v22, %v6851_v54  ;;  %v6859_v59 = vcombine.high %v11588_v22, %v6851_v54  ;;  %8444 = vmatpush3.bf16.msra.mxu0 %v11572_v53  ;;  %v12216_v29 = vld [vmem:[#allocation53_spill] sm:$0xff]  ;;  %v12223_v58 = vld [vmem:[#allocation43_spill] sm:$0xff]  ;;  %v12253_v25 = vld [vmem:[#allocation24_spill] sm:$0xff] }
 0x766   : > { %v12209_v56 = vcombine.high %v11497_v20, %v11533_v47  ;;  %v12211_v20 = vld [vmem:[#allocation31_spill] sm:$0xff]  ;;  %v12213_v47 = vld [vmem:[#allocation41_spill] sm:$0xff]  ;;  %v12224_v22 = vpack.c.bf16 %v12222_v57, %v12223_v58  ;;  %v12227_v18 = vpack.c.bf16 %v12225_v24, %v12226_v14  ;;  %v12230_v19 = vpack.c.bf16 %v12228_v35, %v12229_v5  ;;  %v12255_v13 = vld [vmem:[#allocation28_spill] sm:$0xff] }
 0x767   : > { %v6889_v51 = vpack.c.bf16 %v6856_v36, %v6720_v62  ;;  %v6890_v8 = vpack.c.bf16 %v6857_v27, %v6721_v52  ;;  %v6891_v40 = vpack.c.bf16 %v6858_v30, %v12208_v43  ;;  %v12212_v60 = vpack.c.bf16 %v12210_v0, %v12211_v20  ;;  %v12217_v62 = vld [vmem:[#allocation39_spill] sm:$0xff]  ;;  %v12219_v53 = vld [vmem:[#allocation45_spill] sm:$0xff] }
 0x768   : > { %v6892_v46 = vpack.c.bf16 %v6859_v59, %v12209_v56  ;;  %v12215_v37 = vpack.c.bf16 %v12213_v47, %v12214_v23  ;;  %v12218_v52 = vpack.c.bf16 %v12216_v29, %v12217_v62  ;;  %v12221_v2 = vpack.c.bf16 %v12219_v53, %v12220_v63  ;;  %v12243_v54 = vld [vmem:[#allocation59_spill] sm:$0xff]  ;;  %v12252_v49 = vld [vmem:[#allocation25_spill] sm:$0xff] }
 0x769   : > { %v12233_v33 = vpack.c.bf16 %v12231_v11, %v12232_v41  ;;  %v12236_v34 = vpack.c.bf16 %v12234_v44, %v12235_v3  ;;  %v12239_v15 = vpack.c.bf16 %v12237_v28, %v12238_v10  ;;  %v12242_v1 = vpack.c.bf16 %v12240_v12, %v12241_v21 }
 0x76a   : > { %v12245_v26 = vpack.c.bf16 %v12243_v54, %v12244_v45  ;;  %v12251_v16 = vpack.c.bf16 %v12249_v38, %v12250_v6  ;;  %v12254_v61 = vpack.c.bf16 %v12252_v49, %v12253_v25 }
 0x76b   : > { %8416 = vmatmul.mubr.msk.bf16.gmra.mrb[116].mxu0 %vm373_vm1, %v6880_v31  ;;  %v12247_v31 = vld [vmem:[#allocation58_spill] sm:$0xff] }
 0x76c   : > { %8419 = vmatprep.mubr.msk.bf16.mxu0 %vm373_vm1, %v6881_v42  ;;  %v12248_v39 = vpack.c.bf16 %v12246_v4, %v12247_v31  ;;  %v12256_v42 = vld [vmem:[#allocation22_spill] sm:$0xff] }
 0x773   : > { %8420 = vmatmul.mubr.msk.bf16.gmra.mrb[120].mxu0 %vm373_vm1, %v6882_v50  ;;  %v12257_v50 = vpack.c.bf16 %v12255_v13, %v12256_v42 }
 0x774   : > { %8423 = vmatprep.mubr.msk.bf16.mxu0 %vm373_vm1, %v6883_v9  ;;  %v11746_v9 = vld [vmem:[%s11859_s5] ss:$0 sm:$0xff] }
 0x77b   : > { %8424 = vmatmul.mubr.msk.bf16.gmra.mrb[124].mxu0 %vm373_vm1, %v6884_v17 }
 0x77c   : > { %8427 = vmatprep.mubr.msk.bf16.mxu0 %vm373_vm1, %v6885_v48 }
 0x783   : > { %8428 = vmatmul.mubr.msk.bf16.gmra.mrb[128].mxu0 %vm373_vm1, %v6886_v55 }
 0x784   : > { %8431 = vmatprep.mubr.msk.bf16.mxu0 %vm373_vm1, %v6887_v32 }
 0x78b   : > { %8432 = vmatmul.mubr.msk.bf16.gmra.mrb[132].mxu0 %vm373_vm1, %v6888_v7 }
 0x78c   : > { %8435 = vmatprep.mubr.msk.bf16.mxu0 %vm373_vm1, %v6889_v51 }
 0x793   : > { %8436 = vmatmul.mubr.msk.bf16.gmra.mrb[136].mxu0 %vm373_vm1, %v6890_v8 }
 0x794   : > { %8439 = vmatprep.mubr.msk.bf16.mxu0 %vm373_vm1, %v6891_v40 }
 0x79b   : > { %8440 = vmatmul.mubr.msk.bf16.gmra.mrb[140].mxu0 %vm373_vm1, %v6892_v46 }
 0x79c   : > { %8445 = vmatprep.mubr.msk.bf16.mxu0 %vm373_vm1, %v12212_v60 }
 0x7a3   : > { %8446 = vmatmul.mubr.msk.bf16.vlgmr.msra.gmra.mrb[112].mxu0 %vm373_vm1, %v12215_v37 }
 0x7a4   : > { %8449 = vmatprep.mubr.msk.bf16.mxu0 %vm373_vm1, %v12218_v52 }
 0x7ab   : > { %8450 = vmatmul.mubr.msk.bf16.gmra.mrb[116].mxu0 %vm373_vm1, %v12221_v2 }
 0x7ac   : > { %8453 = vmatprep.mubr.msk.bf16.mxu0 %vm373_vm1, %v12224_v22 }
 0x7b3   : > { %8454 = vmatmul.mubr.msk.bf16.gmra.mrb[120].mxu0 %vm373_vm1, %v12227_v18 }
 0x7b4   : > { %8457 = vmatprep.mubr.msk.bf16.mxu0 %vm373_vm1, %v12230_v19 }
 0x7bb   : > { %8458 = vmatmul.mubr.msk.bf16.gmra.mrb[124].mxu0 %vm373_vm1, %v12233_v33 }
 0x7bc   : > { %8461 = vmatprep.mubr.msk.bf16.mxu0 %vm373_vm1, %v12236_v34 }
 0x7c3   : > { %8462 = vmatmul.mubr.msk.bf16.gmra.mrb[128].mxu0 %vm373_vm1, %v12239_v15 }
 0x7c4   : > { %8465 = vmatprep.mubr.msk.bf16.mxu0 %vm373_vm1, %v12242_v1 }
 0x7cb   : > { %8466 = vmatmul.mubr.msk.bf16.gmra.mrb[132].mxu0 %vm373_vm1, %v12245_v26 }
 0x7cc   : > { %8469 = vmatprep.mubr.msk.bf16.mxu0 %vm373_vm1, %v12248_v39 }
 0x7d3   : > { %8470 = vmatmul.mubr.msk.bf16.gmra.mrb[136].mxu0 %vm373_vm1, %v12251_v16 }
 0x7d4   : > { %8473 = vmatprep.mubr.msk.bf16.mxu0 %vm373_vm1, %v12254_v61 }
 0x7db   : > { %8474 = vmatmul.mubr.msk.bf16.gmra.mrb[140].mxu0 %vm373_vm1, %v12257_v50 }
 0x876   : > { %v8447_v17 = vpop.f32.mrb[112].mxu0 }
 0x877   : > { %v7327_v48 = vadd.f32 %v8447_v17, %v11746_v9  ;;  %v7191_v55 = vpop.f32.mrb[113].mxu0 }
 0x878   : > { %v7325_v32 = vadd.f32 %v11746_v9, %v7191_v55  ;;  %v8448_v7 = vpop.f32.mrb[114].mxu0 }
 0x879   : > { %v7359_v36 = vmax.f32 %v7327_v48, 0.0  ;;  %v7328_v27 = vadd.f32 %v8448_v7, %v11746_v9  ;;  %v7194_v30 = vpop.f32.mrb[115].mxu0 }
 0x87a   : > { %v7357_v59 = vmax.f32 %v7325_v32, 0.0  ;;  %v7326_v51 = vadd.f32 %v11746_v9, %v7194_v30 }
 0x87b   : > { %v7782_v8 = vpack.c.bf16 %v7359_v36, %v7359_v36  ;;  %v7360_v43 = vmax.f32 %v7328_v27, 0.0 }
 0x87c   : > { %v7780_v40 = vpack.c.bf16 %v7357_v59, %v7357_v59  ;;  %v7358_v56 = vmax.f32 %v7326_v51, 0.0 }
 0x87d   : > { %7520 = vst.msk [vmem:[%s11756_s17 + $0x8] sm:$0xf] %vm7517_vm4, %v7782_v8  ;;  %v7783_v46 = vpack.c.bf16 %v7360_v43, %v7360_v43 }
 0x87e   : > { %7518 = vst.msk [vmem:[%s11756_s17] sm:$0xf] %vm7517_vm4, %v7780_v40  ;;  %v7781_v0 = vpack.c.bf16 %v7358_v56, %v7358_v56  ;;  %v8451_v20 = vpop.f32.mrb[116].mxu0 }
 0x87f   : > { %7521 = vst.msk [vmem:[%s11756_s17 + $0xc] sm:$0xf] %vm7517_vm4, %v7783_v46  ;;  %v7331_v60 = vadd.f32 %v8451_v20, %v11746_v9  ;;  %v7207_v47 = vpop.f32.mrb[117].mxu0 }
 0x880   : > { %7519 = vst.msk [vmem:[%s11756_s17 + $0x4] sm:$0xf] %vm7517_vm4, %v7781_v0  ;;  %v7329_v23 = vadd.f32 %v11746_v9, %v7207_v47  ;;  %v8452_v37 = vpop.f32.mrb[118].mxu0 }
 0x881   : > { %v7363_v29 = vmax.f32 %v7331_v60, 0.0  ;;  %v7332_v62 = vadd.f32 %v8452_v37, %v11746_v9  ;;  %v7210_v52 = vpop.f32.mrb[119].mxu0 }
 0x882   : > { %v7361_v53 = vmax.f32 %v7329_v23, 0.0  ;;  %v7330_v63 = vadd.f32 %v11746_v9, %v7210_v52 }
 0x883   : > { %v7786_v2 = vpack.c.bf16 %v7363_v29, %v7363_v29  ;;  %v7364_v57 = vmax.f32 %v7332_v62, 0.0 }
 0x884   : > { %v7784_v58 = vpack.c.bf16 %v7361_v53, %v7361_v53  ;;  %v7362_v22 = vmax.f32 %v7330_v63, 0.0 }
 0x885   : > { %7524 = vst.msk [vmem:[%s11756_s17 + $0x18] sm:$0xf] %vm7517_vm4, %v7786_v2  ;;  %v7787_v24 = vpack.c.bf16 %v7364_v57, %v7364_v57 }
 0x886   : > { %7522 = vst.msk [vmem:[%s11756_s17 + $0x10] sm:$0xf] %vm7517_vm4, %v7784_v58  ;;  %v7785_v14 = vpack.c.bf16 %v7362_v22, %v7362_v22  ;;  %v8455_v18 = vpop.f32.mrb[120].mxu0 }
 0x887   : > { %7525 = vst.msk [vmem:[%s11756_s17 + $0x1c] sm:$0xf] %vm7517_vm4, %v7787_v24  ;;  %v7335_v35 = vadd.f32 %v8455_v18, %v11746_v9  ;;  %v7223_v5 = vpop.f32.mrb[121].mxu0 }
 0x888   : > { %7523 = vst.msk [vmem:[%s11756_s17 + $0x14] sm:$0xf] %vm7517_vm4, %v7785_v14  ;;  %v7333_v19 = vadd.f32 %v11746_v9, %v7223_v5  ;;  %v8456_v11 = vpop.f32.mrb[122].mxu0 }
 0x889   : > { %v7367_v41 = vmax.f32 %v7335_v35, 0.0  ;;  %v7336_v33 = vadd.f32 %v8456_v11, %v11746_v9  ;;  %v7226_v44 = vpop.f32.mrb[123].mxu0 }
 0x88a   : > { %v7365_v3 = vmax.f32 %v7333_v19, 0.0  ;;  %v7334_v34 = vadd.f32 %v11746_v9, %v7226_v44 }
 0x88b   : > { %v7790_v28 = vpack.c.bf16 %v7367_v41, %v7367_v41  ;;  %v7368_v10 = vmax.f32 %v7336_v33, 0.0 }
 0x88c   : > { %v7788_v15 = vpack.c.bf16 %v7365_v3, %v7365_v3  ;;  %v7366_v12 = vmax.f32 %v7334_v34, 0.0 }
 0x88d   : > { %7528 = vst.msk [vmem:[%s11756_s17 + $0x28] sm:$0xf] %vm7517_vm4, %v7790_v28  ;;  %v7791_v21 = vpack.c.bf16 %v7368_v10, %v7368_v10 }
 0x88e   : > { %7526 = vst.msk [vmem:[%s11756_s17 + $0x20] sm:$0xf] %vm7517_vm4, %v7788_v15  ;;  %v7789_v1 = vpack.c.bf16 %v7366_v12, %v7366_v12  ;;  %v8459_v54 = vpop.f32.mrb[124].mxu0 }
 0x88f   : > { %7529 = vst.msk [vmem:[%s11756_s17 + $0x2c] sm:$0xf] %vm7517_vm4, %v7791_v21  ;;  %v7339_v45 = vadd.f32 %v8459_v54, %v11746_v9  ;;  %v7239_v26 = vpop.f32.mrb[125].mxu0 }
 0x890   : > { %7527 = vst.msk [vmem:[%s11756_s17 + $0x24] sm:$0xf] %vm7517_vm4, %v7789_v1  ;;  %v7337_v4 = vadd.f32 %v11746_v9, %v7239_v26  ;;  %v8460_v31 = vpop.f32.mrb[126].mxu0 }
 0x891   : > { %v7371_v39 = vmax.f32 %v7339_v45, 0.0  ;;  %v7340_v38 = vadd.f32 %v8460_v31, %v11746_v9  ;;  %v7242_v6 = vpop.f32.mrb[127].mxu0 }
 0x892   : > { %v7369_v16 = vmax.f32 %v7337_v4, 0.0  ;;  %v7338_v49 = vadd.f32 %v11746_v9, %v7242_v6 }
 0x893   : > { %v7794_v25 = vpack.c.bf16 %v7371_v39, %v7371_v39  ;;  %v7372_v61 = vmax.f32 %v7340_v38, 0.0 }
 0x894   : > { %v7792_v13 = vpack.c.bf16 %v7369_v16, %v7369_v16  ;;  %v7370_v42 = vmax.f32 %v7338_v49, 0.0 }
 0x895   : > { %7532 = vst.msk [vmem:[%s11756_s17 + $0x38] sm:$0xf] %vm7517_vm4, %v7794_v25  ;;  %v7795_v50 = vpack.c.bf16 %v7372_v61, %v7372_v61 }
 0x896   : > { %7530 = vst.msk [vmem:[%s11756_s17 + $0x30] sm:$0xf] %vm7517_vm4, %v7792_v13  ;;  %v7793_v17 = vpack.c.bf16 %v7370_v42, %v7370_v42  ;;  %v8463_v48 = vpop.f32.mrb[128].mxu0 }
 0x897   : > { %7533 = vst.msk [vmem:[%s11756_s17 + $0x3c] sm:$0xf] %vm7517_vm4, %v7795_v50  ;;  %v7343_v55 = vadd.f32 %v8463_v48, %v11746_v9  ;;  %v7255_v32 = vpop.f32.mrb[129].mxu0 }
 0x898   : > { %7531 = vst.msk [vmem:[%s11756_s17 + $0x34] sm:$0xf] %vm7517_vm4, %v7793_v17  ;;  %v7341_v7 = vadd.f32 %v11746_v9, %v7255_v32  ;;  %v8464_v36 = vpop.f32.mrb[130].mxu0 }
 0x899   : > { %v7375_v27 = vmax.f32 %v7343_v55, 0.0  ;;  %v7344_v30 = vadd.f32 %v8464_v36, %v11746_v9  ;;  %v7258_v59 = vpop.f32.mrb[131].mxu0 }
 0x89a   : > { %v7373_v51 = vmax.f32 %v7341_v7, 0.0  ;;  %v7342_v8 = vadd.f32 %v11746_v9, %v7258_v59 }
 0x89b   : > { %v7798_v43 = vpack.c.bf16 %v7375_v27, %v7375_v27  ;;  %v7376_v40 = vmax.f32 %v7344_v30, 0.0 }
 0x89c   : > { %v7796_v56 = vpack.c.bf16 %v7373_v51, %v7373_v51  ;;  %v7374_v46 = vmax.f32 %v7342_v8, 0.0 }
 0x89d   : > { %7536 = vst.msk [vmem:[%s11756_s17 + $0x48] sm:$0xf] %vm7517_vm4, %v7798_v43  ;;  %v7799_v0 = vpack.c.bf16 %v7376_v40, %v7376_v40 }
 0x89e   : > { %7534 = vst.msk [vmem:[%s11756_s17 + $0x40] sm:$0xf] %vm7517_vm4, %v7796_v56  ;;  %v7797_v20 = vpack.c.bf16 %v7374_v46, %v7374_v46  ;;  %v8467_v60 = vpop.f32.mrb[132].mxu0 }
 0x89f   : > { %7537 = vst.msk [vmem:[%s11756_s17 + $0x4c] sm:$0xf] %vm7517_vm4, %v7799_v0  ;;  %v7347_v47 = vadd.f32 %v8467_v60, %v11746_v9  ;;  %v7271_v23 = vpop.f32.mrb[133].mxu0 }
 0x8a0   : > { %7535 = vst.msk [vmem:[%s11756_s17 + $0x44] sm:$0xf] %vm7517_vm4, %v7797_v20  ;;  %v7345_v37 = vadd.f32 %v11746_v9, %v7271_v23  ;;  %v8468_v29 = vpop.f32.mrb[134].mxu0 }
 0x8a1   : > { %v7379_v62 = vmax.f32 %v7347_v47, 0.0  ;;  %v7348_v52 = vadd.f32 %v8468_v29, %v11746_v9  ;;  %v7274_v53 = vpop.f32.mrb[135].mxu0 }
 0x8a2   : > { %v7377_v63 = vmax.f32 %v7345_v37, 0.0  ;;  %v7346_v2 = vadd.f32 %v11746_v9, %v7274_v53 }
 0x8a3   : > { %v7802_v57 = vpack.c.bf16 %v7379_v62, %v7379_v62  ;;  %v7380_v58 = vmax.f32 %v7348_v52, 0.0 }
 0x8a4   : > { %v7800_v22 = vpack.c.bf16 %v7377_v63, %v7377_v63  ;;  %v7378_v24 = vmax.f32 %v7346_v2, 0.0 }
 0x8a5   : > { %7540 = vst.msk [vmem:[%s11756_s17 + $0x58] sm:$0xf] %vm7517_vm4, %v7802_v57  ;;  %v7803_v14 = vpack.c.bf16 %v7380_v58, %v7380_v58 }
 0x8a6   : > { %7538 = vst.msk [vmem:[%s11756_s17 + $0x50] sm:$0xf] %vm7517_vm4, %v7800_v22  ;;  %v7801_v18 = vpack.c.bf16 %v7378_v24, %v7378_v24  ;;  %v8471_v35 = vpop.f32.mrb[136].mxu0 }
 0x8a7   : > { %7541 = vst.msk [vmem:[%s11756_s17 + $0x5c] sm:$0xf] %vm7517_vm4, %v7803_v14  ;;  %v7351_v5 = vadd.f32 %v8471_v35, %v11746_v9  ;;  %v7287_v19 = vpop.f32.mrb[137].mxu0 }
 0x8a8   : > { %7539 = vst.msk [vmem:[%s11756_s17 + $0x54] sm:$0xf] %vm7517_vm4, %v7801_v18  ;;  %v7349_v11 = vadd.f32 %v11746_v9, %v7287_v19  ;;  %v8472_v41 = vpop.f32.mrb[138].mxu0 }
 0x8a9   : > { %v7383_v33 = vmax.f32 %v7351_v5, 0.0  ;;  %v7352_v44 = vadd.f32 %v8472_v41, %v11746_v9  ;;  %v7290_v3 = vpop.f32.mrb[139].mxu0 }
 0x8aa   : > { %v7381_v34 = vmax.f32 %v7349_v11, 0.0  ;;  %v7350_v28 = vadd.f32 %v11746_v9, %v7290_v3 }
 0x8ab   : > { %v7806_v10 = vpack.c.bf16 %v7383_v33, %v7383_v33  ;;  %v7384_v15 = vmax.f32 %v7352_v44, 0.0 }
 0x8ac   : > { %v7804_v12 = vpack.c.bf16 %v7381_v34, %v7381_v34  ;;  %v7382_v21 = vmax.f32 %v7350_v28, 0.0 }
 0x8ad   : > { %7544 = vst.msk [vmem:[%s11756_s17 + $0x68] sm:$0xf] %vm7517_vm4, %v7806_v10  ;;  %v7807_v1 = vpack.c.bf16 %v7384_v15, %v7384_v15 }
 0x8ae   : > { %7542 = vst.msk [vmem:[%s11756_s17 + $0x60] sm:$0xf] %vm7517_vm4, %v7804_v12  ;;  %v7805_v54 = vpack.c.bf16 %v7382_v21, %v7382_v21  ;;  %v8475_v45 = vpop.f32.mrb[140].mxu0 }
 0x8af   : > { %7545 = vst.msk [vmem:[%s11756_s17 + $0x6c] sm:$0xf] %vm7517_vm4, %v7807_v1  ;;  %v7355_v26 = vadd.f32 %v8475_v45, %v11746_v9  ;;  %v7303_v4 = vpop.f32.mrb[141].mxu0 }
 0x8b0   : > { %7543 = vst.msk [vmem:[%s11756_s17 + $0x64] sm:$0xf] %vm7517_vm4, %v7805_v54  ;;  %v7353_v31 = vadd.f32 %v11746_v9, %v7303_v4  ;;  %v8476_v39 = vpop.f32.mrb[142].mxu0 }
 0x8b1   : > { %v7387_v38 = vmax.f32 %v7355_v26, 0.0  ;;  %v7356_v6 = vadd.f32 %v8476_v39, %v11746_v9  ;;  %v7306_v16 = vpop.f32.mrb[143].mxu0 }
 0x8b2   : > { %v7385_v49 = vmax.f32 %v7353_v31, 0.0  ;;  %v7354_v25 = vadd.f32 %v11746_v9, %v7306_v16 }
 0x8b3   : > { %v7810_v61 = vpack.c.bf16 %v7387_v38, %v7387_v38  ;;  %v7388_v13 = vmax.f32 %v7356_v6, 0.0 }
 0x8b4   : > { %v7808_v42 = vpack.c.bf16 %v7385_v49, %v7385_v49  ;;  %v7386_v50 = vmax.f32 %v7354_v25, 0.0 }
 0x8b5   : > { %7548 = vst.msk [vmem:[%s11756_s17 + $0x78] sm:$0xf] %vm7517_vm4, %v7810_v61  ;;  %v7811_v17 = vpack.c.bf16 %v7388_v13, %v7388_v13 }
 0x8b6   : > { %7546 = vst.msk [vmem:[%s11756_s17 + $0x70] sm:$0xf] %vm7517_vm4, %v7808_v42  ;;  %v7809_v48 = vpack.c.bf16 %v7386_v50, %v7386_v50 }
 0x8b7   : > { %7549 = vst.msk [vmem:[%s11756_s17 + $0x7c] sm:$0xf] %vm7517_vm4, %v7811_v17 }
 0x8b8   : > { %7547 = vst.msk [vmem:[%s11756_s17 + $0x74] sm:$0xf] %vm7517_vm4, %v7809_v48 }
 0x8b9 PF: > { %s16_s21 = sadd.s32 1, %s8804_s21  }
 0x8ba   : > { %p13_p4 = scmp.ge.s32.totalorder %s16_s21, 4  }
 0x8bc   :  { %15 = sbr.rel (!%p13_p4) target bundleno = 1 (0x1), region = 74 }

</bundles_post_ra>
